<compile_context>
chip_gen: v5e
topology: v5e:2x2
jax: 0.10.0
libtpu: 0.0.40
codegen_flags: <defaults>
</compile_context>

<pallas_src>
import functools

import jax
import jax.numpy as jnp
from jax.experimental import pallas as pl
from jax.experimental.pallas import tpu as pltpu


def _bottleneck_kernel(x_ref, w1_ref, s1_ref, b1_ref,
                       w2_ref, s2_ref, b2_ref,
                       w3_ref, s3_ref, b3_ref,
                       o_ref, pad_ref, acc_ref, *, H, W, c_mid):
    """conv1x1+BN+ReLU -> conv3x3+BN+ReLU -> conv1x1+BN -> +residual -> ReLU.

    One grid step processes one batch element (full H x W plane).
    pad_ref : (H+2, W+2, c_mid) f32 scratch holding the zero-padded stage-1
              activation so the 3x3 conv (padding=1, stride=1) is 9 shifted
              plane matmuls.
    acc_ref : (H*W, c_mid) f32 scratch accumulator for the 3x3 conv.
    """
    # ---- Zero only the padding border (interior is overwritten below). ----
    zrow = jnp.zeros((1, W + 2, c_mid), jnp.float32)
    pad_ref[0:1, :, :] = zrow
    pad_ref[H + 1:H + 2, :, :] = zrow
    zcol = jnp.zeros((H + 2, 1, c_mid), jnp.float32)
    pad_ref[:, 0:1, :] = zcol
    pad_ref[:, W + 1:W + 2, :] = zcol

    # ---- Stage 1: 1x1 conv as one plane matmul + BN + ReLU ----
    x_plane = x_ref[0].reshape(H * W, -1)                         # (H*W, Cin) bf16
    t1 = jnp.dot(x_plane, w1_ref[...], preferred_element_type=jnp.float32)
    t1 = jnp.maximum(t1 * s1_ref[...] + b1_ref[...], 0.0)          # (H*W, c_mid) f32
    pad_ref[1:H + 1, 1:W + 1, :] = t1.reshape(H, W, c_mid)

    # ---- Stage 2: 3x3 conv = 9 shifted plane matmuls, VMEM f32 accumulator ----
    # TODO(synk): on v6e, an im2col fusion (K = 9*c_mid) would raise MXU
    # utilization further for small c_mid; the 9-matmul form is kept for clarity.
    for idx in range(9):
        dh, dw = divmod(idx, 3)
        win = pad_ref[dh:dh + H, dw:dw + W, :].reshape(H * W, c_mid)
        contrib = jnp.dot(win.astype(jnp.bfloat16), w2_ref[idx],
                          preferred_element_type=jnp.float32)
        if idx == 0:
            acc_ref[...] = contrib
        else:
            acc_ref[...] += contrib
    t2 = jnp.maximum(acc_ref[...] * s2_ref[...] + b2_ref[...], 0.0)  # (H*W, c_mid) f32

    # ---- Stage 3: 1x1 conv + BN, residual add, ReLU (plane-level) ----
    t3 = jnp.dot(t2.astype(jnp.bfloat16), w3_ref[...],
                 preferred_element_type=jnp.float32)
    t3 = t3 * s3_ref[...] + b3_ref[...]                              # (H*W, Cout) f32
    res = x_plane.astype(jnp.float32)                                # identity residual
    out = jnp.maximum(t3 + res, 0.0)
    o_ref[0] = out.reshape(H, W, -1).astype(o_ref.dtype)             # lane-dense plane store


def _fold_bn(gamma, beta, mean, var, eps=1e-5):
    scale = gamma / jnp.sqrt(var + eps)
    shift = beta - mean * scale
    return (scale.reshape(1, -1).astype(jnp.float32),
            shift.reshape(1, -1).astype(jnp.float32))


def bottleneck_forward_nhwc(x_nhwc, params):
    """Runs the Bottleneck block on NHWC input, returns NHWC output (f32)."""
    N, H, W, Cin = x_nhwc.shape
    c_mid = params["conv1_w"].shape[0]
    Cout = params["conv3_w"].shape[0]
    assert Cout == Cin, "identity residual requires in_channels == out_channels*4"

    # bf16 matmul operands (MXU-native); accumulation stays f32 in the kernel.
    x = x_nhwc.astype(jnp.bfloat16)
    w1 = jnp.transpose(params["conv1_w"][:, :, 0, 0], (1, 0)).astype(jnp.bfloat16)   # (Cin, c_mid)
    w2 = jnp.transpose(params["conv2_w"], (2, 3, 1, 0)).reshape(
        9, c_mid, c_mid).astype(jnp.bfloat16)                                        # (9, ci, co)
    w3 = jnp.transpose(params["conv3_w"][:, :, 0, 0], (1, 0)).astype(jnp.bfloat16)   # (c_mid, Cout)

    s1, b1 = _fold_bn(*params["bn1"])
    s2, b2 = _fold_bn(*params["bn2"])
    s3, b3 = _fold_bn(*params["bn3"])

    kernel = functools.partial(_bottleneck_kernel, H=H, W=W, c_mid=c_mid)

    return pl.pallas_call(
        kernel,
        out_shape=jax.ShapeDtypeStruct((N, H, W, Cout), jnp.float32),
        grid_spec=pltpu.PrefetchScalarGridSpec(
            num_scalar_prefetch=0,
            grid=(N,),
            in_specs=[
                pl.BlockSpec((1, H, W, Cin), lambda n: (n, 0, 0, 0)),   # x (bf16)
                pl.BlockSpec((Cin, c_mid), lambda n: (0, 0)),           # w1
                pl.BlockSpec((1, c_mid), lambda n: (0, 0)),             # s1
                pl.BlockSpec((1, c_mid), lambda n: (0, 0)),             # b1
                pl.BlockSpec((9, c_mid, c_mid), lambda n: (0, 0, 0)),   # w2
                pl.BlockSpec((1, c_mid), lambda n: (0, 0)),             # s2
                pl.BlockSpec((1, c_mid), lambda n: (0, 0)),             # b2
                pl.BlockSpec((c_mid, Cout), lambda n: (0, 0)),          # w3
                pl.BlockSpec((1, Cout), lambda n: (0, 0)),              # s3
                pl.BlockSpec((1, Cout), lambda n: (0, 0)),              # b3
            ],
            out_specs=pl.BlockSpec((1, H, W, Cout), lambda n: (n, 0, 0, 0)),
            scratch_shapes=[
                pltpu.VMEM((H + 2, W + 2, c_mid), jnp.float32),   # padded stage-1 act
                pltpu.VMEM((H * W, c_mid), jnp.float32),          # 3x3 conv accumulator
            ],
        ),
        compiler_params=pltpu.CompilerParams(dimension_semantics=("parallel",)),
    )(x, w1, s1, b1, w2, s2, b2, w3, s3, b3)


def bottleneck_forward(x_nchw, params):
    """PyTorch-layout wrapper: NCHW in, NCHW out."""
    x = jnp.transpose(x_nchw, (0, 2, 3, 1))           # -> NHWC
    out = bottleneck_forward_nhwc(x, params)
    return jnp.transpose(out, (0, 3, 1, 2))           # -> NCHW


# ---------------- pure-JAX reference (for correctness check) ----------------
def _ref_forward(x, p, eps=1e-5):
    def conv(x, w, stride=1, pad=0):
        return jax.lax.conv_general_dilated(
            x, w, (stride, stride), [(pad, pad), (pad, pad)],
            dimension_numbers=("NCHW", "OIHW", "NCHW"))

    def bn(x, stats):
        gamma, beta, mean, var = stats
        inv = gamma / jnp.sqrt(var + eps)
        return x * inv[None, :, None, None] + (beta - mean * inv)[None, :, None, None]

    out = jax.nn.relu(bn(conv(x, p["conv1_w"]), p["bn1"]))
    out = jax.nn.relu(bn(conv(out, p["conv2_w"], 1, 1), p["bn2"]))
    out = bn(conv(out, p["conv3_w"]), p["bn3"])
    return jax.nn.relu(out + x)


if __name__ == "__main__":
    # Small shapes consistent with Bottleneck: in_channels = out_channels * 4
    N, Cin, H, W = 2, 16, 16, 16
    c_mid = 4                      # block's "out_channels"; expansion=4 -> Cout=16

    key = jax.random.PRNGKey(0)
    ks = jax.random.split(key, 16)
    x = jax.random.normal(ks[0], (N, Cin, H, W), jnp.float32)

    def bn_params(kg, kb, km, kv, c):
        return (jax.random.uniform(kg, (c,), minval=0.5, maxval=1.5),
                jax.random.normal(kb, (c,)) * 0.1,
                jax.random.normal(km, (c,)) * 0.1,
                jax.random.uniform(kv, (c,), minval=0.5, maxval=1.5))

    params = {
        "conv1_w": jax.random.normal(ks[1], (c_mid, Cin, 1, 1), jnp.float32) * 0.2,
        "conv2_w": jax.random.normal(ks[2], (c_mid, c_mid, 3, 3), jnp.float32) * 0.2,
        "conv3_w": jax.random.normal(ks[3], (Cin, c_mid, 1, 1), jnp.float32) * 0.2,
        "bn1": bn_params(ks[4], ks[5], ks[6], ks[7], c_mid),
        "bn2": bn_params(ks[8], ks[9], ks[10], ks[11], c_mid),
        "bn3": bn_params(ks[12], ks[13], ks[14], ks[15], Cin),
    }

    out = bottleneck_forward(x, params)
    out = jax.block_until_ready(out)

    ref = _ref_forward(x, params)
    assert out.shape == (N, Cin, H, W), out.shape
    # bf16 matmul operands (f32 accumulation) => loosened tolerance vs f32 reference.
    max_err = float(jnp.max(jnp.abs(out - ref)))
    if max_err > 1e-1:
        raise AssertionError(f"mismatch vs reference: max abs err {max_err}")
    print("KERNEL_OK")
</pallas_src>

<mosaic_0001>
module attributes {stable_mosaic.version = 11 : i64} {
  func.func @_bottleneck_kernel(%arg0: i32, %arg1: memref<1x16x16x16xbf16, #tpu.memory_space<vmem>>, %arg2: memref<16x4xbf16, #tpu.memory_space<vmem>>, %arg3: memref<1x4xf32, #tpu.memory_space<vmem>>, %arg4: memref<1x4xf32, #tpu.memory_space<vmem>>, %arg5: memref<9x4x4xbf16, #tpu.memory_space<vmem>>, %arg6: memref<1x4xf32, #tpu.memory_space<vmem>>, %arg7: memref<1x4xf32, #tpu.memory_space<vmem>>, %arg8: memref<4x16xbf16, #tpu.memory_space<vmem>>, %arg9: memref<1x16xf32, #tpu.memory_space<vmem>>, %arg10: memref<1x16xf32, #tpu.memory_space<vmem>>, %arg11: memref<1x16x16x16xf32, #tpu.memory_space<vmem>>, %arg12: memref<18x18x4xf32, #tpu.memory_space<vmem>>, %arg13: memref<256x4xf32, #tpu.memory_space<vmem>>) attributes {dimension_semantics = [#tpu.dimension_semantics<parallel>], iteration_bounds = array<i64: 2>, scalar_prefetch = 0 : i64, scratch_operands = 2 : i64, tpu.core_type = #tpu.core_type<tc>, window_params = [{transform_indices = @transform_0, window_bounds = array<i64: 1, 16, 16, 16>}, {pipeline_mode = #tpu.pipeline_mode<synchronous>, transform_indices = @transform_1, window_bounds = array<i64: 16, 4>}, {pipeline_mode = #tpu.pipeline_mode<synchronous>, transform_indices = @transform_2, window_bounds = array<i64: 1, 4>}, {pipeline_mode = #tpu.pipeline_mode<synchronous>, transform_indices = @transform_3, window_bounds = array<i64: 1, 4>}, {pipeline_mode = #tpu.pipeline_mode<synchronous>, transform_indices = @transform_4, window_bounds = array<i64: 9, 4, 4>}, {pipeline_mode = #tpu.pipeline_mode<synchronous>, transform_indices = @transform_5, window_bounds = array<i64: 1, 4>}, {pipeline_mode = #tpu.pipeline_mode<synchronous>, transform_indices = @transform_6, window_bounds = array<i64: 1, 4>}, {pipeline_mode = #tpu.pipeline_mode<synchronous>, transform_indices = @transform_7, window_bounds = array<i64: 4, 16>}, {pipeline_mode = #tpu.pipeline_mode<synchronous>, transform_indices = @transform_8, window_bounds = array<i64: 1, 16>}, {pipeline_mode = #tpu.pipeline_mode<synchronous>, transform_indices = @transform_9, window_bounds = array<i64: 1, 16>}, {transform_indices = @transform_10, window_bounds = array<i64: 1, 16, 16, 16>}]} {
    %cst = arith.constant 0.000000e+00 : f32
    %0 = vector.broadcast %cst : f32 to vector<1x18x4xf32>
    %c0 = arith.constant 0 : index
    %c0_0 = arith.constant 0 : index
    %c0_1 = arith.constant 0 : index
    %1 = vector.load %arg12[%c0, %c0_0, %c0_1] : memref<18x18x4xf32, #tpu.memory_space<vmem>>, vector<1x18x4xf32>
    tpu.vector_store %arg12[%c0, %c0_0, %c0_1], %0 {strides = array<i32>} : memref<18x18x4xf32, #tpu.memory_space<vmem>>, vector<1x18x4xf32>,
    %c17 = arith.constant 17 : index
    %c0_2 = arith.constant 0 : index
    %c0_3 = arith.constant 0 : index
    %2 = vector.load %arg12[%c17, %c0_2, %c0_3] : memref<18x18x4xf32, #tpu.memory_space<vmem>>, vector<1x18x4xf32>
    tpu.vector_store %arg12[%c17, %c0_2, %c0_3], %0 {strides = array<i32>} : memref<18x18x4xf32, #tpu.memory_space<vmem>>, vector<1x18x4xf32>,
    %cst_4 = arith.constant 0.000000e+00 : f32
    %3 = vector.broadcast %cst_4 : f32 to vector<18x1x4xf32>
    %c0_5 = arith.constant 0 : index
    %c0_6 = arith.constant 0 : index
    %c0_7 = arith.constant 0 : index
    %4 = vector.load %arg12[%c0_5, %c0_6, %c0_7] : memref<18x18x4xf32, #tpu.memory_space<vmem>>, vector<18x1x4xf32>
    tpu.vector_store %arg12[%c0_5, %c0_6, %c0_7], %3 {strides = array<i32>} : memref<18x18x4xf32, #tpu.memory_space<vmem>>, vector<18x1x4xf32>,
    %c0_8 = arith.constant 0 : index
    %c17_9 = arith.constant 17 : index
    %c0_10 = arith.constant 0 : index
    %5 = vector.load %arg12[%c0_8, %c17_9, %c0_10] : memref<18x18x4xf32, #tpu.memory_space<vmem>>, vector<18x1x4xf32>
    tpu.vector_store %arg12[%c0_8, %c17_9, %c0_10], %3 {strides = array<i32>} : memref<18x18x4xf32, #tpu.memory_space<vmem>>, vector<18x1x4xf32>,
    %c0_11 = arith.constant 0 : index
    %c0_12 = arith.constant 0 : index
    %c0_13 = arith.constant 0 : index
    %c0_14 = arith.constant 0 : index
    %6 = vector.load %arg1[%c0_11, %c0_12, %c0_13, %c0_14] : memref<1x16x16x16xbf16, #tpu.memory_space<vmem>>, vector<1x16x16x16xbf16>
    %7 = vector.shape_cast %6 : vector<1x16x16x16xbf16> to vector<16x16x16xbf16>
    %8 = vector.shape_cast %7 : vector<16x16x16xbf16> to vector<256x16xbf16>
    %c0_15 = arith.constant 0 : index
    %c0_16 = arith.constant 0 : index
    %9 = vector.load %arg2[%c0_15, %c0_16] : memref<16x4xbf16, #tpu.memory_space<vmem>>, vector<16x4xbf16>
    %cst_17 = arith.constant dense<0.000000e+00> : vector<256x4xf32>
    %10 = tpu.matmul %8, %9, %cst_17 {dimension_numbers = #tpu.dot_dimension_numbers<[1], [0], [0], [1], [0, 0, 1, 1], [], []>} : vector<256x16xbf16>, vector<16x4xbf16>, vector<256x4xf32> -> vector<256x4xf32>
    %c0_18 = arith.constant 0 : index
    %c0_19 = arith.constant 0 : index
    %11 = vector.load %arg3[%c0_18, %c0_19] : memref<1x4xf32, #tpu.memory_space<vmem>>, vector<1x4xf32>
    %12 = vector.broadcast %11 : vector<1x4xf32> to vector<256x4xf32>
    %13 = arith.mulf %10, %12 : vector<256x4xf32>
    %c0_20 = arith.constant 0 : index
    %c0_21 = arith.constant 0 : index
    %14 = vector.load %arg4[%c0_20, %c0_21] : memref<1x4xf32, #tpu.memory_space<vmem>>, vector<1x4xf32>
    %15 = vector.broadcast %14 : vector<1x4xf32> to vector<256x4xf32>
    %16 = arith.addf %13, %15 : vector<256x4xf32>
    %cst_22 = arith.constant 0.000000e+00 : f32
    %17 = vector.broadcast %cst_22 : f32 to vector<256x4xf32>
    %18 = arith.maximumf %16, %17 : vector<256x4xf32>
    %19 = vector.shape_cast %18 : vector<256x4xf32> to vector<16x16x4xf32>
    %c1 = arith.constant 1 : index
    %c1_23 = arith.constant 1 : index
    %c0_24 = arith.constant 0 : index
    %20 = vector.load %arg12[%c1, %c1_23, %c0_24] : memref<18x18x4xf32, #tpu.memory_space<vmem>>, vector<16x16x4xf32>
    tpu.vector_store %arg12[%c1, %c1_23, %c0_24], %19 {strides = array<i32>} : memref<18x18x4xf32, #tpu.memory_space<vmem>>, vector<16x16x4xf32>,
    %c0_25 = arith.constant 0 : index
    %c0_26 = arith.constant 0 : index
    %c0_27 = arith.constant 0 : index
    %21 = vector.load %arg12[%c0_25, %c0_26, %c0_27] : memref<18x18x4xf32, #tpu.memory_space<vmem>>, vector<16x16x4xf32>
    %22 = vector.shape_cast %21 : vector<16x16x4xf32> to vector<256x4xf32>
    %23 = arith.truncf %22 : vector<256x4xf32> to vector<256x4xbf16>
    %c0_28 = arith.constant 0 : index
    %c0_29 = arith.constant 0 : index
    %c0_30 = arith.constant 0 : index
    %24 = vector.load %arg5[%c0_28, %c0_29, %c0_30] : memref<9x4x4xbf16, #tpu.memory_space<vmem>>, vector<1x4x4xbf16>
    %25 = vector.shape_cast %24 : vector<1x4x4xbf16> to vector<4x4xbf16>
    %cst_31 = arith.constant dense<0.000000e+00> : vector<256x4xf32>
    %26 = tpu.matmul %23, %25, %cst_31 {dimension_numbers = #tpu.dot_dimension_numbers<[1], [0], [0], [1], [0, 0, 1, 1], [], []>} : vector<256x4xbf16>, vector<4x4xbf16>, vector<256x4xf32> -> vector<256x4xf32>
    %c0_32 = arith.constant 0 : index
    %c0_33 = arith.constant 0 : index
    %27 = vector.load %arg13[%c0_32, %c0_33] : memref<256x4xf32, #tpu.memory_space<vmem>>, vector<256x4xf32>
    tpu.vector_store %arg13[%c0_32, %c0_33], %26 {strides = array<i32>} : memref<256x4xf32, #tpu.memory_space<vmem>>, vector<256x4xf32>,
    %c0_34 = arith.constant 0 : index
    %c1_35 = arith.constant 1 : index
    %c0_36 = arith.constant 0 : index
    %28 = vector.load %arg12[%c0_34, %c1_35, %c0_36] : memref<18x18x4xf32, #tpu.memory_space<vmem>>, vector<16x16x4xf32>
    %29 = vector.shape_cast %28 : vector<16x16x4xf32> to vector<256x4xf32>
    %30 = arith.truncf %29 : vector<256x4xf32> to vector<256x4xbf16>
    %c1_37 = arith.constant 1 : index
    %c0_38 = arith.constant 0 : index
    %c0_39 = arith.constant 0 : index
    %31 = vector.load %arg5[%c1_37, %c0_38, %c0_39] : memref<9x4x4xbf16, #tpu.memory_space<vmem>>, vector<1x4x4xbf16>
    %32 = vector.shape_cast %31 : vector<1x4x4xbf16> to vector<4x4xbf16>
    %cst_40 = arith.constant dense<0.000000e+00> : vector<256x4xf32>
    %33 = tpu.matmul %30, %32, %cst_40 {dimension_numbers = #tpu.dot_dimension_numbers<[1], [0], [0], [1], [0, 0, 1, 1], [], []>} : vector<256x4xbf16>, vector<4x4xbf16>, vector<256x4xf32> -> vector<256x4xf32>
    %c0_41 = arith.constant 0 : index
    %c0_42 = arith.constant 0 : index
    %34 = vector.load %arg13[%c0_41, %c0_42] : memref<256x4xf32, #tpu.memory_space<vmem>>, vector<256x4xf32>
    %35 = arith.addf %34, %33 : vector<256x4xf32>
    %c0_43 = arith.constant 0 : index
    %c0_44 = arith.constant 0 : index
    %36 = vector.load %arg13[%c0_43, %c0_44] : memref<256x4xf32, #tpu.memory_space<vmem>>, vector<256x4xf32>
    tpu.vector_store %arg13[%c0_43, %c0_44], %35 {strides = array<i32>} : memref<256x4xf32, #tpu.memory_space<vmem>>, vector<256x4xf32>,
    %c0_45 = arith.constant 0 : index
    %c2 = arith.constant 2 : index
    %c0_46 = arith.constant 0 : index
    %37 = vector.load %arg12[%c0_45, %c2, %c0_46] : memref<18x18x4xf32, #tpu.memory_space<vmem>>, vector<16x16x4xf32>
    %38 = vector.shape_cast %37 : vector<16x16x4xf32> to vector<256x4xf32>
    %39 = arith.truncf %38 : vector<256x4xf32> to vector<256x4xbf16>
    %c2_47 = arith.constant 2 : index
    %c0_48 = arith.constant 0 : index
    %c0_49 = arith.constant 0 : index
    %40 = vector.load %arg5[%c2_47, %c0_48, %c0_49] : memref<9x4x4xbf16, #tpu.memory_space<vmem>>, vector<1x4x4xbf16>
    %41 = vector.shape_cast %40 : vector<1x4x4xbf16> to vector<4x4xbf16>
    %cst_50 = arith.constant dense<0.000000e+00> : vector<256x4xf32>
    %42 = tpu.matmul %39, %41, %cst_50 {dimension_numbers = #tpu.dot_dimension_numbers<[1], [0], [0], [1], [0, 0, 1, 1], [], []>} : vector<256x4xbf16>, vector<4x4xbf16>, vector<256x4xf32> -> vector<256x4xf32>
    %c0_51 = arith.constant 0 : index
    %c0_52 = arith.constant 0 : index
    %43 = vector.load %arg13[%c0_51, %c0_52] : memref<256x4xf32, #tpu.memory_space<vmem>>, vector<256x4xf32>
    %44 = arith.addf %43, %42 : vector<256x4xf32>
    %c0_53 = arith.constant 0 : index
    %c0_54 = arith.constant 0 : index
    %45 = vector.load %arg13[%c0_53, %c0_54] : memref<256x4xf32, #tpu.memory_space<vmem>>, vector<256x4xf32>
    tpu.vector_store %arg13[%c0_53, %c0_54], %44 {strides = array<i32>} : memref<256x4xf32, #tpu.memory_space<vmem>>, vector<256x4xf32>,
    %c1_55 = arith.constant 1 : index
    %c0_56 = arith.constant 0 : index
    %c0_57 = arith.constant 0 : index
    %46 = vector.load %arg12[%c1_55, %c0_56, %c0_57] : memref<18x18x4xf32, #tpu.memory_space<vmem>>, vector<16x16x4xf32>
    %47 = vector.shape_cast %46 : vector<16x16x4xf32> to vector<256x4xf32>
    %48 = arith.truncf %47 : vector<256x4xf32> to vector<256x4xbf16>
    %c3 = arith.constant 3 : index
    %c0_58 = arith.constant 0 : index
    %c0_59 = arith.constant 0 : index
    %49 = vector.load %arg5[%c3, %c0_58, %c0_59] : memref<9x4x4xbf16, #tpu.memory_space<vmem>>, vector<1x4x4xbf16>
    %50 = vector.shape_cast %49 : vector<1x4x4xbf16> to vector<4x4xbf16>
    %cst_60 = arith.constant dense<0.000000e+00> : vector<256x4xf32>
    %51 = tpu.matmul %48, %50, %cst_60 {dimension_numbers = #tpu.dot_dimension_numbers<[1], [0], [0], [1], [0, 0, 1, 1], [], []>} : vector<256x4xbf16>, vector<4x4xbf16>, vector<256x4xf32> -> vector<256x4xf32>
    %c0_61 = arith.constant 0 : index
    %c0_62 = arith.constant 0 : index
    %52 = vector.load %arg13[%c0_61, %c0_62] : memref<256x4xf32, #tpu.memory_space<vmem>>, vector<256x4xf32>
    %53 = arith.addf %52, %51 : vector<256x4xf32>
    %c0_63 = arith.constant 0 : index
    %c0_64 = arith.constant 0 : index
    %54 = vector.load %arg13[%c0_63, %c0_64] : memref<256x4xf32, #tpu.memory_space<vmem>>, vector<256x4xf32>
    tpu.vector_store %arg13[%c0_63, %c0_64], %53 {strides = array<i32>} : memref<256x4xf32, #tpu.memory_space<vmem>>, vector<256x4xf32>,
    %c1_65 = arith.constant 1 : index
    %c1_66 = arith.constant 1 : index
    %c0_67 = arith.constant 0 : index
    %55 = vector.load %arg12[%c1_65, %c1_66, %c0_67] : memref<18x18x4xf32, #tpu.memory_space<vmem>>, vector<16x16x4xf32>
    %56 = vector.shape_cast %55 : vector<16x16x4xf32> to vector<256x4xf32>
    %57 = arith.truncf %56 : vector<256x4xf32> to vector<256x4xbf16>
    %c4 = arith.constant 4 : index
    %c0_68 = arith.constant 0 : index
    %c0_69 = arith.constant 0 : index
    %58 = vector.load %arg5[%c4, %c0_68, %c0_69] : memref<9x4x4xbf16, #tpu.memory_space<vmem>>, vector<1x4x4xbf16>
    %59 = vector.shape_cast %58 : vector<1x4x4xbf16> to vector<4x4xbf16>
    %cst_70 = arith.constant dense<0.000000e+00> : vector<256x4xf32>
    %60 = tpu.matmul %57, %59, %cst_70 {dimension_numbers = #tpu.dot_dimension_numbers<[1], [0], [0], [1], [0, 0, 1, 1], [], []>} : vector<256x4xbf16>, vector<4x4xbf16>, vector<256x4xf32> -> vector<256x4xf32>
    %c0_71 = arith.constant 0 : index
    %c0_72 = arith.constant 0 : index
    %61 = vector.load %arg13[%c0_71, %c0_72] : memref<256x4xf32, #tpu.memory_space<vmem>>, vector<256x4xf32>
    %62 = arith.addf %61, %60 : vector<256x4xf32>
    %c0_73 = arith.constant 0 : index
    %c0_74 = arith.constant 0 : index
    %63 = vector.load %arg13[%c0_73, %c0_74] : memref<256x4xf32, #tpu.memory_space<vmem>>, vector<256x4xf32>
    tpu.vector_store %arg13[%c0_73, %c0_74], %62 {strides = array<i32>} : memref<256x4xf32, #tpu.memory_space<vmem>>, vector<256x4xf32>,
    %c1_75 = arith.constant 1 : index
    %c2_76 = arith.constant 2 : index
    %c0_77 = arith.constant 0 : index
    %64 = vector.load %arg12[%c1_75, %c2_76, %c0_77] : memref<18x18x4xf32, #tpu.memory_space<vmem>>, vector<16x16x4xf32>
    %65 = vector.shape_cast %64 : vector<16x16x4xf32> to vector<256x4xf32>
    %66 = arith.truncf %65 : vector<256x4xf32> to vector<256x4xbf16>
    %c5 = arith.constant 5 : index
    %c0_78 = arith.constant 0 : index
    %c0_79 = arith.constant 0 : index
    %67 = vector.load %arg5[%c5, %c0_78, %c0_79] : memref<9x4x4xbf16, #tpu.memory_space<vmem>>, vector<1x4x4xbf16>
    %68 = vector.shape_cast %67 : vector<1x4x4xbf16> to vector<4x4xbf16>
    %cst_80 = arith.constant dense<0.000000e+00> : vector<256x4xf32>
    %69 = tpu.matmul %66, %68, %cst_80 {dimension_numbers = #tpu.dot_dimension_numbers<[1], [0], [0], [1], [0, 0, 1, 1], [], []>} : vector<256x4xbf16>, vector<4x4xbf16>, vector<256x4xf32> -> vector<256x4xf32>
    %c0_81 = arith.constant 0 : index
    %c0_82 = arith.constant 0 : index
    %70 = vector.load %arg13[%c0_81, %c0_82] : memref<256x4xf32, #tpu.memory_space<vmem>>, vector<256x4xf32>
    %71 = arith.addf %70, %69 : vector<256x4xf32>
    %c0_83 = arith.constant 0 : index
    %c0_84 = arith.constant 0 : index
    %72 = vector.load %arg13[%c0_83, %c0_84] : memref<256x4xf32, #tpu.memory_space<vmem>>, vector<256x4xf32>
    tpu.vector_store %arg13[%c0_83, %c0_84], %71 {strides = array<i32>} : memref<256x4xf32, #tpu.memory_space<vmem>>, vector<256x4xf32>,
    %c2_85 = arith.constant 2 : index
    %c0_86 = arith.constant 0 : index
    %c0_87 = arith.constant 0 : index
    %73 = vector.load %arg12[%c2_85, %c0_86, %c0_87] : memref<18x18x4xf32, #tpu.memory_space<vmem>>, vector<16x16x4xf32>
    %74 = vector.shape_cast %73 : vector<16x16x4xf32> to vector<256x4xf32>
    %75 = arith.truncf %74 : vector<256x4xf32> to vector<256x4xbf16>
    %c6 = arith.constant 6 : index
    %c0_88 = arith.constant 0 : index
    %c0_89 = arith.constant 0 : index
    %76 = vector.load %arg5[%c6, %c0_88, %c0_89] : memref<9x4x4xbf16, #tpu.memory_space<vmem>>, vector<1x4x4xbf16>
    %77 = vector.shape_cast %76 : vector<1x4x4xbf16> to vector<4x4xbf16>
    %cst_90 = arith.constant dense<0.000000e+00> : vector<256x4xf32>
    %78 = tpu.matmul %75, %77, %cst_90 {dimension_numbers = #tpu.dot_dimension_numbers<[1], [0], [0], [1], [0, 0, 1, 1], [], []>} : vector<256x4xbf16>, vector<4x4xbf16>, vector<256x4xf32> -> vector<256x4xf32>
    %c0_91 = arith.constant 0 : index
    %c0_92 = arith.constant 0 : index
    %79 = vector.load %arg13[%c0_91, %c0_92] : memref<256x4xf32, #tpu.memory_space<vmem>>, vector<256x4xf32>
    %80 = arith.addf %79, %78 : vector<256x4xf32>
    %c0_93 = arith.constant 0 : index
    %c0_94 = arith.constant 0 : index
    %81 = vector.load %arg13[%c0_93, %c0_94] : memref<256x4xf32, #tpu.memory_space<vmem>>, vector<256x4xf32>
    tpu.vector_store %arg13[%c0_93, %c0_94], %80 {strides = array<i32>} : memref<256x4xf32, #tpu.memory_space<vmem>>, vector<256x4xf32>,
    %c2_95 = arith.constant 2 : index
    %c1_96 = arith.constant 1 : index
    %c0_97 = arith.constant 0 : index
    %82 = vector.load %arg12[%c2_95, %c1_96, %c0_97] : memref<18x18x4xf32, #tpu.memory_space<vmem>>, vector<16x16x4xf32>
    %83 = vector.shape_cast %82 : vector<16x16x4xf32> to vector<256x4xf32>
    %84 = arith.truncf %83 : vector<256x4xf32> to vector<256x4xbf16>
    %c7 = arith.constant 7 : index
    %c0_98 = arith.constant 0 : index
    %c0_99 = arith.constant 0 : index
    %85 = vector.load %arg5[%c7, %c0_98, %c0_99] : memref<9x4x4xbf16, #tpu.memory_space<vmem>>, vector<1x4x4xbf16>
    %86 = vector.shape_cast %85 : vector<1x4x4xbf16> to vector<4x4xbf16>
    %cst_100 = arith.constant dense<0.000000e+00> : vector<256x4xf32>
    %87 = tpu.matmul %84, %86, %cst_100 {dimension_numbers = #tpu.dot_dimension_numbers<[1], [0], [0], [1], [0, 0, 1, 1], [], []>} : vector<256x4xbf16>, vector<4x4xbf16>, vector<256x4xf32> -> vector<256x4xf32>
    %c0_101 = arith.constant 0 : index
    %c0_102 = arith.constant 0 : index
    %88 = vector.load %arg13[%c0_101, %c0_102] : memref<256x4xf32, #tpu.memory_space<vmem>>, vector<256x4xf32>
    %89 = arith.addf %88, %87 : vector<256x4xf32>
    %c0_103 = arith.constant 0 : index
    %c0_104 = arith.constant 0 : index
    %90 = vector.load %arg13[%c0_103, %c0_104] : memref<256x4xf32, #tpu.memory_space<vmem>>, vector<256x4xf32>
    tpu.vector_store %arg13[%c0_103, %c0_104], %89 {strides = array<i32>} : memref<256x4xf32, #tpu.memory_space<vmem>>, vector<256x4xf32>,
    %c2_105 = arith.constant 2 : index
    %c2_106 = arith.constant 2 : index
    %c0_107 = arith.constant 0 : index
    %91 = vector.load %arg12[%c2_105, %c2_106, %c0_107] : memref<18x18x4xf32, #tpu.memory_space<vmem>>, vector<16x16x4xf32>
    %92 = vector.shape_cast %91 : vector<16x16x4xf32> to vector<256x4xf32>
    %93 = arith.truncf %92 : vector<256x4xf32> to vector<256x4xbf16>
    %c8 = arith.constant 8 : index
    %c0_108 = arith.constant 0 : index
    %c0_109 = arith.constant 0 : index
    %94 = vector.load %arg5[%c8, %c0_108, %c0_109] : memref<9x4x4xbf16, #tpu.memory_space<vmem>>, vector<1x4x4xbf16>
    %95 = vector.shape_cast %94 : vector<1x4x4xbf16> to vector<4x4xbf16>
    %cst_110 = arith.constant dense<0.000000e+00> : vector<256x4xf32>
    %96 = tpu.matmul %93, %95, %cst_110 {dimension_numbers = #tpu.dot_dimension_numbers<[1], [0], [0], [1], [0, 0, 1, 1], [], []>} : vector<256x4xbf16>, vector<4x4xbf16>, vector<256x4xf32> -> vector<256x4xf32>
    %c0_111 = arith.constant 0 : index
    %c0_112 = arith.constant 0 : index
    %97 = vector.load %arg13[%c0_111, %c0_112] : memref<256x4xf32, #tpu.memory_space<vmem>>, vector<256x4xf32>
    %98 = arith.addf %97, %96 : vector<256x4xf32>
    %c0_113 = arith.constant 0 : index
    %c0_114 = arith.constant 0 : index
    %99 = vector.load %arg13[%c0_113, %c0_114] : memref<256x4xf32, #tpu.memory_space<vmem>>, vector<256x4xf32>
    tpu.vector_store %arg13[%c0_113, %c0_114], %98 {strides = array<i32>} : memref<256x4xf32, #tpu.memory_space<vmem>>, vector<256x4xf32>,
    %c0_115 = arith.constant 0 : index
    %c0_116 = arith.constant 0 : index
    %100 = vector.load %arg13[%c0_115, %c0_116] : memref<256x4xf32, #tpu.memory_space<vmem>>, vector<256x4xf32>
    %c0_117 = arith.constant 0 : index
    %c0_118 = arith.constant 0 : index
    %101 = vector.load %arg6[%c0_117, %c0_118] : memref<1x4xf32, #tpu.memory_space<vmem>>, vector<1x4xf32>
    %102 = vector.broadcast %101 : vector<1x4xf32> to vector<256x4xf32>
    %103 = arith.mulf %100, %102 : vector<256x4xf32>
    %c0_119 = arith.constant 0 : index
    %c0_120 = arith.constant 0 : index
    %104 = vector.load %arg7[%c0_119, %c0_120] : memref<1x4xf32, #tpu.memory_space<vmem>>, vector<1x4xf32>
    %105 = vector.broadcast %104 : vector<1x4xf32> to vector<256x4xf32>
    %106 = arith.addf %103, %105 : vector<256x4xf32>
    %cst_121 = arith.constant 0.000000e+00 : f32
    %107 = vector.broadcast %cst_121 : f32 to vector<256x4xf32>
    %108 = arith.maximumf %106, %107 : vector<256x4xf32>
    %109 = arith.truncf %108 : vector<256x4xf32> to vector<256x4xbf16>
    %c0_122 = arith.constant 0 : index
    %c0_123 = arith.constant 0 : index
    %110 = vector.load %arg8[%c0_122, %c0_123] : memref<4x16xbf16, #tpu.memory_space<vmem>>, vector<4x16xbf16>
    %cst_124 = arith.constant dense<0.000000e+00> : vector<256x16xf32>
    %111 = tpu.matmul %109, %110, %cst_124 {dimension_numbers = #tpu.dot_dimension_numbers<[1], [0], [0], [1], [0, 0, 1, 1], [], []>} : vector<256x4xbf16>, vector<4x16xbf16>, vector<256x16xf32> -> vector<256x16xf32>
    %c0_125 = arith.constant 0 : index
    %c0_126 = arith.constant 0 : index
    %112 = vector.load %arg9[%c0_125, %c0_126] : memref<1x16xf32, #tpu.memory_space<vmem>>, vector<1x16xf32>
    %113 = vector.broadcast %112 : vector<1x16xf32> to vector<256x16xf32>
    %114 = arith.mulf %111, %113 : vector<256x16xf32>
    %c0_127 = arith.constant 0 : index
    %c0_128 = arith.constant 0 : index
    %115 = vector.load %arg10[%c0_127, %c0_128] : memref<1x16xf32, #tpu.memory_space<vmem>>, vector<1x16xf32>
    %116 = vector.broadcast %115 : vector<1x16xf32> to vector<256x16xf32>
    %117 = arith.addf %114, %116 : vector<256x16xf32>
    %118 = arith.extf %8 : vector<256x16xbf16> to vector<256x16xf32>
    %119 = arith.addf %117, %118 : vector<256x16xf32>
    %cst_129 = arith.constant 0.000000e+00 : f32
    %120 = vector.broadcast %cst_129 : f32 to vector<256x16xf32>
    %121 = arith.maximumf %119, %120 : vector<256x16xf32>
    %122 = vector.shape_cast %121 : vector<256x16xf32> to vector<16x16x16xf32>
    %c0_130 = arith.constant 0 : index
    %c0_131 = arith.constant 0 : index
    %c0_132 = arith.constant 0 : index
    %c0_133 = arith.constant 0 : index
    %123 = vector.load %arg11[%c0_130, %c0_131, %c0_132, %c0_133] : memref<1x16x16x16xf32, #tpu.memory_space<vmem>>, vector<1x16x16x16xf32>
    %124 = vector.shape_cast %123 : vector<1x16x16x16xf32> to vector<16x16x16xf32>
    %125 = vector.shape_cast %122 : vector<16x16x16xf32> to vector<1x16x16x16xf32>
    tpu.vector_store %arg11[%c0_130, %c0_131, %c0_132, %c0_133], %125 {strides = array<i32>} : memref<1x16x16x16xf32, #tpu.memory_space<vmem>>, vector<1x16x16x16xf32>,
    return
  }
  func.func @transform_0(%arg0: i32) -> (i32, i32, i32, i32) {
    %c0_i32 = arith.constant 0 : i32
    %c0_i32_0 = arith.constant 0 : i32
    %c0_i32_1 = arith.constant 0 : i32
    %c0_i32_2 = arith.constant 0 : i32
    return %arg0, %c0_i32, %c0_i32_0, %c0_i32_1 : i32, i32, i32, i32
  }
  func.func @transform_1(%arg0: i32) -> (i32, i32) {
    %c0_i32 = arith.constant 0 : i32
    %c0_i32_0 = arith.constant 0 : i32
    %c0_i32_1 = arith.constant 0 : i32
    return %c0_i32, %c0_i32_0 : i32, i32
  }
  func.func @transform_2(%arg0: i32) -> (i32, i32) {
    %c0_i32 = arith.constant 0 : i32
    %c0_i32_0 = arith.constant 0 : i32
    %c0_i32_1 = arith.constant 0 : i32
    return %c0_i32, %c0_i32_0 : i32, i32
  }
  func.func @transform_3(%arg0: i32) -> (i32, i32) {
    %c0_i32 = arith.constant 0 : i32
    %c0_i32_0 = arith.constant 0 : i32
    %c0_i32_1 = arith.constant 0 : i32
    return %c0_i32, %c0_i32_0 : i32, i32
  }
  func.func @transform_4(%arg0: i32) -> (i32, i32, i32) {
    %c0_i32 = arith.constant 0 : i32
    %c0_i32_0 = arith.constant 0 : i32
    %c0_i32_1 = arith.constant 0 : i32
    %c0_i32_2 = arith.constant 0 : i32
    return %c0_i32, %c0_i32_0, %c0_i32_1 : i32, i32, i32
  }
  func.func @transform_5(%arg0: i32) -> (i32, i32) {
    %c0_i32 = arith.constant 0 : i32
    %c0_i32_0 = arith.constant 0 : i32
    %c0_i32_1 = arith.constant 0 : i32
    return %c0_i32, %c0_i32_0 : i32, i32
  }
  func.func @transform_6(%arg0: i32) -> (i32, i32) {
    %c0_i32 = arith.constant 0 : i32
    %c0_i32_0 = arith.constant 0 : i32
    %c0_i32_1 = arith.constant 0 : i32
    return %c0_i32, %c0_i32_0 : i32, i32
  }
  func.func @transform_7(%arg0: i32) -> (i32, i32) {
    %c0_i32 = arith.constant 0 : i32
    %c0_i32_0 = arith.constant 0 : i32
    %c0_i32_1 = arith.constant 0 : i32
    return %c0_i32, %c0_i32_0 : i32, i32
  }
  func.func @transform_8(%arg0: i32) -> (i32, i32) {
    %c0_i32 = arith.constant 0 : i32
    %c0_i32_0 = arith.constant 0 : i32
    %c0_i32_1 = arith.constant 0 : i32
    return %c0_i32, %c0_i32_0 : i32, i32
  }
  func.func @transform_9(%arg0: i32) -> (i32, i32) {
    %c0_i32 = arith.constant 0 : i32
    %c0_i32_0 = arith.constant 0 : i32
    %c0_i32_1 = arith.constant 0 : i32
    return %c0_i32, %c0_i32_0 : i32, i32
  }
  func.func @transform_10(%arg0: i32) -> (i32, i32, i32, i32) {
    %c0_i32 = arith.constant 0 : i32
    %c0_i32_0 = arith.constant 0 : i32
    %c0_i32_1 = arith.constant 0 : i32
    %c0_i32_2 = arith.constant 0 : i32
    return %arg0, %c0_i32, %c0_i32_0, %c0_i32_1 : i32, i32, i32, i32
  }
}

</mosaic_0001>

<bundles_post_ra>
// kernel: tpu_custom_call.1
= control target key start
LH: loop header
LB: loop body
LE: loop exit
PB: predicated region body
PF: predicated region fallthrough
CT: control target
= control target key end

     0   :  { %15 = vsyncpa [#allocation5], 0  ;;  %s6035_s0 = inlined_call_operand.hbm [shape: bf16[2,16,16,16], index: 0, kind: input, shape index: {}]   ;;  %s6036_s1 = inlined_call_operand.vmem [shape: bf16[16,4], index: 1, kind: input, shape index: {}]   ;;  %s6037_s2 = inlined_call_operand.vmem [shape: f32[1,4], index: 2, kind: input, shape index: {}]   ;;  %s6038_s3 = inlined_call_operand.vmem [shape: f32[1,4], index: 3, kind: input, shape index: {}]   ;;  %s6039_s4 = inlined_call_operand.vmem [shape: bf16[9,4,4], index: 4, kind: input, shape index: {}]   ;;  %s6040_s5 = inlined_call_operand.vmem [shape: f32[1,4], index: 5, kind: input, shape index: {}]   ;;  %s6041_s6 = inlined_call_operand.vmem [shape: f32[1,4], index: 6, kind: input, shape index: {}]   ;;  %s6042_s7 = inlined_call_operand.vmem [shape: bf16[4,16], index: 7, kind: input, shape index: {}]   ;;  %s6043_s8 = inlined_call_operand.vmem [shape: f32[1,16], index: 8, kind: input, shape index: {}]   ;;  %s6044_s9 = inlined_call_operand.vmem [shape: f32[1,16], index: 9, kind: input, shape index: {}]   ;;  %s6045_s10 = inlined_call_operand.hbm [shape: f32[2,16,16,16], index: 10, kind: output, shape index: {}]  }
   0x1   :  { %17 = vsyncpa [#allocation5 + $0x1], 0 }
   0x2   :  { %18 = vsyncpa [#allocation6], 0 }
   0x3   :  { %20 = vsyncpa [#allocation6 + $0x1], 0  ;;  %s4420_s13 = smov 0   ;;  %s4422_s14 = smov 0  }
   0x4   :  { %s4424_s15 = smov 0   ;;  %s4426_s16 = smov 0  }
   0x5 LB: > { %6051 = sst [smem:[#allocation10_spill]] %s4354_s15  ;;  %s4441_s17 = sadd.s32 4294967295, %s4358_s16   ;;  %s4358_s16 = sphi %s4426_s16, %s6104_s16   ;;  %s4354_s15 = sphi %s4424_s15, %s6106_s15   ;;  %s4350_s14 = sphi %s4422_s14, %s6108_s14   ;;  %s4346_s13 = sphi %s4420_s13, %s6107_s13  }
   0x6   : > { %s3915_s18 = sadd.s32 4294967294, %s4358_s16   ;;  %s4445_s19 = sadd.s32 1, %s4358_s16  }
   0x7   : > { %6052 = sst [smem:[#allocation11_spill]] %s4445_s19  ;;  %s33_s20 = sadd.s32 1, %s4354_s15 }
   0x8   : > { %s30_s21 = ssub.s32 %s4358_s16, %s4445_s19  ;;  %p40_p0 = scmp.ne.s32.totalorder %s4354_s15, %s4350_s14 }
   0x9   : > { %p31_p1 = scmp.eq.s32.totalorder %s30_s21, 0  ;;  %p41_p2 = scmp.eq.s32.totalorder %s4358_s16, 0 }
   0xa   : > { %p46_p3 = scmp.ne.s32.totalorder %s4350_s14, %s4346_s13  ;;  %p47_p4 = scmp.eq.s32.totalorder %s4441_s17, 0 }
   0xb   : > { %s4457_s22 = scalar_select %p31_p1, %s4354_s15, %s33_s20  }
   0xc   : > { %p4459_p5 = por %p41_p2, %p40_p0  ;;  %p4463_p6 = por %p47_p4, %p46_p3 }
   0xd   : > { %6053 = sst [smem:[#allocation12_spill]] %s4457_s22  ;;  %p259_p7 = scmp.eq.s32.totalorder %s4441_s17, 1 }
   0xe   : > { %p265_p8 = scmp.eq.s32.totalorder %s3915_s18, 1  ;;  %p4215_p10 = scmp.lt.s32.totalorder %s4358_s16, 2 }
   0xf   : > { %p4470_p11 = por %p259_p7, %p40_p0  ;;  %s312_s27 = sand.u32 1, %s4354_s15  }
  0x10   : > { %p4474_p12 = por %p265_p8, %p46_p3  ;;  %s4181_s28 = sshll.u32 %s4358_s16, 7 }
  0x11   : > { %s3918_s29 = sshll.u32 %s312_s27, 7  ;;  %s321_s12 = scalar_lea.hbm %s6035_s0, %s4181_s28 }
  0x12   : > { %s6057_s26 = scalar_select %p4474_p12, 1, 0 }
  0x13   : > { %s322_s20 = sshll.u32 %s321_s12, 4  ;;  %s316_s18 = scalar_lea.vmem [#allocation4], %s3918_s29  ;;  %s323_s20 = int_to_ptr.hbm [resolvable:$true] %s322_s20 }
  0x14   : > { %6058 = sst [smem:[#allocation13_spill]] %s6057_s26  ;;  %s324_s21 = sshll.u32 %s316_s18, 4  ;;  %s325_s21 = int_to_ptr.vmem [resolvable:$true] %s324_s21 }
  0x15   : > { %p4485_p13 = pnand %p4215_p10, %p4459_p5  ;;  %p3921_p0 = scmp.ge.s32.totalorder %s4358_s16, 1 }
  0x16   : > { %p332_p1 = scmp.lt.s32.totalorder %s4358_s16, 3  ;;  %s313_s15 = scalar_lea.sflag [#allocation5], %s312_s27 }
  0x17   : > { %s4262_s19 = sshra.s32 %s323_s20, 4  ;;  %p4266_p3 = pneg %p4485_p13  ;;  %s4263_s19 = int_to_ptr.hbm [resolvable:$true] %s4262_s19 }
  0x18   : > { %s4264_s26 = scalar_lea.hbm %s4263_s19, 128  ;;  %s4269_s23 = scalar_lea.hbm %s6035_s0, 256 }
  0x19   : > { %p4265_p2 = scmp.ne.s32.totalorder %s4263_s19, %s4264_s26  ;;  %p4270_p5 = scmp.lt.s32.totalorder %s4263_s19, %s6035_s0 }
  0x1a   : > { %p4271_p8 = scmp.lt.s32.totalorder %s4269_s23, %s4264_s26 }
  0x1b   : > { %p4267_p4 = pnand %p4266_p3, %p4265_p2 }
  0x1c   : > { %p4272_p10 = por %p4271_p8, %p4270_p5 }
  0x1d   : > { %p4268_p7 = pneg %p4267_p4 }
  0x1f   : > { %p4273_p9 = pnand %p4272_p10, %p4268_p7 }
  0x21   : > { %4276 = shalt.err (!%p4273_p9)
}
  0x22   : > { %s4360_s27 = smov 64   ;;  %s4361_s12 = smov 4  }
  0x23   : > { %4210 = dma.hbm_to_vmem [thread:$0]  (!%p4485_p13), %s323_s20, 2048, %s325_s21, %s313_s15, %s4360_s27, %s4360_s27, %s4361_s12  }
  0x24   : > { %p333_p2 = pnand %p3921_p0, %p332_p1 }
  0x26   : > { %336 = sbr.rel (%p333_p2) target bundleno = 1332 (0x534), region = 60 }
  0x2b   : > { %s4506_s18 = sand.u32 1, %s4350_s14  }
  0x2c   : > { %s3922_s19 = sshll.u32 %s4506_s18, 7  ;;  %s339_s26 = scalar_lea.sflag [#allocation5], %s4506_s18 }
  0x2d   : > { %s4510_s28 = scalar_lea.vmem [#allocation4], %s3922_s19 }
  0x2e   : > { %4337 = dma.done.wait (%p4463_p6), %s339_s26, 2048  }
  0x2f   : > { %4339 = vsyncadd (%p4463_p6), %s339_s26, 4294965248  ;;  %v4198_v0 = vld [vmem:[%s6036_s1] sm:$0xff]  ;;  %v4182_v1 = vld [vmem:[%s4510_s28] sm:$0xff]  ;;  %vm547_vm0 = vcmask 130048   ;;  %vm381_vm1 = vcmask 31744   ;;  %v4362_v7 = vmov 0.0  }
  0x30   : > { %603 = vmatpush.bf16.msra.mxu0 %v4198_v0  ;;  %4200 = vmatpush.bf16.msra.mxu3 %v4198_v0  ;;  %v4183_v2 = vld [vmem:[%s4510_s28 + $0x8] sm:$0xff]  ;;  %v4184_v3 = vld [vmem:[%s4510_s28 + $0x10] sm:$0xff]  ;;  %v4185_v4 = vld [vmem:[%s4510_s28 + $0x18] sm:$0xff]  ;;  %382 = vst.msk [vmem:[#allocation2] sm:$0xff] %vm381_vm1, %v4362_v7  ;;  %vm390_vm2 = vcmask 24576   ;;  %vm919_vm3 = vcmask 1041408  }
  0x31   : > { %v4186_v5 = vld [vmem:[%s4510_s28 + $0x20] sm:$0xff]  ;;  %v4187_v6 = vld [vmem:[%s4510_s28 + $0x28] sm:$0xff]  ;;  %v4188_v8 = vld [vmem:[%s4510_s28 + $0x30] sm:$0xff]  ;;  %383 = vst.msk [vmem:[#allocation2 + $0x8] sm:$0xff] %vm381_vm1, %v4362_v7  ;;  %vm384_vm4 = vcmask 25600   ;;  %s3923_s11 = sshll.u32 %s4506_s18, 8 }
  0x32   : > { %391 = vst.msk [vmem:[#allocation2] sm:$0x1] %vm390_vm2, %v4362_v7  ;;  %v870_v9 = vld [vmem:[%s6039_s4] sm:$0x3]  ;;  %v4024_v10 = vld [vmem:[%s6039_s4 + $0x2] sm:$0x3] }
  0x33   : > { %3992 = vmatmul.msk.bf16.vlgmr.msra.gmra.mxu0 %vm547_vm0, %v4182_v1  ;;  %387 = vst.msk [vmem:[#allocation2 + $0x198] sm:$0xff] %vm381_vm1, %v4362_v7  ;;  %v921_v11 = vsel %vm919_vm3, %v870_v9, 0  ;;  %v4553_v12 = vsel %vm919_vm3, %v4024_v10, 0  ;;  %v4189_v16 = vld [vmem:[%s4510_s28 + $0x38] sm:$0xff]  ;;  %v4610_v17 = vld [vmem:[%s6037_s2] ss:$0 sm:$0xff] }
  0x34   : > { %388 = vst.msk [vmem:[#allocation2 + $0x1a0] sm:$0xff] %vm381_vm1, %v4362_v7  ;;  %930 = vmatpush.bf16.msra.mxu1 %v921_v11  ;;  %1152 = vmatpush.bf16.msra.mxu2 %v4553_v12  ;;  %v4619_v18 = vld [vmem:[%s6038_s3] ss:$0 sm:$0xff]  ;;  %v4190_v19 = vld [vmem:[%s4510_s28 + $0x40] sm:$0xff]  ;;  %v4191_v31 = vld [vmem:[%s4510_s28 + $0x48] sm:$0xff]  ;;  %s5787_s27 = scalar_lea.vmem [#allocation7], %s3923_s11 }
  0x35   : > { %392 = vst.msk [vmem:[#allocation2 + $0x18] sm:$0x1] %vm390_vm2, %v4362_v7  ;;  %4201 = vmatpush.bf16.msrb.mxu3 %v921_v11  ;;  %v4194_v40 = vld [vmem:[%s4510_s28 + $0x60] sm:$0xff]  ;;  %v4192_v47 = vld [vmem:[%s4510_s28 + $0x50] sm:$0xff]  ;;  %v4195_v58 = vld [vmem:[%s4510_s28 + $0x68] sm:$0xff]  ;;  %s4199_s22 = sshll.u32 %s4441_s17, 8 }
  0x36   : > { %393 = vst.msk [vmem:[#allocation2 + $0x30] sm:$0x1] %vm390_vm2, %v4362_v7  ;;  %4004 = vmatmul.msk.bf16.vlgmr.msra.gmra.mxu3 %vm547_vm0, %v4194_v40  ;;  %v4058_v51 = vld [vmem:[%s6039_s4 + $0x6] sm:$0x3]  ;;  %v4193_v1 = vld [vmem:[%s4510_s28 + $0x58] sm:$0xff]  ;;  %s3839_s21 = sshll.u32 %s5787_s27, 4  ;;  %s3840_s21 = int_to_ptr.vmem [resolvable:$true] %s3839_s21 }
  0x37   : > { %394 = vst.msk [vmem:[#allocation2 + $0x48] sm:$0x1] %vm390_vm2, %v4362_v7  ;;  %v1715_v52 = vsel %vm919_vm3, %v4058_v51, 0  ;;  %v4196_v10 = vld [vmem:[%s4510_s28 + $0x70] sm:$0xff]  ;;  %s3827_s17 = scalar_lea.sflag [#allocation6], %s4506_s18  ;;  %s4312_s19 = scalar_lea.hbm %s6045_s10, 512 }
  0x38   : > { %v823_v13 = vld [vmem:[#allocation2 + $0x8] sm:$0xff]  ;;  %395 = vst.msk [vmem:[#allocation2 + $0x60] sm:$0x1] %vm390_vm2, %v4362_v7  ;;  %1724 = vmatpush.bf16.msrb.mxu0 %v1715_v52 }
  0x39   : > { %v822_v14 = vld [vmem:[#allocation2] sm:$0xff]  ;;  %396 = vst.msk [vmem:[#allocation2 + $0x78] sm:$0x1] %vm390_vm2, %v4362_v7  ;;  %4202 = vmatpush.bf16.msra.mxu3 %v4553_v12 }
  0x3a   : > { %v854_v15 = vpack.c.bf16 %v823_v13, %v822_v14  ;;  %397 = vst.msk [vmem:[#allocation2 + $0x90] sm:$0x1] %vm390_vm2, %v4362_v7  ;;  %v1044_v26 = vld [vmem:[#allocation2 + $0x1] sm:$0xff] }
  0x3b   : > { %398 = vst.msk [vmem:[#allocation2 + $0xa8] sm:$0x1] %vm390_vm2, %v4362_v7 }
  0x3c   : > { %4008 = vmatmul.msk.bf16.vlgmr.msra.gmra.mxu1 %vm381_vm1, %v854_v15  ;;  %399 = vst.msk [vmem:[#allocation2 + $0xc0] sm:$0x1] %vm390_vm2, %v4362_v7 }
  0x3d   : > { %400 = vst.msk [vmem:[#allocation2 + $0xd8] sm:$0x1] %vm390_vm2, %v4362_v7 }
  0x3e   : > { %401 = vst.msk [vmem:[#allocation2 + $0xf0] sm:$0x1] %vm390_vm2, %v4362_v7 }
  0x3f   : > { %402 = vst.msk [vmem:[#allocation2 + $0x108] sm:$0x1] %vm390_vm2, %v4362_v7 }
  0x40   : > { %403 = vst.msk [vmem:[#allocation2 + $0x120] sm:$0x1] %vm390_vm2, %v4362_v7 }
  0x41   : > { %404 = vst.msk [vmem:[#allocation2 + $0x138] sm:$0x1] %vm390_vm2, %v4362_v7 }
  0x42   : > { %405 = vst.msk [vmem:[#allocation2 + $0x150] sm:$0x1] %vm390_vm2, %v4362_v7 }
  0x43   : > { %3993 = vmatmul.msk.bf16.gmra.mxu0 %vm547_vm0, %v4183_v2  ;;  %406 = vst.msk [vmem:[#allocation2 + $0x168] sm:$0x1] %vm390_vm2, %v4362_v7 }
  0x44   : > { %407 = vst.msk [vmem:[#allocation2 + $0x180] sm:$0x1] %vm390_vm2, %v4362_v7 }
  0x45   : > { %410 = vst.msk [vmem:[#allocation2 + $0x29] sm:$0x1] %vm390_vm2, %v4362_v7 }
  0x46   : > { %411 = vst.msk [vmem:[#allocation2 + $0x41] sm:$0x1] %vm390_vm2, %v4362_v7  ;;  %4005 = vmatmul.msk.bf16.gmra.mxu3 %vm547_vm0, %v4195_v58 }
  0x47   : > { %412 = vst.msk [vmem:[#allocation2 + $0x59] sm:$0x1] %vm390_vm2, %v4362_v7 }
  0x48   : > { %413 = vst.msk [vmem:[#allocation2 + $0x71] sm:$0x1] %vm390_vm2, %v4362_v7 }
  0x49   : > { %414 = vst.msk [vmem:[#allocation2 + $0x89] sm:$0x1] %vm390_vm2, %v4362_v7 }
  0x4a   : > { %415 = vst.msk [vmem:[#allocation2 + $0xa1] sm:$0x1] %vm390_vm2, %v4362_v7 }
  0x4b   : > { %416 = vst.msk [vmem:[#allocation2 + $0xb9] sm:$0x1] %vm390_vm2, %v4362_v7 }
  0x4c   : > { %417 = vst.msk [vmem:[#allocation2 + $0xd1] sm:$0x1] %vm390_vm2, %v4362_v7 }
  0x4d   : > { %418 = vst.msk [vmem:[#allocation2 + $0xe9] sm:$0x1] %vm390_vm2, %v4362_v7 }
  0x4e   : > { %419 = vst.msk [vmem:[#allocation2 + $0x101] sm:$0x1] %vm390_vm2, %v4362_v7 }
  0x4f   : > { %420 = vst.msk [vmem:[#allocation2 + $0x119] sm:$0x1] %vm390_vm2, %v4362_v7 }
  0x50   : > { %421 = vst.msk [vmem:[#allocation2 + $0x131] sm:$0x1] %vm390_vm2, %v4362_v7 }
  0x51   : > { %422 = vst.msk [vmem:[#allocation2 + $0x149] sm:$0x1] %vm390_vm2, %v4362_v7 }
  0x52   : > { %423 = vst.msk [vmem:[#allocation2 + $0x161] sm:$0x1] %vm390_vm2, %v4362_v7 }
  0x53   : > { %3994 = vmatmul.msk.bf16.gmra.mxu0 %vm547_vm0, %v4184_v3  ;;  %424 = vst.msk [vmem:[#allocation2 + $0x179] sm:$0x1] %vm390_vm2, %v4362_v7 }
  0x54   : > { %425 = vst.msk [vmem:[#allocation2 + $0x191] sm:$0x1] %vm390_vm2, %v4362_v7 }
  0x55   : > { %385 = vst.msk [vmem:[#allocation2 + $0x10] sm:$0x3] %vm384_vm4, %v4362_v7 }
  0x56   : > { %409 = vst.msk [vmem:[#allocation2 + $0x11] sm:$0x1] %vm390_vm2, %v4362_v7  ;;  %4006 = vmatmul.msk.bf16.gmra.mxu3 %vm547_vm0, %v4196_v10 }
  0x57   : > { %389 = vst.msk [vmem:[#allocation2 + $0x1a8] sm:$0x3] %vm384_vm4, %v4362_v7 }
  0x58   : > { %408 = vst.msk [vmem:[#allocation2 + $0x198] sm:$0x1] %vm390_vm2, %v4362_v7 }
  0x59   : > { %426 = vst.msk [vmem:[#allocation2 + $0x1a9] sm:$0x1] %vm390_vm2, %v4362_v7 }
  0x5c   : > { %v1045_v28 = vld [vmem:[#allocation2 + $0x9] sm:$0xff] }
  0x5d   : > { %v1076_v29 = vpack.c.bf16 %v1045_v28, %v1044_v26 }
  0x5f   : > { %4025 = vmatmul.msk.bf16.vlgmr.msra.gmra.mxu2 %vm381_vm1, %v1076_v29 }
  0x63   : > { %3995 = vmatmul.msk.bf16.gmra.mxu0 %vm547_vm0, %v4185_v4 }
  0x73   : > { %3996 = vmatmul.msk.bf16.gmra.mxu0 %vm547_vm0, %v4186_v5 }
  0x83   : > { %3997 = vmatmul.msk.bf16.gmra.mxu0 %vm547_vm0, %v4187_v6 }
  0x93   : > { %3998 = vmatmul.msk.bf16.gmra.mxu0 %vm547_vm0, %v4188_v8 }
  0xa3   : > { %3999 = vmatmul.msk.bf16.gmra.mxu0 %vm547_vm0, %v4189_v16 }
  0xb0   : > { %v605_v20 = vpop.f32.mrf.mxu0 }
  0xb1   : > { %v689_v21 = vmul.f32 %v4610_v17, %v605_v20 }
  0xb3   : > { %v725_v22 = vadd.f32 %v4619_v18, %v689_v21  ;;  %4000 = vmatmul.msk.bf16.gmra.mxu0 %vm547_vm0, %v4190_v19 }
  0xb5   : > { %v757_v23 = vmax.f32 %v725_v22, 0.0 }
  0xb7   : > { %790 = vst.msk [vmem:[#allocation2 + $0x19] sm:$0xff] %vm381_vm1, %v757_v23 }
  0xb8   : > { %v607_v24 = vpop.f32.mrf.mxu0 }
  0xb9   : > { %v690_v25 = vmul.f32 %v4610_v17, %v607_v24 }
  0xbb   : > { %v726_v27 = vadd.f32 %v4619_v18, %v690_v25 }
  0xbd   : > { %v758_v30 = vmax.f32 %v726_v27, 0.0 }
  0xbe   : > { %v824_v36 = vld [vmem:[#allocation2 + $0x18] sm:$0xff] }
  0xbf   : > { %791 = vst.msk [vmem:[#allocation2 + $0x21] sm:$0xff] %vm381_vm1, %v758_v30  ;;  %v1046_v43 = vld [vmem:[#allocation2 + $0x19] sm:$0xff] }
  0xc0   : > { %v610_v32 = vpop.f32.mrf.mxu0 }
  0xc1   : > { %v691_v33 = vmul.f32 %v4610_v17, %v610_v32 }
  0xc3   : > { %v727_v34 = vadd.f32 %v4619_v18, %v691_v33  ;;  %4001 = vmatmul.msk.bf16.gmra.mxu0 %vm547_vm0, %v4191_v31 }
  0xc5   : > { %v759_v35 = vmax.f32 %v727_v34, 0.0 }
  0xc6   : > { %v825_v37 = vld [vmem:[#allocation2 + $0x20] sm:$0xff] }
  0xc7   : > { %792 = vst.msk [vmem:[#allocation2 + $0x31] sm:$0xff] %vm381_vm1, %v759_v35  ;;  %v4653_v38 = vpack.c.bf16 %v825_v37, %v824_v36  ;;  %v1047_v39 = vld [vmem:[#allocation2 + $0x21] sm:$0xff] }
  0xc8   : > { %v612_v41 = vpop.f32.mrf.mxu0  ;;  %v4660_v44 = vpack.c.bf16 %v1047_v39, %v1046_v43 }
  0xc9   : > { %v692_v42 = vmul.f32 %v4610_v17, %v612_v41  ;;  %4009 = vmatmul.msk.bf16.gmra.mxu1 %vm381_vm1, %v4653_v38 }
  0xca   : > { %4026 = vmatmul.msk.bf16.gmra.mxu2 %vm381_vm1, %v4660_v44 }
  0xcb   : > { %v728_v45 = vadd.f32 %v4619_v18, %v692_v42 }
  0xcd   : > { %v760_v46 = vmax.f32 %v728_v45, 0.0 }
  0xce   : > { %v826_v54 = vld [vmem:[#allocation2 + $0x30] sm:$0xff] }
  0xcf   : > { %793 = vst.msk [vmem:[#allocation2 + $0x39] sm:$0xff] %vm381_vm1, %v760_v46  ;;  %v1048_v61 = vld [vmem:[#allocation2 + $0x31] sm:$0xff] }
  0xd0   : > { %v615_v48 = vpop.f32.mrf.mxu0 }
  0xd1   : > { %v693_v49 = vmul.f32 %v4610_v17, %v615_v48 }
  0xd3   : > { %v729_v50 = vadd.f32 %v4619_v18, %v693_v49  ;;  %4002 = vmatmul.msk.bf16.gmra.mxu0 %vm547_vm0, %v4192_v47 }
  0xd5   : > { %v761_v53 = vmax.f32 %v729_v50, 0.0 }
  0xd6   : > { %v827_v55 = vld [vmem:[#allocation2 + $0x38] sm:$0xff] }
  0xd7   : > { %794 = vst.msk [vmem:[#allocation2 + $0x49] sm:$0xff] %vm381_vm1, %v761_v53  ;;  %v856_v56 = vpack.c.bf16 %v827_v55, %v826_v54  ;;  %v1049_v57 = vld [vmem:[#allocation2 + $0x39] sm:$0xff] }
  0xd8   : > { %v617_v59 = vpop.f32.mrf.mxu0  ;;  %v4680_v62 = vpack.c.bf16 %v1049_v57, %v1048_v61 }
  0xd9   : > { %v694_v60 = vmul.f32 %v4610_v17, %v617_v59  ;;  %4010 = vmatmul.msk.bf16.gmra.mxu1 %vm381_vm1, %v856_v56 }
  0xda   : > { %4027 = vmatmul.msk.bf16.gmra.mxu2 %vm381_vm1, %v4680_v62 }
  0xdb   : > { %v730_v63 = vadd.f32 %v4619_v18, %v694_v60 }
  0xdd   : > { %v762_v0 = vmax.f32 %v730_v63, 0.0 }
  0xde   : > { %v828_v6 = vld [vmem:[#allocation2 + $0x48] sm:$0xff] }
  0xdf   : > { %795 = vst.msk [vmem:[#allocation2 + $0x51] sm:$0xff] %vm381_vm1, %v762_v0  ;;  %v1050_v13 = vld [vmem:[#allocation2 + $0x49] sm:$0xff] }
  0xe0   : > { %v620_v2 = vpop.f32.mrf.mxu0 }
  0xe1   : > { %v695_v3 = vmul.f32 %v4610_v17, %v620_v2 }
  0xe3   : > { %v731_v4 = vadd.f32 %v4619_v18, %v695_v3  ;;  %4003 = vmatmul.msk.bf16.gmra.mxu0 %vm547_vm0, %v4193_v1 }
  0xe5   : > { %v763_v5 = vmax.f32 %v731_v4, 0.0 }
  0xe6   : > { %v829_v7 = vld [vmem:[#allocation2 + $0x50] sm:$0xff] }
  0xe7   : > { %796 = vst.msk [vmem:[#allocation2 + $0x61] sm:$0xff] %vm381_vm1, %v763_v5  ;;  %v857_v8 = vpack.c.bf16 %v829_v7, %v828_v6  ;;  %v1051_v9 = vld [vmem:[#allocation2 + $0x51] sm:$0xff] }
  0xe8   : > { %v622_v11 = vpop.f32.mrf.mxu0  ;;  %v4695_v14 = vpack.c.bf16 %v1051_v9, %v1050_v13  ;;  %v4197_v13 = vld [vmem:[%s4510_s28 + $0x78] sm:$0xff] }
  0xe9   : > { %v696_v12 = vmul.f32 %v4610_v17, %v622_v11  ;;  %4011 = vmatmul.msk.bf16.gmra.mxu1 %vm381_vm1, %v857_v8  ;;  %4007 = vmatmul.msk.bf16.gmra.mxu3 %vm547_vm0, %v4197_v13 }
  0xea   : > { %4028 = vmatmul.msk.bf16.gmra.mxu2 %vm381_vm1, %v4695_v14 }
  0xeb   : > { %v732_v15 = vadd.f32 %v4619_v18, %v696_v12 }
  0xed   : > { %v764_v16 = vmax.f32 %v732_v15, 0.0 }
  0xee   : > { %v830_v23 = vld [vmem:[#allocation2 + $0x60] sm:$0xff] }
  0xef   : > { %797 = vst.msk [vmem:[#allocation2 + $0x69] sm:$0xff] %vm381_vm1, %v764_v16  ;;  %v1052_v29 = vld [vmem:[#allocation2 + $0x61] sm:$0xff] }
  0xf0   : > { %v625_v19 = vpop.f32.mrf.mxu0 }
  0xf1   : > { %v697_v20 = vmul.f32 %v4610_v17, %v625_v19 }
  0xf3   : > { %v733_v21 = vadd.f32 %v4619_v18, %v697_v20  ;;  %4059 = vmatmul.msk.bf16.vlgmr.msrb.gmra.mxu0 %vm381_vm1, %v4653_v38 }
  0xf5   : > { %v765_v22 = vmax.f32 %v733_v21, 0.0 }
  0xf6   : > { %v831_v24 = vld [vmem:[#allocation2 + $0x68] sm:$0xff] }
  0xf7   : > { %798 = vst.msk [vmem:[#allocation2 + $0x79] sm:$0xff] %vm381_vm1, %v765_v22  ;;  %v858_v25 = vpack.c.bf16 %v831_v24, %v830_v23  ;;  %v1053_v26 = vld [vmem:[#allocation2 + $0x69] sm:$0xff] }
  0xf8   : > { %v627_v27 = vpop.f32.mrf.mxu0  ;;  %v4708_v30 = vpack.c.bf16 %v1053_v26, %v1052_v29 }
  0xf9   : > { %v698_v28 = vmul.f32 %v4610_v17, %v627_v27  ;;  %4012 = vmatmul.msk.bf16.gmra.mxu1 %vm381_vm1, %v858_v25  ;;  %v4075_v27 = vld [vmem:[%s6039_s4 + $0x8] sm:$0x3] }
  0xfa   : > { %4029 = vmatmul.msk.bf16.gmra.mxu2 %vm381_vm1, %v4708_v30  ;;  %v2001_v29 = vsel %vm919_vm3, %v4075_v27, 0  ;;  %v4092_v27 = vld [vmem:[%s6039_s4 + $0xa] sm:$0x3] }
  0xfb   : > { %v734_v31 = vadd.f32 %v4619_v18, %v698_v28  ;;  %2010 = vmatpush.bf16.msrb.mxu1 %v2001_v29 }
  0xfd   : > { %v766_v32 = vmax.f32 %v734_v31, 0.0 }
  0xfe   : > { %v832_v37 = vld [vmem:[#allocation2 + $0x78] sm:$0xff] }
  0xff   : > { %799 = vst.msk [vmem:[#allocation2 + $0x81] sm:$0xff] %vm381_vm1, %v766_v32  ;;  %v1054_v43 = vld [vmem:[#allocation2 + $0x79] sm:$0xff] }
 0x100   : > { %v630_v33 = vpop.f32.mrf.mxu0 }
 0x101   : > { %v699_v34 = vmul.f32 %v4610_v17, %v630_v33 }
 0x103   : > { %v735_v35 = vadd.f32 %v4619_v18, %v699_v34  ;;  %4060 = vmatmul.msk.bf16.gmra.mxu0 %vm381_vm1, %v856_v56  ;;  %v932_v56 = vpop.f32.mrf.mxu1 }
 0x104   : > { %1012 = vst.msk [vmem:[#allocation3] sm:$0xff] %vm381_vm1, %v932_v56 }
 0x105   : > { %v767_v36 = vmax.f32 %v735_v35, 0.0 }
 0x106   : > { %v833_v38 = vld [vmem:[#allocation2 + $0x80] sm:$0xff] }
 0x107   : > { %800 = vst.msk [vmem:[#allocation2 + $0x91] sm:$0xff] %vm381_vm1, %v767_v36  ;;  %v859_v39 = vpack.c.bf16 %v833_v38, %v832_v37  ;;  %v1055_v40 = vld [vmem:[#allocation2 + $0x81] sm:$0xff]  ;;  %v1154_v38 = vpop.f32.mrf.mxu2 }
 0x108   : > { %v632_v41 = vpop.f32.mrf.mxu0  ;;  %v4720_v45 = vpack.c.bf16 %v1055_v40, %v1054_v43 }
 0x109   : > { %v700_v42 = vmul.f32 %v4610_v17, %v632_v41  ;;  %4013 = vmatmul.msk.bf16.gmra.mxu1 %vm381_vm1, %v859_v39 }
 0x10a   : > { %4030 = vmatmul.msk.bf16.gmra.mxu2 %vm381_vm1, %v4720_v45 }
 0x10b   : > { %v736_v46 = vadd.f32 %v4619_v18, %v700_v42  ;;  %v934_v3 = vpop.f32.mrf.mxu1  ;;  %v1234_v36 = vld [vmem:[#allocation3] sm:$0xff] }
 0x10c   : > { %1013 = vst.msk [vmem:[#allocation3 + $0x8] sm:$0xff] %vm381_vm1, %v934_v3  ;;  %v1266_v40 = vadd.f32 %v1234_v36, %v1154_v38 }
 0x10d   : > { %v768_v47 = vmax.f32 %v736_v46, 0.0 }
 0x10e   : > { %v834_v52 = vld [vmem:[#allocation2 + $0x90] sm:$0xff]  ;;  %1298 = vst.msk [vmem:[#allocation3] sm:$0xff] %vm381_vm1, %v1266_v40 }
 0x10f   : > { %801 = vst.msk [vmem:[#allocation2 + $0x99] sm:$0xff] %vm381_vm1, %v768_v47  ;;  %v1056_v59 = vld [vmem:[#allocation2 + $0x91] sm:$0xff] }
 0x110   : > { %v635_v48 = vpop.f32.mrf.mxu0 }
 0x111   : > { %v701_v49 = vmul.f32 %v4610_v17, %v635_v48 }
 0x113   : > { %v737_v50 = vadd.f32 %v4619_v18, %v701_v49  ;;  %4061 = vmatmul.msk.bf16.gmra.mxu0 %vm381_vm1, %v857_v8  ;;  %v1235_v48 = vld [vmem:[#allocation3 + $0x8] sm:$0xff] }
 0x115   : > { %v769_v51 = vmax.f32 %v737_v50, 0.0 }
 0x116   : > { %v835_v53 = vld [vmem:[#allocation2 + $0x98] sm:$0xff] }
 0x117   : > { %802 = vst.msk [vmem:[#allocation2 + $0xa9] sm:$0xff] %vm381_vm1, %v769_v51  ;;  %v4730_v54 = vpack.c.bf16 %v835_v53, %v834_v52  ;;  %v1057_v55 = vld [vmem:[#allocation2 + $0x99] sm:$0xff]  ;;  %v1156_v52 = vpop.f32.mrf.mxu2 }
 0x118   : > { %v637_v57 = vpop.f32.mrf.mxu0  ;;  %v4736_v60 = vpack.c.bf16 %v1057_v55, %v1056_v59  ;;  %v1267_v55 = vadd.f32 %v1235_v48, %v1156_v52  ;;  %v665_v59 = vpop.f32.mrf.mxu3 }
 0x119   : > { %v702_v58 = vmul.f32 %v4610_v17, %v637_v57  ;;  %4014 = vmatmul.msk.bf16.gmra.mxu1 %vm381_vm1, %v4730_v54 }
 0x11a   : > { %4031 = vmatmul.msk.bf16.gmra.mxu2 %vm381_vm1, %v4736_v60  ;;  %1299 = vst.msk [vmem:[#allocation3 + $0x8] sm:$0xff] %vm381_vm1, %v1267_v55 }
 0x11b   : > { %v738_v61 = vadd.f32 %v4619_v18, %v702_v58 }
 0x11d   : > { %v770_v63 = vmax.f32 %v738_v61, 0.0 }
 0x11e   : > { %v836_v5 = vld [vmem:[#allocation2 + $0xa8] sm:$0xff] }
 0x11f   : > { %803 = vst.msk [vmem:[#allocation2 + $0xb1] sm:$0xff] %vm381_vm1, %v770_v63  ;;  %v1058_v11 = vld [vmem:[#allocation2 + $0xa9] sm:$0xff] }
 0x120   : > { %v640_v0 = vpop.f32.mrf.mxu0 }
 0x121   : > { %v703_v1 = vmul.f32 %v4610_v17, %v640_v0  ;;  %v713_v0 = vmul.f32 %v4610_v17, %v665_v59 }
 0x123   : > { %v739_v2 = vadd.f32 %v4619_v18, %v703_v1  ;;  %4062 = vmatmul.msk.bf16.gmra.mxu0 %vm381_vm1, %v858_v25 }
 0x125   : > { %v771_v4 = vmax.f32 %v739_v2, 0.0 }
 0x126   : > { %v837_v6 = vld [vmem:[#allocation2 + $0xb0] sm:$0xff] }
 0x127   : > { %804 = vst.msk [vmem:[#allocation2 + $0xc1] sm:$0xff] %vm381_vm1, %v771_v4  ;;  %v4747_v7 = vpack.c.bf16 %v837_v6, %v836_v5  ;;  %v1059_v8 = vld [vmem:[#allocation2 + $0xb1] sm:$0xff]  ;;  %v749_v4 = vadd.f32 %v4619_v18, %v713_v0 }
 0x128   : > { %v642_v9 = vpop.f32.mrf.mxu0  ;;  %v4752_v12 = vpack.c.bf16 %v1059_v8, %v1058_v11 }
 0x129   : > { %v704_v10 = vmul.f32 %v4610_v17, %v642_v9  ;;  %4015 = vmatmul.msk.bf16.gmra.mxu1 %vm381_vm1, %v4747_v7  ;;  %v781_v8 = vmax.f32 %v749_v4, 0.0 }
 0x12a   : > { %4032 = vmatmul.msk.bf16.gmra.mxu2 %vm381_vm1, %v4752_v12 }
 0x12b   : > { %v740_v15 = vadd.f32 %v4619_v18, %v704_v10  ;;  %814 = vst.msk [vmem:[#allocation2 + $0x139] sm:$0xff] %vm381_vm1, %v781_v8  ;;  %v667_v10 = vpop.f32.mrf.mxu3 }
 0x12d   : > { %v772_v16 = vmax.f32 %v740_v15, 0.0 }
 0x12e   : > { %v838_v23 = vld [vmem:[#allocation2 + $0xc0] sm:$0xff] }
 0x12f   : > { %805 = vst.msk [vmem:[#allocation2 + $0xc9] sm:$0xff] %vm381_vm1, %v772_v16  ;;  %v1060_v32 = vld [vmem:[#allocation2 + $0xc1] sm:$0xff]  ;;  %v714_v16 = vmul.f32 %v4610_v17, %v667_v10 }
 0x130   : > { %v645_v19 = vpop.f32.mrf.mxu0 }
 0x131   : > { %v705_v20 = vmul.f32 %v4610_v17, %v645_v19 }
 0x133   : > { %v741_v21 = vadd.f32 %v4619_v18, %v705_v20  ;;  %4063 = vmatmul.msk.bf16.gmra.mxu0 %vm381_vm1, %v859_v39  ;;  %v670_v36 = vpop.f32.mrf.mxu3 }
 0x134   : > { %v715_v38 = vmul.f32 %v4610_v17, %v670_v36 }
 0x135   : > { %v773_v22 = vmax.f32 %v741_v21, 0.0 }
 0x136   : > { %v839_v24 = vld [vmem:[#allocation2 + $0xc8] sm:$0xff] }
 0x137   : > { %806 = vst.msk [vmem:[#allocation2 + $0xd9] sm:$0xff] %vm381_vm1, %v773_v22  ;;  %v4764_v25 = vpack.c.bf16 %v839_v24, %v838_v23  ;;  %v1061_v26 = vld [vmem:[#allocation2 + $0xc9] sm:$0xff]  ;;  %v750_v22 = vadd.f32 %v4619_v18, %v714_v16 }
 0x138   : > { %v647_v28 = vpop.f32.mrf.mxu0  ;;  %v4773_v33 = vpack.c.bf16 %v1061_v26, %v1060_v32  ;;  %v2287_v32 = vsel %vm919_vm3, %v4092_v27, 0 }
 0x139   : > { %v706_v31 = vmul.f32 %v4610_v17, %v647_v28  ;;  %4016 = vmatmul.msk.bf16.gmra.mxu1 %vm381_vm1, %v4764_v25  ;;  %2296 = vmatpush.bf16.msrb.mxu2 %v2287_v32 }
 0x13a   : > { %4033 = vmatmul.msk.bf16.gmra.mxu2 %vm381_vm1, %v4773_v33 }
 0x13b   : > { %v742_v34 = vadd.f32 %v4619_v18, %v706_v31  ;;  %v782_v31 = vmax.f32 %v750_v22, 0.0 }
 0x13d   : > { %v774_v35 = vmax.f32 %v742_v34, 0.0  ;;  %815 = vst.msk [vmem:[#allocation2 + $0x141] sm:$0xff] %vm381_vm1, %v782_v31 }
 0x13e   : > { %v840_v46 = vld [vmem:[#allocation2 + $0xd8] sm:$0xff] }
 0x13f   : > { %807 = vst.msk [vmem:[#allocation2 + $0xe1] sm:$0xff] %vm381_vm1, %v774_v35 }
 0x140   : > { %v650_v37 = vpop.f32.mrf.mxu0 }
 0x141   : > { %v707_v39 = vmul.f32 %v4610_v17, %v650_v37 }
 0x143   : > { %v743_v41 = vadd.f32 %v4619_v18, %v707_v39  ;;  %4064 = vmatmul.msk.bf16.gmra.mxu0 %vm381_vm1, %v4730_v54  ;;  %v1062_v54 = vld [vmem:[#allocation2 + $0xd9] sm:$0xff] }
 0x145   : > { %v775_v42 = vmax.f32 %v743_v41, 0.0  ;;  %v751_v41 = vadd.f32 %v4619_v18, %v715_v38 }
 0x146   : > { %v937_v43 = vpop.f32.mrf.mxu1  ;;  %v841_v47 = vld [vmem:[#allocation2 + $0xe0] sm:$0xff] }
 0x147   : > { %808 = vst.msk [vmem:[#allocation2 + $0xf1] sm:$0xff] %vm381_vm1, %v775_v42  ;;  %v4785_v49 = vpack.c.bf16 %v841_v47, %v840_v46  ;;  %v1063_v50 = vld [vmem:[#allocation2 + $0xe1] sm:$0xff]  ;;  %v783_v47 = vmax.f32 %v751_v41, 0.0 }
 0x148   : > { %1014 = vst.msk [vmem:[#allocation3 + $0x10] sm:$0xff] %vm381_vm1, %v937_v43  ;;  %v652_v51 = vpop.f32.mrf.mxu0  ;;  %v4791_v56 = vpack.c.bf16 %v1063_v50, %v1062_v54 }
 0x149   : > { %v708_v53 = vmul.f32 %v4610_v17, %v652_v51  ;;  %4017 = vmatmul.msk.bf16.gmra.mxu1 %vm381_vm1, %v4785_v49  ;;  %816 = vst.msk [vmem:[#allocation2 + $0x151] sm:$0xff] %vm381_vm1, %v783_v47  ;;  %v672_v51 = vpop.f32.mrf.mxu3 }
 0x14a   : > { %4034 = vmatmul.msk.bf16.gmra.mxu2 %vm381_vm1, %v4791_v56  ;;  %v716_v55 = vmul.f32 %v4610_v17, %v672_v51 }
 0x14b   : > { %v744_v57 = vadd.f32 %v4619_v18, %v708_v53 }
 0x14d   : > { %v776_v58 = vmax.f32 %v744_v57, 0.0  ;;  %v1159_v2 = vpop.f32.mrf.mxu2 }
 0x14e   : > { %v939_v61 = vpop.f32.mrf.mxu1  ;;  %v842_v13 = vld [vmem:[#allocation2 + $0xf0] sm:$0xff] }
 0x14f   : > { %809 = vst.msk [vmem:[#allocation2 + $0xf9] sm:$0xff] %vm381_vm1, %v776_v58  ;;  %v1236_v63 = vld [vmem:[#allocation3 + $0x10] sm:$0xff]  ;;  %v1064_v26 = vld [vmem:[#allocation2 + $0xf1] sm:$0xff] }
 0x150   : > { %1015 = vst.msk [vmem:[#allocation3 + $0x18] sm:$0xff] %vm381_vm1, %v939_v61  ;;  %v655_v1 = vpop.f32.mrf.mxu0  ;;  %v1268_v5 = vadd.f32 %v1236_v63, %v1159_v2  ;;  %v752_v61 = vadd.f32 %v4619_v18, %v716_v55 }
 0x151   : > { %v709_v3 = vmul.f32 %v4610_v17, %v655_v1  ;;  %v675_v8 = vpop.f32.mrf.mxu3 }
 0x152   : > { %1300 = vst.msk [vmem:[#allocation3 + $0x10] sm:$0xff] %vm381_vm1, %v1268_v5  ;;  %v784_v4 = vmax.f32 %v752_v61, 0.0  ;;  %v717_v10 = vmul.f32 %v4610_v17, %v675_v8  ;;  %v2193_v8 = vld [vmem:[#allocation2 + $0x52] sm:$0xff] }
 0x153   : > { %v745_v6 = vadd.f32 %v4619_v18, %v709_v3  ;;  %4065 = vmatmul.msk.bf16.gmra.mxu0 %vm381_vm1, %v4747_v7 }
 0x154   : > { %817 = vst.msk [vmem:[#allocation2 + $0x159] sm:$0xff] %vm381_vm1, %v784_v4 }
 0x155   : > { %v777_v9 = vmax.f32 %v745_v6, 0.0  ;;  %v1161_v23 = vpop.f32.mrf.mxu2 }
 0x156   : > { %v942_v11 = vpop.f32.mrf.mxu1  ;;  %v843_v15 = vld [vmem:[#allocation2 + $0xf8] sm:$0xff] }
 0x157   : > { %810 = vst.msk [vmem:[#allocation2 + $0x109] sm:$0xff] %vm381_vm1, %v777_v9  ;;  %v1237_v19 = vld [vmem:[#allocation3 + $0x18] sm:$0xff]  ;;  %v4809_v20 = vpack.c.bf16 %v843_v15, %v842_v13  ;;  %v1065_v21 = vld [vmem:[#allocation2 + $0xf9] sm:$0xff]  ;;  %v753_v15 = vadd.f32 %v4619_v18, %v717_v10 }
 0x158   : > { %1016 = vst.msk [vmem:[#allocation3 + $0x20] sm:$0xff] %vm381_vm1, %v942_v11  ;;  %v657_v7 = vpop.f32.mrf.mxu0  ;;  %v1269_v28 = vadd.f32 %v1237_v19, %v1161_v23  ;;  %v4819_v29 = vpack.c.bf16 %v1065_v21, %v1064_v26 }
 0x159   : > { %v710_v24 = vmul.f32 %v4610_v17, %v657_v7  ;;  %4018 = vmatmul.msk.bf16.gmra.mxu1 %vm381_vm1, %v4809_v20  ;;  %v785_v21 = vmax.f32 %v753_v15, 0.0  ;;  %v677_v7 = vpop.f32.mrf.mxu3 }
 0x15a   : > { %1301 = vst.msk [vmem:[#allocation3 + $0x18] sm:$0xff] %vm381_vm1, %v1269_v28  ;;  %4035 = vmatmul.msk.bf16.gmra.mxu2 %vm381_vm1, %v4819_v29  ;;  %v718_v26 = vmul.f32 %v4610_v17, %v677_v7 }
 0x15b   : > { %v746_v34 = vadd.f32 %v4619_v18, %v710_v24  ;;  %818 = vst.msk [vmem:[#allocation2 + $0x169] sm:$0xff] %vm381_vm1, %v785_v21 }
 0x15c   : > { %v754_v32 = vadd.f32 %v4619_v18, %v718_v26 }
 0x15d   : > { %v778_v35 = vmax.f32 %v746_v34, 0.0  ;;  %v1164_v42 = vpop.f32.mrf.mxu2  ;;  %v2188_v34 = vld [vmem:[#allocation2 + $0x1a] sm:$0xff] }
 0x15e   : > { %v944_v37 = vpop.f32.mrf.mxu1  ;;  %v844_v53 = vld [vmem:[#allocation2 + $0x108] sm:$0xff] }
 0x15f   : > { %811 = vst.msk [vmem:[#allocation2 + $0x111] sm:$0xff] %vm381_vm1, %v778_v35  ;;  %v1238_v39 = vld [vmem:[#allocation3 + $0x20] sm:$0xff]  ;;  %v2189_v35 = vld [vmem:[#allocation2 + $0x22] sm:$0xff] }
 0x160   : > { %1017 = vst.msk [vmem:[#allocation3 + $0x28] sm:$0xff] %vm381_vm1, %v944_v37  ;;  %v660_v40 = vpop.f32.mrf.mxu0  ;;  %v1270_v46 = vadd.f32 %v1238_v39, %v1164_v42  ;;  %v1066_v1 = vld [vmem:[#allocation2 + $0x109] sm:$0xff]  ;;  %v786_v37 = vmax.f32 %v754_v32, 0.0  ;;  %v4875_v38 = vpack.c.bf16 %v2189_v35, %v2188_v34 }
 0x161   : > { %v711_v43 = vmul.f32 %v4610_v17, %v660_v40  ;;  %v2195_v34 = vld [vmem:[#allocation2 + $0x6a] sm:$0xff] }
 0x162   : > { %1302 = vst.msk [vmem:[#allocation3 + $0x20] sm:$0xff] %vm381_vm1, %v1270_v46  ;;  %v849_v46 = vld [vmem:[#allocation2 + $0x140] sm:$0xff] }
 0x163   : > { %v747_v48 = vadd.f32 %v4619_v18, %v711_v43  ;;  %4066 = vmatmul.msk.bf16.gmra.mxu0 %vm381_vm1, %v4764_v25  ;;  %819 = vst.msk [vmem:[#allocation2 + $0x171] sm:$0xff] %vm381_vm1, %v786_v37  ;;  %v848_v43 = vld [vmem:[#allocation2 + $0x138] sm:$0xff] }
 0x165   : > { %v779_v50 = vmax.f32 %v747_v48, 0.0  ;;  %v1166_v63 = vpop.f32.mrf.mxu2 }
 0x166   : > { %v947_v52 = vpop.f32.mrf.mxu1  ;;  %v845_v54 = vld [vmem:[#allocation2 + $0x110] sm:$0xff] }
 0x167   : > { %812 = vst.msk [vmem:[#allocation2 + $0x121] sm:$0xff] %vm381_vm1, %v779_v50  ;;  %v1239_v57 = vld [vmem:[#allocation3 + $0x28] sm:$0xff]  ;;  %v4839_v58 = vpack.c.bf16 %v845_v54, %v844_v53  ;;  %v4887_v50 = vpack.c.bf16 %v849_v46, %v848_v43 }
 0x168   : > { %v1067_v59 = vld [vmem:[#allocation2 + $0x111] sm:$0xff]  ;;  %1018 = vst.msk [vmem:[#allocation3 + $0x30] sm:$0xff] %vm381_vm1, %v947_v52  ;;  %v662_v25 = vpop.f32.mrf.mxu0  ;;  %v1271_v2 = vadd.f32 %v1239_v57, %v1166_v63  ;;  %v2191_v53 = vld [vmem:[#allocation2 + $0x3a] sm:$0xff] }
 0x169   : > { %v712_v0 = vmul.f32 %v4610_v17, %v662_v25  ;;  %4019 = vmatmul.msk.bf16.gmra.mxu1 %vm381_vm1, %v4839_v58  ;;  %v4846_v3 = vpack.c.bf16 %v1067_v59, %v1066_v1 }
 0x16a   : > { %1303 = vst.msk [vmem:[#allocation3 + $0x28] sm:$0xff] %vm381_vm1, %v1271_v2 }
 0x16b   : > { %v748_v5 = vadd.f32 %v4619_v18, %v712_v0  ;;  %4036 = vmatmul.msk.bf16.gmra.mxu2 %vm381_vm1, %v4846_v3  ;;  %v851_v0 = vld [vmem:[#allocation2 + $0x158] sm:$0xff] }
 0x16d   : > { %v780_v6 = vmax.f32 %v748_v5, 0.0  ;;  %v1169_v16 = vpop.f32.mrf.mxu2 }
 0x16e   : > { %v949_v9 = vpop.f32.mrf.mxu1  ;;  %v846_v23 = vld [vmem:[#allocation2 + $0x120] sm:$0xff] }
 0x16f   : > { %813 = vst.msk [vmem:[#allocation2 + $0x129] sm:$0xff] %vm381_vm1, %v780_v6  ;;  %v1240_v11 = vld [vmem:[#allocation3 + $0x30] sm:$0xff] }
 0x170   : > { %1019 = vst.msk [vmem:[#allocation3 + $0x38] sm:$0xff] %vm381_vm1, %v949_v9  ;;  %v4856_v13 = vpop.f32.mrf.mxu0  ;;  %v1272_v19 = vadd.f32 %v1240_v11, %v1169_v16  ;;  %v4041_v11 = vld [vmem:[%s6039_s4 + $0x4] sm:$0x3] }
 0x171   : > { %v1429_v15 = vsel %vm919_vm3, %v4041_v11, 0 }
 0x172   : > { %1304 = vst.msk [vmem:[#allocation3 + $0x30] sm:$0xff] %vm381_vm1, %v1272_v19 }
 0x173   : > { %4067 = vmatmul.msk.bf16.gmra.mxu0 %vm381_vm1, %v4785_v49 }
 0x175   : > { %v1171_v49 = vpop.f32.mrf.mxu2 }
 0x176   : > { %v952_v22 = vpop.f32.mrf.mxu1  ;;  %v847_v24 = vld [vmem:[#allocation2 + $0x128] sm:$0xff] }
 0x177   : > { %v1241_v27 = vld [vmem:[#allocation3 + $0x38] sm:$0xff]  ;;  %1020 = vst.msk [vmem:[#allocation3 + $0x40] sm:$0xff] %vm381_vm1, %v952_v22  ;;  %v4865_v28 = vpack.c.bf16 %v847_v24, %v846_v23  ;;  %v853_v23 = vld [vmem:[#allocation2 + $0x170] sm:$0xff] }
 0x178   : > { %v4867_v31 = vpop.f32.mrf.mxu0  ;;  %v1273_v36 = vadd.f32 %v1241_v27, %v1171_v49  ;;  %v852_v22 = vld [vmem:[#allocation2 + $0x168] sm:$0xff] }
 0x179   : > { %4020 = vmatmul.msk.bf16.vlgmr.msrb.gmra.mxu3 %vm381_vm1, %v4865_v28  ;;  %4076 = vmatmul.msk.bf16.vlgmr.msrb.gmra.mxu1 %vm381_vm1, %v4660_v44  ;;  %v4931_v27 = vpack.c.bf16 %v853_v23, %v852_v22 }
 0x17a   : > { %1305 = vst.msk [vmem:[#allocation3 + $0x38] sm:$0xff] %vm381_vm1, %v1273_v36  ;;  %1438 = vmatpush.bf16.msrb.mxu3 %v1429_v15 }
 0x17b   : > { %4093 = vmatmul.msk.bf16.vlgmr.msrb.gmra.mxu2 %vm381_vm1, %v4875_v38 }
 0x17d   : > { %v1174_v44 = vpop.f32.mrf.mxu2 }
 0x17e   : > { %v954_v39 = vpop.f32.mrf.mxu1  ;;  %v1242_v40 = vld [vmem:[#allocation3 + $0x40] sm:$0xff] }
 0x17f   : > { %1021 = vst.msk [vmem:[#allocation3 + $0x48] sm:$0xff] %vm381_vm1, %v954_v39  ;;  %v1274_v42 = vadd.f32 %v1242_v40, %v1174_v44  ;;  %v680_v40 = vpop.f32.mrf.mxu3 }
 0x180   : > { %v4881_v41 = vpop.f32.mrf.mxu0  ;;  %v719_v44 = vmul.f32 %v4610_v17, %v680_v40 }
 0x181   : > { %1306 = vst.msk [vmem:[#allocation3 + $0x40] sm:$0xff] %vm381_vm1, %v1274_v42 }
 0x182   : > { %v755_v46 = vadd.f32 %v4619_v18, %v719_v44 }
 0x183   : > { %4068 = vmatmul.msk.bf16.gmra.mxu0 %vm381_vm1, %v4809_v20  ;;  %v2190_v20 = vld [vmem:[#allocation2 + $0x32] sm:$0xff] }
 0x184   : > { %v4896_v55 = vpack.c.bf16 %v2191_v53, %v2190_v20  ;;  %v1068_v20 = vld [vmem:[#allocation2 + $0x121] sm:$0xff] }
 0x185   : > { %v1176_v52 = vpop.f32.mrf.mxu2 }
 0x186   : > { %v957_v47 = vpop.f32.mrf.mxu1  ;;  %v1243_v48 = vld [vmem:[#allocation3 + $0x48] sm:$0xff] }
 0x187   : > { %1022 = vst.msk [vmem:[#allocation3 + $0x50] sm:$0xff] %vm381_vm1, %v957_v47  ;;  %v1275_v54 = vadd.f32 %v1243_v48, %v1176_v52  ;;  %v1069_v47 = vld [vmem:[#allocation2 + $0x129] sm:$0xff]  ;;  %v787_v48 = vmax.f32 %v755_v46, 0.0 }
 0x188   : > { %v4889_v51 = vpop.f32.mrf.mxu0  ;;  %v2200_v46 = vld [vmem:[#allocation2 + $0xaa] sm:$0xff] }
 0x189   : > { %4021 = vmatmul.msk.bf16.gmra.mxu3 %vm381_vm1, %v4887_v50  ;;  %4077 = vmatmul.msk.bf16.gmra.mxu1 %vm381_vm1, %v4680_v62  ;;  %1307 = vst.msk [vmem:[#allocation3 + $0x48] sm:$0xff] %vm381_vm1, %v1275_v54  ;;  %v850_v62 = vld [vmem:[#allocation2 + $0x150] sm:$0xff]  ;;  %v4954_v54 = vpack.c.bf16 %v1069_v47, %v1068_v20 }
 0x18a   : > { %v4907_v4 = vpack.c.bf16 %v851_v0, %v850_v62  ;;  %820 = vst.msk [vmem:[#allocation2 + $0x181] sm:$0xff] %vm381_vm1, %v787_v48  ;;  %v2201_v47 = vld [vmem:[#allocation2 + $0xb2] sm:$0xff] }
 0x18b   : > { %4094 = vmatmul.msk.bf16.gmra.mxu2 %vm381_vm1, %v4896_v55 }
 0x18d   : > { %v1179_v61 = vpop.f32.mrf.mxu2 }
 0x18e   : > { %v959_v57 = vpop.f32.mrf.mxu1  ;;  %v1244_v59 = vld [vmem:[#allocation3 + $0x50] sm:$0xff] }
 0x18f   : > { %1023 = vst.msk [vmem:[#allocation3 + $0x58] sm:$0xff] %vm381_vm1, %v959_v57  ;;  %v1276_v63 = vadd.f32 %v1244_v59, %v1179_v61  ;;  %v682_v57 = vpop.f32.mrf.mxu3 }
 0x190   : > { %v4901_v25 = vpop.f32.mrf.mxu0  ;;  %v720_v59 = vmul.f32 %v4610_v17, %v682_v57 }
 0x191   : > { %1308 = vst.msk [vmem:[#allocation3 + $0x50] sm:$0xff] %vm381_vm1, %v1276_v63  ;;  %v2197_v63 = vld [vmem:[#allocation2 + $0x82] sm:$0xff] }
 0x192   : > { %v756_v0 = vadd.f32 %v4619_v18, %v720_v59  ;;  %v1070_v18 = vld [vmem:[#allocation2 + $0x139] sm:$0xff]  ;;  %v4109_v59 = vld [vmem:[%s6039_s4 + $0xc] sm:$0x3] }
 0x193   : > { %4069 = vmatmul.msk.bf16.gmra.mxu0 %vm381_vm1, %v4839_v58  ;;  %v2192_v58 = vld [vmem:[#allocation2 + $0x4a] sm:$0xff]  ;;  %v1646_v20 = vld [vmem:[#allocation2 + $0x180] sm:$0xff] }
 0x194   : > { %v4916_v10 = vpack.c.bf16 %v2193_v8, %v2192_v58 }
 0x195   : > { %v1181_v6 = vpop.f32.mrf.mxu2 }
 0x196   : > { %v962_v1 = vpop.f32.mrf.mxu1  ;;  %v1245_v2 = vld [vmem:[#allocation3 + $0x58] sm:$0xff] }
 0x197   : > { %1024 = vst.msk [vmem:[#allocation3 + $0x60] sm:$0xff] %vm381_vm1, %v962_v1  ;;  %v1277_v9 = vadd.f32 %v1245_v2, %v1181_v6  ;;  %v788_v6 = vmax.f32 %v756_v0, 0.0 }
 0x198   : > { %v4909_v5 = vpop.f32.mrf.mxu0 }
 0x199   : > { %4022 = vmatmul.msk.bf16.gmra.mxu3 %vm381_vm1, %v4907_v4  ;;  %4078 = vmatmul.msk.bf16.gmra.mxu1 %vm381_vm1, %v4695_v14  ;;  %1309 = vst.msk [vmem:[#allocation3 + $0x58] sm:$0xff] %vm381_vm1, %v1277_v9  ;;  %v1071_v9 = vld [vmem:[#allocation2 + $0x141] sm:$0xff] }
 0x19a   : > { %821 = vst.msk [vmem:[#allocation2 + $0x189] sm:$0xff] %vm381_vm1, %v788_v6  ;;  %v1074_v6 = vld [vmem:[#allocation2 + $0x169] sm:$0xff] }
 0x19b   : > { %4095 = vmatmul.msk.bf16.gmra.mxu2 %vm381_vm1, %v4916_v10 }
 0x19d   : > { %v1184_v21 = vpop.f32.mrf.mxu2 }
 0x19e   : > { %v964_v16 = vpop.f32.mrf.mxu1  ;;  %v1246_v19 = vld [vmem:[#allocation3 + $0x60] sm:$0xff] }
 0x19f   : > { %1025 = vst.msk [vmem:[#allocation3 + $0x68] sm:$0xff] %vm381_vm1, %v964_v16  ;;  %v1278_v7 = vadd.f32 %v1246_v19, %v1184_v21  ;;  %v4977_v19 = vpack.c.bf16 %v1071_v9, %v1070_v18  ;;  %v2202_v9 = vld [vmem:[#allocation2 + $0xc2] sm:$0xff] }
 0x1a0   : > { %v4925_v14 = vpop.f32.mrf.mxu0 }
 0x1a1   : > { %1310 = vst.msk [vmem:[#allocation3 + $0x60] sm:$0xff] %vm381_vm1, %v1278_v7  ;;  %v2199_v7 = vld [vmem:[#allocation2 + $0x9a] sm:$0xff] }
 0x1a3   : > { %4070 = vmatmul.msk.bf16.gmra.mxu0 %vm381_vm1, %v4865_v28  ;;  %v2194_v28 = vld [vmem:[#allocation2 + $0x62] sm:$0xff] }
 0x1a4   : > { %v4940_v36 = vpack.c.bf16 %v2195_v34, %v2194_v28 }
 0x1a5   : > { %v1186_v49 = vpop.f32.mrf.mxu2 }
 0x1a6   : > { %v967_v24 = vpop.f32.mrf.mxu1  ;;  %v1247_v26 = vld [vmem:[#allocation3 + $0x68] sm:$0xff] }
 0x1a7   : > { %1026 = vst.msk [vmem:[#allocation3 + $0x70] sm:$0xff] %vm381_vm1, %v967_v24  ;;  %v1279_v35 = vadd.f32 %v1247_v26, %v1186_v49 }
 0x1a8   : > { %v4933_v32 = vpop.f32.mrf.mxu0 }
 0x1a9   : > { %4023 = vmatmul.msk.bf16.gmra.mxu3 %vm381_vm1, %v4931_v27  ;;  %4079 = vmatmul.msk.bf16.gmra.mxu1 %vm381_vm1, %v4708_v30  ;;  %1311 = vst.msk [vmem:[#allocation3 + $0x68] sm:$0xff] %vm381_vm1, %v1279_v35  ;;  %v1072_v35 = vld [vmem:[#allocation2 + $0x151] sm:$0xff] }
 0x1ab   : > { %4096 = vmatmul.msk.bf16.gmra.mxu2 %vm381_vm1, %v4940_v36 }
 0x1ad   : > { %v1189_v42 = vpop.f32.mrf.mxu2 }
 0x1ae   : > { %v969_v37 = vpop.f32.mrf.mxu1  ;;  %v1248_v39 = vld [vmem:[#allocation3 + $0x70] sm:$0xff] }
 0x1af   : > { %1027 = vst.msk [vmem:[#allocation3 + $0x78] sm:$0xff] %vm381_vm1, %v969_v37  ;;  %v1280_v30 = vadd.f32 %v1248_v39, %v1189_v42  ;;  %v1073_v37 = vld [vmem:[#allocation2 + $0x159] sm:$0xff] }
 0x1b0   : > { %v4946_v43 = vpop.f32.mrf.mxu0  ;;  %v4999_v42 = vpack.c.bf16 %v1073_v37, %v1072_v35  ;;  %v1331_v35 = vld [vmem:[#allocation2 + $0xa] sm:$0xff] }
 0x1b1   : > { %1312 = vst.msk [vmem:[#allocation3 + $0x70] sm:$0xff] %vm381_vm1, %v1280_v30  ;;  %v4143_v37 = vld [vmem:[%s6039_s4 + $0x10] sm:$0x3] }
 0x1b3   : > { %4071 = vmatmul.msk.bf16.gmra.mxu0 %vm381_vm1, %v4887_v50  ;;  %v2196_v50 = vld [vmem:[#allocation2 + $0x7a] sm:$0xff] }
 0x1b4   : > { %v4965_v2 = vpack.c.bf16 %v2197_v63, %v2196_v50  ;;  %v2574_v50 = vsel %vm919_vm3, %v4109_v59, 0 }
 0x1b5   : > { %v1191_v61 = vpop.f32.mrf.mxu2 }
 0x1b6   : > { %v972_v52 = vpop.f32.mrf.mxu1  ;;  %v1249_v53 = vld [vmem:[#allocation3 + $0x78] sm:$0xff] }
 0x1b7   : > { %1028 = vst.msk [vmem:[#allocation3 + $0x80] sm:$0xff] %vm381_vm1, %v972_v52  ;;  %v1281_v62 = vadd.f32 %v1249_v53, %v1191_v61  ;;  %v5008_v52 = vpack.c.bf16 %v2201_v47, %v2200_v46  ;;  %v1647_v53 = vld [vmem:[#allocation2 + $0x188] sm:$0xff] }
 0x1b8   : > { %v4962_v1 = vpop.f32.mrf.mxu0 }
 0x1b9   : > { %4037 = vmatmul.msk.bf16.vlgmr.msra.gmra.mxu3 %vm381_vm1, %v4954_v54  ;;  %4080 = vmatmul.msk.bf16.gmra.mxu1 %vm381_vm1, %v4720_v45  ;;  %1313 = vst.msk [vmem:[#allocation3 + $0x78] sm:$0xff] %vm381_vm1, %v1281_v62 }
 0x1ba   : > { %2583 = vmatpush.bf16.msra.mxu3 %v2574_v50  ;;  %v2763_v50 = vld [vmem:[#allocation2 + $0x49] sm:$0xff] }
 0x1bb   : > { %4097 = vmatmul.msk.bf16.gmra.mxu2 %vm381_vm1, %v4965_v2 }
 0x1bd   : > { %v1194_v45 = vpop.f32.mrf.mxu2 }
 0x1be   : > { %v974_v17 = vpop.f32.mrf.mxu1  ;;  %v1250_v58 = vld [vmem:[#allocation3 + $0x80] sm:$0xff] }
 0x1bf   : > { %1029 = vst.msk [vmem:[#allocation3 + $0x88] sm:$0xff] %vm381_vm1, %v974_v17  ;;  %v1282_v8 = vadd.f32 %v1250_v58, %v1194_v45  ;;  %v1075_v17 = vld [vmem:[#allocation2 + $0x171] sm:$0xff] }
 0x1c0   : > { %v4974_v11 = vpop.f32.mrf.mxu0 }
 0x1c1   : > { %1314 = vst.msk [vmem:[#allocation3 + $0x80] sm:$0xff] %vm381_vm1, %v1282_v8  ;;  %v5022_v8 = vpack.c.bf16 %v1075_v17, %v1074_v6  ;;  %v2206_v17 = vld [vmem:[#allocation2 + $0xf2] sm:$0xff] }
 0x1c3   : > { %4072 = vmatmul.msk.bf16.gmra.mxu0 %vm381_vm1, %v4907_v4  ;;  %v2198_v4 = vld [vmem:[#allocation2 + $0x92] sm:$0xff] }
 0x1c4   : > { %v4984_v23 = vpack.c.bf16 %v2199_v7, %v2198_v4 }
 0x1c5   : > { %v1196_v21 = vpop.f32.mrf.mxu2 }
 0x1c6   : > { %v977_v15 = vpop.f32.mrf.mxu1  ;;  %v1251_v16 = vld [vmem:[#allocation3 + $0x88] sm:$0xff] }
 0x1c7   : > { %1030 = vst.msk [vmem:[#allocation3 + $0x90] sm:$0xff] %vm381_vm1, %v977_v15  ;;  %v1283_v22 = vadd.f32 %v1251_v16, %v1196_v21  ;;  %v2203_v15 = vld [vmem:[#allocation2 + $0xca] sm:$0xff] }
 0x1c8   : > { %v4988_v26 = vpop.f32.mrf.mxu0  ;;  %v5029_v21 = vpack.c.bf16 %v2203_v15, %v2202_v9 }
 0x1c9   : > { %4038 = vmatmul.msk.bf16.gmra.mxu3 %vm381_vm1, %v4977_v19  ;;  %4081 = vmatmul.msk.bf16.gmra.mxu1 %vm381_vm1, %v4736_v60  ;;  %1315 = vst.msk [vmem:[#allocation3 + $0x88] sm:$0xff] %vm381_vm1, %v1283_v22  ;;  %v4126_v60 = vld [vmem:[%s6039_s4 + $0xe] sm:$0x3]  ;;  %v2762_v22 = vld [vmem:[#allocation2 + $0x39] sm:$0xff] }
 0x1ca   : > { %v2860_v39 = vsel %vm919_vm3, %v4126_v60, 0  ;;  %v1330_v60 = vld [vmem:[#allocation2 + $0x2] sm:$0xff] }
 0x1cb   : > { %4098 = vmatmul.msk.bf16.gmra.mxu2 %vm381_vm1, %v4984_v23  ;;  %2869 = vmatpush.bf16.msra.mxu0 %v2860_v39  ;;  %v3146_v39 = vsel %vm919_vm3, %v4143_v37, 0 }
 0x1cc   : > { %3155 = vmatpush.bf16.msra.mxu1 %v3146_v39  ;;  %v2767_v39 = vld [vmem:[#allocation2 + $0x79] sm:$0xff] }
 0x1cd   : > { %v1199_v28 = vpop.f32.mrf.mxu2 }
 0x1ce   : > { %v979_v24 = vpop.f32.mrf.mxu1  ;;  %v1252_v49 = vld [vmem:[#allocation3 + $0x90] sm:$0xff] }
 0x1cf   : > { %1031 = vst.msk [vmem:[#allocation3 + $0x98] sm:$0xff] %vm381_vm1, %v979_v24  ;;  %v1284_v34 = vadd.f32 %v1252_v49, %v1199_v28  ;;  %v2761_v49 = vld [vmem:[#allocation2 + $0x31] sm:$0xff] }
 0x1d0   : > { %v5001_v30 = vpop.f32.mrf.mxu0 }
 0x1d1   : > { %1316 = vst.msk [vmem:[#allocation3 + $0x90] sm:$0xff] %vm381_vm1, %v1284_v34 }
 0x1d3   : > { %4073 = vmatmul.msk.bf16.gmra.mxu0 %vm381_vm1, %v4931_v27 }
 0x1d5   : > { %v1201_v27 = vpop.f32.mrf.mxu2 }
 0x1d6   : > { %v982_v40 = vpop.f32.mrf.mxu1  ;;  %v1253_v44 = vld [vmem:[#allocation3 + $0x98] sm:$0xff] }
 0x1d7   : > { %1032 = vst.msk [vmem:[#allocation3 + $0xa0] sm:$0xff] %vm381_vm1, %v982_v40  ;;  %v1285_v48 = vadd.f32 %v1253_v44, %v1201_v27  ;;  %v1362_v40 = vpack.c.bf16 %v1331_v35, %v1330_v60  ;;  %v2768_v35 = vld [vmem:[#allocation2 + $0x81] sm:$0xff] }
 0x1d8   : > { %v5017_v0 = vpop.f32.mrf.mxu0 }
 0x1d9   : > { %4039 = vmatmul.msk.bf16.gmra.mxu3 %vm381_vm1, %v4999_v42  ;;  %4082 = vmatmul.msk.bf16.gmra.mxu1 %vm381_vm1, %v4752_v12  ;;  %1317 = vst.msk [vmem:[#allocation3 + $0x98] sm:$0xff] %vm381_vm1, %v1285_v48  ;;  %v1663_v12 = vpack.c.bf16 %v1647_v53, %v1646_v20  ;;  %v2204_v48 = vld [vmem:[#allocation2 + $0xda] sm:$0xff]  ;;  %v2205_v20 = vld [vmem:[#allocation2 + $0xe2] sm:$0xff] }
 0x1da   : > { %6060 = vst [vmem:[#allocation14_spill] sm:$0xff] %v5017_v0 }
 0x1db   : > { %4099 = vmatmul.msk.bf16.gmra.mxu2 %vm381_vm1, %v5008_v52 }
 0x1dd   : > { %v1204_v63 = vpop.f32.mrf.mxu2 }
 0x1de   : > { %v984_v57 = vpop.f32.mrf.mxu1  ;;  %v1254_v61 = vld [vmem:[#allocation3 + $0xa0] sm:$0xff] }
 0x1df   : > { %1033 = vst.msk [vmem:[#allocation3 + $0xa8] sm:$0xff] %vm381_vm1, %v984_v57  ;;  %v1286_v62 = vadd.f32 %v1254_v61, %v1204_v63  ;;  %v5050_v57 = vpack.c.bf16 %v2205_v20, %v2204_v48  ;;  %v2210_v20 = vld [vmem:[#allocation2 + $0x122] sm:$0xff] }
 0x1e0   : > { %v5031_v4 = vpop.f32.mrf.mxu0 }
 0x1e1   : > { %1318 = vst.msk [vmem:[#allocation3 + $0xa0] sm:$0xff] %vm381_vm1, %v1286_v62 }
 0x1e2   : > { %6061 = vst [vmem:[#allocation15_spill] sm:$0xff] %v5031_v4 }
 0x1e3   : > { %4074 = vmatmul.msk.bf16.gmra.mxu0 %vm381_vm1, %v1663_v12  ;;  %v2764_v12 = vld [vmem:[#allocation2 + $0x51] sm:$0xff] }
 0x1e5   : > { %v1206_v18 = vpop.f32.mrf.mxu2 }
 0x1e6   : > { %v987_v58 = vpop.f32.mrf.mxu1  ;;  %v1255_v45 = vld [vmem:[#allocation3 + $0xa8] sm:$0xff] }
 0x1e7   : > { %1034 = vst.msk [vmem:[#allocation3 + $0xb0] sm:$0xff] %vm381_vm1, %v987_v58  ;;  %v1287_v16 = vadd.f32 %v1255_v45, %v1206_v18  ;;  %v2207_v58 = vld [vmem:[#allocation2 + $0xfa] sm:$0xff] }
 0x1e8   : > { %v5044_v27 = vpop.f32.mrf.mxu0  ;;  %v5069_v18 = vpack.c.bf16 %v2207_v58, %v2206_v17 }
 0x1e9   : > { %4040 = vmatmul.msk.bf16.gmra.mxu3 %vm381_vm1, %v5022_v8  ;;  %4083 = vmatmul.msk.bf16.gmra.mxu1 %vm381_vm1, %v4773_v33  ;;  %1319 = vst.msk [vmem:[#allocation3 + $0xa8] sm:$0xff] %vm381_vm1, %v1287_v16  ;;  %v2793_v33 = vpack.c.bf16 %v2762_v22, %v2761_v49  ;;  %v2766_v16 = vld [vmem:[#allocation2 + $0x69] sm:$0xff] }
 0x1ea   : > { %6062 = vst [vmem:[#allocation16_spill] sm:$0xff] %v5044_v27  ;;  %v2208_v49 = vld [vmem:[#allocation2 + $0x10a] sm:$0xff] }
 0x1eb   : > { %4100 = vmatmul.msk.bf16.gmra.mxu2 %vm381_vm1, %v5029_v21 }
 0x1ee   : > { %v989_v7 = vpop.f32.mrf.mxu1  ;;  %v1256_v24 = vld [vmem:[#allocation3 + $0xb0] sm:$0xff]  ;;  %v1209_v28 = vpop.f32.mrf.mxu2 }
 0x1ef   : > { %1035 = vst.msk [vmem:[#allocation3 + $0xb8] sm:$0xff] %vm381_vm1, %v989_v7  ;;  %v1288_v34 = vadd.f32 %v1256_v24, %v1209_v28  ;;  %v2765_v7 = vld [vmem:[#allocation2 + $0x61] sm:$0xff]  ;;  %v2209_v28 = vld [vmem:[#allocation2 + $0x112] sm:$0xff] }
 0x1f0   : > { %v5057_v63 = vpop.f32.mrf.mxu0 }
 0x1f1   : > { %1320 = vst.msk [vmem:[#allocation3 + $0xb0] sm:$0xff] %vm381_vm1, %v1288_v34 }
 0x1f2   : > { %6063 = vst [vmem:[#allocation17_spill] sm:$0xff] %v5057_v63  ;;  %v1933_v63 = vld [vmem:[#allocation2 + $0x189] sm:$0xff] }
 0x1f3   : > { %4127 = vmatmul.msk.bf16.vlgmr.msra.gmra.mxu0 %vm381_vm1, %v2793_v33  ;;  %v5086_v33 = vpack.c.bf16 %v2209_v28, %v2208_v49 }
 0x1f6   : > { %v5042_v44 = vpop.f32.mrf.mxu1  ;;  %v1257_v46 = vld [vmem:[#allocation3 + $0xb8] sm:$0xff]  ;;  %v1211_v47 = vpop.f32.mrf.mxu2 }
 0x1f7   : > { %v1289_v53 = vadd.f32 %v1257_v46, %v1211_v47 }
 0x1f8   : > { %v5067_v45 = vpop.f32.mrf.mxu0 }
 0x1f9   : > { %4042 = vmatmul.msk.bf16.vlgmr.msrb.gmra.mxu3 %vm381_vm1, %v1362_v40  ;;  %4084 = vmatmul.msk.bf16.gmra.mxu1 %vm381_vm1, %v4791_v56  ;;  %1321 = vst.msk [vmem:[#allocation3 + $0xb8] sm:$0xff] %vm381_vm1, %v1289_v53  ;;  %v2794_v56 = vpack.c.bf16 %v2764_v12, %v2763_v50  ;;  %v2796_v40 = vpack.c.bf16 %v2768_v35, %v2767_v39  ;;  %v2211_v53 = vld [vmem:[#allocation2 + $0x12a] sm:$0xff] }
 0x1fa   : > { %6064 = vst [vmem:[#allocation18_spill] sm:$0xff] %v5067_v45 }
 0x1fb   : > { %4101 = vmatmul.msk.bf16.gmra.mxu2 %vm381_vm1, %v5050_v57 }
 0x1fc   : > { %v992_v59 = vpop.f32.mrf.mxu3 }
 0x1fd   : > { %1036 = vst.msk [vmem:[#allocation3 + $0xc0] sm:$0xff] %vm381_vm1, %v992_v59  ;;  %v5107_v59 = vpack.c.bf16 %v2211_v53, %v2210_v20  ;;  %v2771_v20 = vld [vmem:[#allocation2 + $0xa9] sm:$0xff] }
 0x1fe   : > { %v5055_v61 = vpop.f32.mrf.mxu1  ;;  %v5099_v47 = vpop.f32.mrf.mxu2 }
 0x200   : > { %v5077_v22 = vpop.f32.mrf.mxu0 }
 0x201   : > { %6065 = vst [vmem:[#allocation19_spill] sm:$0xff] %v5077_v22 }
 0x203   : > { %4128 = vmatmul.msk.bf16.gmra.mxu0 %vm381_vm1, %v2794_v56  ;;  %v2770_v56 = vld [vmem:[#allocation2 + $0x99] sm:$0xff] }
 0x204   : > { %v994_v62 = vpop.f32.mrf.mxu3  ;;  %v1258_v35 = vld [vmem:[#allocation3 + $0xc0] sm:$0xff] }
 0x205   : > { %1037 = vst.msk [vmem:[#allocation3 + $0xc8] sm:$0xff] %vm381_vm1, %v994_v62  ;;  %v2769_v62 = vld [vmem:[#allocation2 + $0x91] sm:$0xff] }
 0x206   : > { %v5061_v6 = vpop.f32.mrf.mxu1  ;;  %v2797_v17 = vpack.c.bf16 %v2770_v56, %v2769_v62  ;;  %v5114_v58 = vpop.f32.mrf.mxu2 }
 0x208   : > { %v5093_v37 = vpop.f32.mrf.mxu0 }
 0x209   : > { %4043 = vmatmul.msk.bf16.gmra.mxu3 %vm381_vm1, %v4875_v38  ;;  %4085 = vmatmul.msk.bf16.gmra.mxu1 %vm381_vm1, %v4819_v29  ;;  %v2795_v38 = vpack.c.bf16 %v2766_v16, %v2765_v7  ;;  %6066 = vst [vmem:[#allocation20_spill] sm:$0xff] %v5093_v37 }
 0x20b   : > { %4102 = vmatmul.msk.bf16.gmra.mxu2 %vm381_vm1, %v5069_v18 }
 0x20c   : > { %v997_v9 = vpop.f32.mrf.mxu3  ;;  %v1259_v62 = vld [vmem:[#allocation3 + $0xc8] sm:$0xff] }
 0x20d   : > { %1038 = vst.msk [vmem:[#allocation3 + $0xd0] sm:$0xff] %vm381_vm1, %v997_v9 }
 0x20e   : > { %v5074_v15 = vpop.f32.mrf.mxu1  ;;  %v5126_v49 = vpop.f32.mrf.mxu2 }
 0x210   : > { %v5101_v48 = vpop.f32.mrf.mxu0 }
 0x211   : > { %6067 = vst [vmem:[#allocation21_spill] sm:$0xff] %v5101_v48 }
 0x213   : > { %4129 = vmatmul.msk.bf16.gmra.mxu0 %vm381_vm1, %v2795_v38  ;;  %v2212_v38 = vld [vmem:[#allocation2 + $0x13a] sm:$0xff] }
 0x214   : > { %v999_v29 = vpop.f32.mrf.mxu3 }
 0x215   : > { %1039 = vst.msk [vmem:[#allocation3 + $0xd8] sm:$0xff] %vm381_vm1, %v999_v29  ;;  %v2213_v29 = vld [vmem:[#allocation2 + $0x142] sm:$0xff] }
 0x216   : > { %v5080_v24 = vpop.f32.mrf.mxu1  ;;  %v5128_v28 = vpack.c.bf16 %v2213_v29, %v2212_v38  ;;  %v2214_v29 = vld [vmem:[#allocation2 + $0x152] sm:$0xff] }
 0x218   : > { %v5116_v9 = vpop.f32.mrf.mxu0 }
 0x219   : > { %4044 = vmatmul.msk.bf16.gmra.mxu3 %vm381_vm1, %v4896_v55  ;;  %4086 = vmatmul.msk.bf16.gmra.mxu1 %vm381_vm1, %v4846_v3  ;;  %6068 = vst [vmem:[#allocation22_spill] sm:$0xff] %v5116_v9 }
 0x21b   : > { %4103 = vmatmul.msk.bf16.gmra.mxu2 %vm381_vm1, %v5086_v33 }
 0x21c   : > { %v1002_v34 = vpop.f32.mrf.mxu3 }
 0x21d   : > { %1040 = vst.msk [vmem:[#allocation3 + $0xe0] sm:$0xff] %vm381_vm1, %v1002_v34 }
 0x21e   : > { %v5091_v60 = vpop.f32.mrf.mxu1 }
 0x220   : > { %v5130_v39 = vpop.f32.mrf.mxu0 }
 0x221   : > { %6069 = vst [vmem:[#allocation23_spill] sm:$0xff] %v5130_v39 }
 0x223   : > { %4130 = vmatmul.msk.bf16.gmra.mxu0 %vm381_vm1, %v2796_v40 }
 0x224   : > { %v1004_v3 = vpop.f32.mrf.mxu3 }
 0x225   : > { %1041 = vst.msk [vmem:[#allocation3 + $0xe8] sm:$0xff] %vm381_vm1, %v1004_v3  ;;  %v2772_v3 = vld [vmem:[#allocation2 + $0xb1] sm:$0xff] }
 0x226   : > { %v5097_v46 = vpop.f32.mrf.mxu1 }
 0x228   : > { %v5140_v38 = vpop.f32.mrf.mxu0 }
 0x229   : > { %4045 = vmatmul.msk.bf16.gmra.mxu3 %vm381_vm1, %v4916_v10  ;;  %4087 = vmatmul.msk.bf16.gmra.mxu1 %vm381_vm1, %v4954_v54  ;;  %6070 = vst [vmem:[#allocation24_spill] sm:$0xff] %v5140_v38 }
 0x22b   : > { %4104 = vmatmul.msk.bf16.gmra.mxu2 %vm381_vm1, %v5107_v59 }
 0x22c   : > { %v1007_v12 = vpop.f32.mrf.mxu3 }
 0x22d   : > { %1042 = vst.msk [vmem:[#allocation3 + $0xf0] sm:$0xff] %vm381_vm1, %v1007_v12  ;;  %v2798_v12 = vpack.c.bf16 %v2772_v3, %v2771_v20  ;;  %v1260_v20 = vld [vmem:[#allocation3 + $0xd0] sm:$0xff] }
 0x22e   : > { %v5112_v50 = vpop.f32.mrf.mxu1 }
 0x230   : > { %v5156_v38 = vpop.f32.mrf.mxu0 }
 0x231   : > { %6071 = vst [vmem:[#allocation25_spill] sm:$0xff] %v5156_v38  ;;  %v1262_v38 = vld [vmem:[#allocation3 + $0xe0] sm:$0xff] }
 0x233   : > { %4131 = vmatmul.msk.bf16.gmra.mxu0 %vm381_vm1, %v2797_v17 }
 0x234   : > { %v1009_v16 = vpop.f32.mrf.mxu3 }
 0x235   : > { %1043 = vst.msk [vmem:[#allocation3 + $0xf8] sm:$0xff] %vm381_vm1, %v1009_v16  ;;  %v5138_v16 = vpop.f32.mrf.mxu2 }
 0x236   : > { %v5120_v7 = vpop.f32.mrf.mxu1 }
 0x239   : > { %4046 = vmatmul.msk.bf16.gmra.mxu3 %vm381_vm1, %v4940_v36  ;;  %4088 = vmatmul.msk.bf16.gmra.mxu1 %vm381_vm1, %v4977_v19 }
 0x23b   : > { %4105 = vmatmul.msk.bf16.gmra.mxu2 %vm381_vm1, %v5128_v28 }
 0x23c   : > { %v1214_v34 = vpop.f32.mrf.mxu3 }
 0x23d   : > { %v1290_v40 = vadd.f32 %v1258_v35, %v1214_v34  ;;  %v2215_v34 = vld [vmem:[#allocation2 + $0x15a] sm:$0xff] }
 0x23e   : > { %v5135_v53 = vpop.f32.mrf.mxu1 }
 0x23f   : > { %1322 = vst.msk [vmem:[#allocation3 + $0xc0] sm:$0xff] %vm381_vm1, %v1290_v40  ;;  %v5149_v40 = vpack.c.bf16 %v2215_v34, %v2214_v29  ;;  %v1261_v29 = vld [vmem:[#allocation3 + $0xd8] sm:$0xff] }
 0x243   : > { %4132 = vmatmul.msk.bf16.gmra.mxu0 %vm381_vm1, %v2798_v12 }
 0x244   : > { %v1216_v56 = vpop.f32.mrf.mxu3 }
 0x245   : > { %v1291_v17 = vadd.f32 %v1259_v62, %v1216_v56  ;;  %v2774_v56 = vld [vmem:[#allocation2 + $0xc9] sm:$0xff]  ;;  %v5154_v62 = vpop.f32.mrf.mxu2 }
 0x246   : > { %v5147_v35 = vpop.f32.mrf.mxu1 }
 0x247   : > { %1323 = vst.msk [vmem:[#allocation3 + $0xc8] sm:$0xff] %vm381_vm1, %v1291_v17  ;;  %v2773_v17 = vld [vmem:[#allocation2 + $0xc1] sm:$0xff] }
 0x248   : > { %v2799_v39 = vpack.c.bf16 %v2774_v56, %v2773_v17  ;;  %v5168_v56 = vpop.f32.mrf.mxu0 }
 0x249   : > { %4047 = vmatmul.msk.bf16.gmra.mxu3 %vm381_vm1, %v4965_v2  ;;  %4089 = vmatmul.msk.bf16.gmra.mxu1 %vm381_vm1, %v4999_v42  ;;  %6073 = vst [vmem:[#allocation27_spill] sm:$0xff] %v5168_v56 }
 0x24b   : > { %4106 = vmatmul.msk.bf16.gmra.mxu2 %vm381_vm1, %v5149_v40 }
 0x24c   : > { %v1219_v3 = vpop.f32.mrf.mxu3 }
 0x24d   : > { %v1292_v12 = vadd.f32 %v1260_v20, %v1219_v3  ;;  %v2216_v3 = vld [vmem:[#allocation2 + $0x16a] sm:$0xff]  ;;  %v2217_v20 = vld [vmem:[#allocation2 + $0x172] sm:$0xff] }
 0x24e   : > { %v5159_v34 = vpop.f32.mrf.mxu1 }
 0x24f   : > { %1324 = vst.msk [vmem:[#allocation3 + $0xd0] sm:$0xff] %vm381_vm1, %v1292_v12  ;;  %v5166_v12 = vpop.f32.mrf.mxu2 }
 0x250   : > { %6072 = vst [vmem:[#allocation26_spill] sm:$0xff] %v5159_v34  ;;  %v5180_v27 = vpop.f32.mrf.mxu0 }
 0x251   : > { %6075 = vst [vmem:[#allocation29_spill] sm:$0xff] %v5180_v27 }
 0x253   : > { %4133 = vmatmul.msk.bf16.gmra.mxu0 %vm381_vm1, %v2799_v39  ;;  %v5170_v39 = vpack.c.bf16 %v2217_v20, %v2216_v3  ;;  %v1263_v3 = vld [vmem:[#allocation3 + $0xe8] sm:$0xff]  ;;  %v1932_v20 = vld [vmem:[#allocation2 + $0x181] sm:$0xff] }
 0x254   : > { %v1221_v9 = vpop.f32.mrf.mxu3 }
 0x255   : > { %v1293_v48 = vadd.f32 %v1261_v29, %v1221_v9  ;;  %v2775_v29 = vld [vmem:[#allocation2 + $0xd9] sm:$0xff] }
 0x256   : > { %v5174_v9 = vpop.f32.mrf.mxu1 }
 0x257   : > { %1325 = vst.msk [vmem:[#allocation3 + $0xd8] sm:$0xff] %vm381_vm1, %v1293_v48  ;;  %v2776_v48 = vld [vmem:[#allocation2 + $0xe1] sm:$0xff]  ;;  %v5178_v45 = vpop.f32.mrf.mxu2 }
 0x258   : > { %6074 = vst [vmem:[#allocation28_spill] sm:$0xff] %v5174_v9  ;;  %v2800_v22 = vpack.c.bf16 %v2776_v48, %v2775_v29  ;;  %v1264_v9 = vld [vmem:[#allocation3 + $0xf0] sm:$0xff] }
 0x259   : > { %4048 = vmatmul.msk.bf16.gmra.mxu3 %vm381_vm1, %v4984_v23  ;;  %4090 = vmatmul.msk.bf16.gmra.mxu1 %vm381_vm1, %v5022_v8 }
 0x25b   : > { %4107 = vmatmul.msk.bf16.gmra.mxu2 %vm381_vm1, %v5170_v39 }
 0x25c   : > { %v1224_v17 = vpop.f32.mrf.mxu3 }
 0x25d   : > { %v1294_v37 = vadd.f32 %v1262_v38, %v1224_v17  ;;  %v5183_v17 = vpack.c.bf16 %v1933_v63, %v1932_v20  ;;  %v2778_v63 = vld [vmem:[#allocation2 + $0xf9] sm:$0xff]  ;;  %v2777_v20 = vld [vmem:[#allocation2 + $0xf1] sm:$0xff] }
 0x25e   : > { %v5185_v4 = vpop.f32.mrf.mxu1 }
 0x25f   : > { %1326 = vst.msk [vmem:[#allocation3 + $0xe0] sm:$0xff] %vm381_vm1, %v1294_v37  ;;  %v2219_v37 = vld [vmem:[#allocation2 + $0x18a] sm:$0xff] }
 0x260   : > { %6076 = vst [vmem:[#allocation30_spill] sm:$0xff] %v5185_v4 }
 0x263   : > { %4134 = vmatmul.msk.bf16.gmra.mxu0 %vm381_vm1, %v2800_v22  ;;  %v2218_v22 = vld [vmem:[#allocation2 + $0x182] sm:$0xff] }
 0x264   : > { %v1226_v56 = vpop.f32.mrf.mxu3  ;;  %v5191_v48 = vpack.c.bf16 %v2219_v37, %v2218_v22  ;;  %v1265_v37 = vld [vmem:[#allocation3 + $0xf8] sm:$0xff] }
 0x265   : > { %v1295_v38 = vadd.f32 %v1263_v3, %v1226_v56  ;;  %v5193_v56 = vpop.f32.mrf.mxu2  ;;  %v5197_v3 = vpop.f32.mrf.mxu0 }
 0x266   : > { %6077 = vst [vmem:[#allocation31_spill] sm:$0xff] %v5191_v48  ;;  %v5200_v4 = vpop.f32.mrf.mxu1 }
 0x267   : > { %1327 = vst.msk [vmem:[#allocation3 + $0xe8] sm:$0xff] %vm381_vm1, %v1295_v38  ;;  %v2801_v38 = vpack.c.bf16 %v2778_v63, %v2777_v20 }
 0x268   : > { %6078 = vst [vmem:[#allocation32_spill] sm:$0xff] %v5197_v3  ;;  %v2780_v3 = vld [vmem:[#allocation2 + $0x111] sm:$0xff] }
 0x269   : > { %4049 = vmatmul.msk.bf16.gmra.mxu3 %vm381_vm1, %v5008_v52  ;;  %4091 = vmatmul.msk.bf16.gmra.mxu1 %vm381_vm1, %v5183_v17  ;;  %6079 = vst [vmem:[#allocation33_spill] sm:$0xff] %v5200_v4 }
 0x26b   : > { %4108 = vmatmul.msk.bf16.gmra.mxu2 %vm381_vm1, %v5191_v48 }
 0x26c   : > { %v1229_v29 = vpop.f32.mrf.mxu3 }
 0x26d   : > { %v1296_v27 = vadd.f32 %v1264_v9, %v1229_v29  ;;  %v5204_v9 = vpop.f32.mrf.mxu0  ;;  %v1520_v29 = vld [vmem:[#allocation3] sm:$0xff] }
 0x26e   : > { %6080 = vst [vmem:[#allocation34_spill] sm:$0xff] %v5204_v9  ;;  %v5210_v63 = vpop.f32.mrf.mxu1  ;;  %v1521_v9 = vld [vmem:[#allocation3 + $0x8] sm:$0xff] }
 0x26f   : > { %1328 = vst.msk [vmem:[#allocation3 + $0xf0] sm:$0xff] %vm381_vm1, %v1296_v27 }
 0x273   : > { %4135 = vmatmul.msk.bf16.gmra.mxu0 %vm381_vm1, %v2801_v38  ;;  %v2779_v38 = vld [vmem:[#allocation2 + $0x109] sm:$0xff] }
 0x274   : > { %v1231_v22 = vpop.f32.mrf.mxu3 }
 0x275   : > { %v1297_v0 = vadd.f32 %v1265_v37, %v1231_v22  ;;  %v2802_v22 = vpack.c.bf16 %v2780_v3, %v2779_v38  ;;  %v5213_v37 = vpop.f32.mrf.mxu0 }
 0x276   : > { %v5216_v34 = vpop.f32.mrf.mxu1 }
 0x277   : > { %1329 = vst.msk [vmem:[#allocation3 + $0xf8] sm:$0xff] %vm381_vm1, %v1297_v0 }
 0x279   : > { %4050 = vmatmul.msk.bf16.gmra.mxu3 %vm381_vm1, %v5029_v21  ;;  %4144 = vmatmul.msk.bf16.vlgmr.msra.gmra.mxu1 %vm381_vm1, %v4896_v55 }
 0x27c   : > { %v1440_v27 = vpop.f32.mrf.mxu3 }
 0x27d   : > { %v1552_v20 = vadd.f32 %v1520_v29, %v1440_v27  ;;  %v1522_v27 = vld [vmem:[#allocation3 + $0x10] sm:$0xff]  ;;  %v5225_v29 = vpop.f32.mrf.mxu0 }
 0x27f   : > { %1584 = vst.msk [vmem:[#allocation3] sm:$0xff] %vm381_vm1, %v1552_v20 }
 0x283   : > { %4136 = vmatmul.msk.bf16.gmra.mxu0 %vm381_vm1, %v2802_v22 }
 0x284   : > { %v1442_v0 = vpop.f32.mrf.mxu3 }
 0x285   : > { %v1553_v48 = vadd.f32 %v1521_v9, %v1442_v0  ;;  %v1523_v0 = vld [vmem:[#allocation3 + $0x18] sm:$0xff] }
 0x286   : > { %v1806_v4 = vld [vmem:[#allocation3] sm:$0xff] }
 0x287   : > { %v1838_v55 = vadd.f32 %v1806_v4, %v4856_v13  ;;  %1585 = vst.msk [vmem:[#allocation3 + $0x8] sm:$0xff] %vm381_vm1, %v1553_v48  ;;  %v5229_v4 = vpop.f32.mrf.mxu1  ;;  %v3485_v48 = vld [vmem:[%s6042_s7] sm:$0x3] }
 0x288   : > { %v3535_v22 = vsel %vm919_vm3, %v3485_v48, 0  ;;  %v1524_v48 = vld [vmem:[#allocation3 + $0x20] sm:$0xff] }
 0x289   : > { %1870 = vst.msk [vmem:[#allocation3] sm:$0xff] %vm381_vm1, %v1838_v55  ;;  %4051 = vmatmul.msk.bf16.gmra.mxu3 %vm381_vm1, %v5050_v57  ;;  %4145 = vmatmul.msk.bf16.gmra.mxu1 %vm381_vm1, %v4916_v10 }
 0x28a   : > { %3544 = vmatpush.bf16.msra.mxu2 %v3535_v22 }
 0x28c   : > { %v1445_v3 = vpop.f32.mrf.mxu3 }
 0x28d   : > { %v1554_v9 = vadd.f32 %v1522_v27, %v1445_v3  ;;  %v5240_v27 = vpop.f32.mrf.mxu0 }
 0x28e   : > { %v1807_v20 = vld [vmem:[#allocation3 + $0x8] sm:$0xff] }
 0x28f   : > { %v1839_v38 = vadd.f32 %v1807_v20, %v4867_v31  ;;  %1586 = vst.msk [vmem:[#allocation3 + $0x10] sm:$0xff] %vm381_vm1, %v1554_v9 }
 0x290   : > { %v2092_v13 = vld [vmem:[#allocation3] sm:$0xff] }
 0x291   : > { %1871 = vst.msk [vmem:[#allocation3 + $0x8] sm:$0xff] %vm381_vm1, %v1839_v38  ;;  %v2124_v10 = vadd.f32 %v2092_v13, %v5042_v44  ;;  %v5250_v38 = vpop.f32.mrf.mxu1 }
 0x293   : > { %4137 = vmatmul.msk.bf16.gmra.mxu0 %vm381_vm1, %v4954_v54  ;;  %2156 = vst.msk [vmem:[#allocation3] sm:$0xff] %vm381_vm1, %v2124_v10 }
 0x294   : > { %v1447_v31 = vpop.f32.mrf.mxu3 }
 0x295   : > { %v1555_v55 = vadd.f32 %v1523_v0, %v1447_v31  ;;  %v5257_v0 = vpop.f32.mrf.mxu0 }
 0x296   : > { %v1808_v3 = vld [vmem:[#allocation3 + $0x10] sm:$0xff] }
 0x297   : > { %v1840_v9 = vadd.f32 %v1808_v3, %v4881_v41  ;;  %1587 = vst.msk [vmem:[#allocation3 + $0x18] sm:$0xff] %vm381_vm1, %v1555_v55 }
 0x298   : > { %v2093_v20 = vld [vmem:[#allocation3 + $0x8] sm:$0xff] }
 0x299   : > { %1872 = vst.msk [vmem:[#allocation3 + $0x10] sm:$0xff] %vm381_vm1, %v1840_v9  ;;  %4052 = vmatmul.msk.bf16.gmra.mxu3 %vm381_vm1, %v5069_v18  ;;  %4146 = vmatmul.msk.bf16.gmra.mxu1 %vm381_vm1, %v4940_v36  ;;  %v2125_v54 = vadd.f32 %v2093_v20, %v5055_v61  ;;  %v1525_v9 = vld [vmem:[#allocation3 + $0x28] sm:$0xff] }
 0x29a   : > { %v2378_v44 = vld [vmem:[#allocation3] sm:$0xff] }
 0x29b   : > { %v2410_v13 = vadd.f32 %v2378_v44, %v5099_v47  ;;  %2157 = vst.msk [vmem:[#allocation3 + $0x8] sm:$0xff] %vm381_vm1, %v2125_v54 }
 0x29c   : > { %v1450_v41 = vpop.f32.mrf.mxu3 }
 0x29d   : > { %v1556_v10 = vadd.f32 %v1524_v48, %v1450_v41  ;;  %2442 = vst.msk [vmem:[#allocation3] sm:$0xff] %vm381_vm1, %v2410_v13  ;;  %v5276_v13 = vpop.f32.mrf.mxu0 }
 0x29e   : > { %v1809_v22 = vld [vmem:[#allocation3 + $0x18] sm:$0xff] }
 0x29f   : > { %v1841_v31 = vadd.f32 %v1809_v22, %v4889_v51  ;;  %1588 = vst.msk [vmem:[#allocation3 + $0x20] sm:$0xff] %vm381_vm1, %v1556_v10  ;;  %v5265_v51 = vpop.f32.mrf.mxu1  ;;  %v1526_v10 = vld [vmem:[#allocation3 + $0x30] sm:$0xff] }
 0x2a0   : > { %v2094_v36 = vld [vmem:[#allocation3 + $0x10] sm:$0xff] }
 0x2a1   : > { %1873 = vst.msk [vmem:[#allocation3 + $0x18] sm:$0xff] %vm381_vm1, %v1841_v31  ;;  %v2126_v61 = vadd.f32 %v2094_v36, %v5061_v6 }
 0x2a2   : > { %v2379_v47 = vld [vmem:[#allocation3 + $0x8] sm:$0xff] }
 0x2a3   : > { %4138 = vmatmul.msk.bf16.gmra.mxu0 %vm381_vm1, %v4977_v19  ;;  %v2411_v55 = vadd.f32 %v2379_v47, %v5114_v58  ;;  %2158 = vst.msk [vmem:[#allocation3 + $0x10] sm:$0xff] %vm381_vm1, %v2126_v61 }
 0x2a4   : > { %v1452_v3 = vpop.f32.mrf.mxu3 }
 0x2a5   : > { %v1557_v20 = vadd.f32 %v1525_v9, %v1452_v3  ;;  %2443 = vst.msk [vmem:[#allocation3 + $0x8] sm:$0xff] %vm381_vm1, %v2411_v55  ;;  %v1527_v3 = vld [vmem:[#allocation3 + $0x38] sm:$0xff]  ;;  %v5293_v9 = vpop.f32.mrf.mxu0 }
 0x2a6   : > { %v1810_v54 = vld [vmem:[#allocation3 + $0x20] sm:$0xff] }
 0x2a7   : > { %v1842_v44 = vadd.f32 %v1810_v54, %v4901_v25  ;;  %1589 = vst.msk [vmem:[#allocation3 + $0x28] sm:$0xff] %vm381_vm1, %v1557_v20  ;;  %v5280_v25 = vpop.f32.mrf.mxu2  ;;  %v5283_v36 = vpop.f32.mrf.mxu1 }
 0x2a8   : > { %v2095_v6 = vld [vmem:[#allocation3 + $0x18] sm:$0xff] }
 0x2a9   : > { %1874 = vst.msk [vmem:[#allocation3 + $0x20] sm:$0xff] %vm381_vm1, %v1842_v44  ;;  %4053 = vmatmul.msk.bf16.gmra.mxu3 %vm381_vm1, %v5086_v33  ;;  %4147 = vmatmul.msk.bf16.gmra.mxu1 %vm381_vm1, %v4965_v2  ;;  %v2127_v19 = vadd.f32 %v2095_v6, %v5074_v15 }
 0x2aa   : > { %v2380_v58 = vld [vmem:[#allocation3 + $0x10] sm:$0xff] }
 0x2ab   : > { %v2412_v41 = vadd.f32 %v2380_v58, %v5126_v49  ;;  %2159 = vst.msk [vmem:[#allocation3 + $0x18] sm:$0xff] %vm381_vm1, %v2127_v19  ;;  %v1528_v58 = vld [vmem:[#allocation3 + $0x40] sm:$0xff] }
 0x2ac   : > { %v1455_v48 = vpop.f32.mrf.mxu3 }
 0x2ad   : > { %v1558_v22 = vadd.f32 %v1526_v10, %v1455_v48  ;;  %2444 = vst.msk [vmem:[#allocation3 + $0x10] sm:$0xff] %vm381_vm1, %v2412_v41  ;;  %v5311_v10 = vpop.f32.mrf.mxu0 }
 0x2ae   : > { %v1811_v31 = vld [vmem:[#allocation3 + $0x28] sm:$0xff] }
 0x2af   : > { %v1843_v2 = vadd.f32 %v1811_v31, %v4909_v5  ;;  %1590 = vst.msk [vmem:[#allocation3 + $0x30] sm:$0xff] %vm381_vm1, %v1558_v22  ;;  %v5296_v20 = vpop.f32.mrf.mxu2 }
 0x2b0   : > { %v2096_v15 = vld [vmem:[#allocation3 + $0x20] sm:$0xff] }
 0x2b1   : > { %1875 = vst.msk [vmem:[#allocation3 + $0x28] sm:$0xff] %vm381_vm1, %v1843_v2  ;;  %v2128_v49 = vadd.f32 %v2096_v15, %v5080_v24 }
 0x2b2   : > { %v2381_v61 = vld [vmem:[#allocation3 + $0x18] sm:$0xff] }
 0x2b3   : > { %4139 = vmatmul.msk.bf16.gmra.mxu0 %vm381_vm1, %v4999_v42  ;;  %v2413_v47 = vadd.f32 %v2381_v61, %v5138_v16  ;;  %2160 = vst.msk [vmem:[#allocation3 + $0x20] sm:$0xff] %vm381_vm1, %v2128_v49  ;;  %v5300_v42 = vpop.f32.mrf.mxu1  ;;  %v1529_v49 = vld [vmem:[#allocation3 + $0x48] sm:$0xff] }
 0x2b4   : > { %v1457_v55 = vpop.f32.mrf.mxu3 }
 0x2b5   : > { %v1559_v5 = vadd.f32 %v1527_v3, %v1457_v55  ;;  %2445 = vst.msk [vmem:[#allocation3 + $0x18] sm:$0xff] %vm381_vm1, %v2413_v47  ;;  %v5328_v3 = vpop.f32.mrf.mxu0 }
 0x2b6   : > { %v1812_v54 = vld [vmem:[#allocation3 + $0x30] sm:$0xff] }
 0x2b7   : > { %v1844_v24 = vadd.f32 %v1812_v54, %v4925_v14  ;;  %1591 = vst.msk [vmem:[#allocation3 + $0x38] sm:$0xff] %vm381_vm1, %v1559_v5 }
 0x2b8   : > { %v2097_v44 = vld [vmem:[#allocation3 + $0x28] sm:$0xff] }
 0x2b9   : > { %1876 = vst.msk [vmem:[#allocation3 + $0x30] sm:$0xff] %vm381_vm1, %v1844_v24  ;;  %4054 = vmatmul.msk.bf16.gmra.mxu3 %vm381_vm1, %v5107_v59  ;;  %4148 = vmatmul.msk.bf16.gmra.mxu1 %vm381_vm1, %v4984_v23  ;;  %v2129_v16 = vadd.f32 %v2097_v44, %v5091_v60  ;;  %v5315_v23 = vpop.f32.mrf.mxu2  ;;  %v1530_v24 = vld [vmem:[#allocation3 + $0x50] sm:$0xff] }
 0x2ba   : > { %v2382_v6 = vld [vmem:[#allocation3 + $0x20] sm:$0xff] }
 0x2bb   : > { %v2414_v19 = vadd.f32 %v2382_v6, %v5154_v62  ;;  %2161 = vst.msk [vmem:[#allocation3 + $0x28] sm:$0xff] %vm381_vm1, %v2129_v16  ;;  %v5319_v2 = vpop.f32.mrf.mxu1 }
 0x2bc   : > { %v1460_v14 = vpop.f32.mrf.mxu3 }
 0x2bd   : > { %v1560_v41 = vadd.f32 %v1528_v58, %v1460_v14  ;;  %2446 = vst.msk [vmem:[#allocation3 + $0x20] sm:$0xff] %vm381_vm1, %v2414_v19  ;;  %v5347_v14 = vpop.f32.mrf.mxu0 }
 0x2be   : > { %v1813_v48 = vld [vmem:[#allocation3 + $0x38] sm:$0xff] }
 0x2bf   : > { %v1845_v22 = vadd.f32 %v1813_v48, %v4933_v32  ;;  %1592 = vst.msk [vmem:[#allocation3 + $0x40] sm:$0xff] %vm381_vm1, %v1560_v41  ;;  %v1531_v48 = vld [vmem:[#allocation3 + $0x58] sm:$0xff] }
 0x2c0   : > { %v2098_v60 = vld [vmem:[#allocation3 + $0x30] sm:$0xff] }
 0x2c1   : > { %1877 = vst.msk [vmem:[#allocation3 + $0x38] sm:$0xff] %vm381_vm1, %v1845_v22  ;;  %v2130_v62 = vadd.f32 %v2098_v60, %v5097_v46 }
 0x2c2   : > { %v2383_v31 = vld [vmem:[#allocation3 + $0x28] sm:$0xff] }
 0x2c3   : > { %4140 = vmatmul.msk.bf16.gmra.mxu0 %vm381_vm1, %v5022_v8  ;;  %v2415_v15 = vadd.f32 %v2383_v31, %v5166_v12  ;;  %2162 = vst.msk [vmem:[#allocation3 + $0x30] sm:$0xff] %vm381_vm1, %v2130_v62  ;;  %v5336_v12 = vpop.f32.mrf.mxu2  ;;  %v5340_v44 = vpop.f32.mrf.mxu1 }
 0x2c4   : > { %v1462_v32 = vpop.f32.mrf.mxu3 }
 0x2c5   : > { %v1561_v61 = vadd.f32 %v1529_v49, %v1462_v32  ;;  %2447 = vst.msk [vmem:[#allocation3 + $0x28] sm:$0xff] %vm381_vm1, %v2415_v15 }
 0x2c6   : > { %v1814_v47 = vld [vmem:[#allocation3 + $0x40] sm:$0xff] }
 0x2c7   : > { %v1846_v55 = vadd.f32 %v1814_v47, %v4946_v43  ;;  %1593 = vst.msk [vmem:[#allocation3 + $0x48] sm:$0xff] %vm381_vm1, %v1561_v61 }
 0x2c8   : > { %v2099_v46 = vld [vmem:[#allocation3 + $0x38] sm:$0xff] }
 0x2c9   : > { %1878 = vst.msk [vmem:[#allocation3 + $0x40] sm:$0xff] %vm381_vm1, %v1846_v55  ;;  %4055 = vmatmul.msk.bf16.gmra.mxu3 %vm381_vm1, %v5128_v28  ;;  %4149 = vmatmul.msk.bf16.gmra.mxu1 %vm381_vm1, %v5008_v52  ;;  %v2131_v8 = vadd.f32 %v2099_v46, %v5112_v50 }
 0x2ca   : > { %v2384_v5 = vld [vmem:[#allocation3 + $0x30] sm:$0xff] }
 0x2cb   : > { %v2416_v43 = vadd.f32 %v2384_v5, %v5178_v45  ;;  %2163 = vst.msk [vmem:[#allocation3 + $0x38] sm:$0xff] %vm381_vm1, %v2131_v8  ;;  %v5353_v41 = vpop.f32.mrf.mxu2  ;;  %v5356_v62 = vpop.f32.mrf.mxu1 }
 0x2cc   : > { %v1465_v54 = vpop.f32.mrf.mxu3 }
 0x2cd   : > { %v1562_v16 = vadd.f32 %v1530_v24, %v1465_v54  ;;  %2448 = vst.msk [vmem:[#allocation3 + $0x30] sm:$0xff] %vm381_vm1, %v2416_v43  ;;  %v1533_v43 = vld [vmem:[#allocation3 + $0x68] sm:$0xff] }
 0x2ce   : > { %v1815_v6 = vld [vmem:[#allocation3 + $0x48] sm:$0xff] }
 0x2cf   : > { %v1847_v19 = vadd.f32 %v1815_v6, %v4962_v1  ;;  %1594 = vst.msk [vmem:[#allocation3 + $0x50] sm:$0xff] %vm381_vm1, %v1562_v16 }
 0x2d0   : > { %v2100_v52 = vld [vmem:[#allocation3 + $0x40] sm:$0xff] }
 0x2d1   : > { %1879 = vst.msk [vmem:[#allocation3 + $0x48] sm:$0xff] %vm381_vm1, %v1847_v19  ;;  %v2132_v50 = vadd.f32 %v2100_v52, %v5120_v7 }
 0x2d2   : > { %v2385_v45 = vld [vmem:[#allocation3 + $0x38] sm:$0xff] }
 0x2d3   : > { %4141 = vmatmul.msk.bf16.gmra.mxu0 %vm381_vm1, %v5183_v17  ;;  %v2417_v58 = vadd.f32 %v2385_v45, %v5193_v56  ;;  %2164 = vst.msk [vmem:[#allocation3 + $0x40] sm:$0xff] %vm381_vm1, %v2132_v50  ;;  %v5369_v61 = vpop.f32.mrf.mxu2  ;;  %v5373_v46 = vpop.f32.mrf.mxu1  ;;  %v1534_v45 = vld [vmem:[#allocation3 + $0x70] sm:$0xff] }
 0x2d4   : > { %v1467_v1 = vpop.f32.mrf.mxu3 }
 0x2d5   : > { %v1563_v22 = vadd.f32 %v1531_v48, %v1467_v1  ;;  %2449 = vst.msk [vmem:[#allocation3 + $0x38] sm:$0xff] %vm381_vm1, %v2417_v58  ;;  %v6082_v48 = vld [vmem:[#allocation14_spill] sm:$0xff] }
 0x2d6   : > { %v1816_v60 = vld [vmem:[#allocation3 + $0x50] sm:$0xff] }
 0x2d7   : > { %v1848_v7 = vadd.f32 %v1816_v60, %v4974_v11  ;;  %1595 = vst.msk [vmem:[#allocation3 + $0x58] sm:$0xff] %vm381_vm1, %v1563_v22  ;;  %v1532_v11 = vld [vmem:[#allocation3 + $0x60] sm:$0xff]  ;;  %v6083_v60 = vld [vmem:[#allocation28_spill] sm:$0xff] }
 0x2d8   : > { %v2101_v31 = vld [vmem:[#allocation3 + $0x48] sm:$0xff] }
 0x2d9   : > { %1880 = vst.msk [vmem:[#allocation3 + $0x50] sm:$0xff] %vm381_vm1, %v1848_v7  ;;  %4056 = vmatmul.msk.bf16.gmra.mxu3 %vm381_vm1, %v5149_v40  ;;  %4150 = vmatmul.msk.bf16.gmra.mxu1 %vm381_vm1, %v5029_v21  ;;  %v2133_v17 = vadd.f32 %v2101_v31, %v5135_v53 }
 0x2da   : > { %v2386_v56 = vld [vmem:[#allocation3 + $0x40] sm:$0xff] }
 0x2db   : > { %v2418_v15 = vadd.f32 %v2386_v56, %v5280_v25  ;;  %2165 = vst.msk [vmem:[#allocation3 + $0x48] sm:$0xff] %vm381_vm1, %v2133_v17  ;;  %v5382_v16 = vpop.f32.mrf.mxu2  ;;  %v5390_v52 = vpop.f32.mrf.mxu1 }
 0x2dc   : > { %v1470_v32 = vpop.f32.mrf.mxu3 }
 0x2dd   : > { %v1564_v49 = vadd.f32 %v1532_v11, %v1470_v32  ;;  %2450 = vst.msk [vmem:[#allocation3 + $0x40] sm:$0xff] %vm381_vm1, %v2418_v15  ;;  %v1535_v15 = vld [vmem:[#allocation3 + $0x78] sm:$0xff]  ;;  %v2476_v32 = vld [vmem:[#allocation2 + $0x38] sm:$0xff] }
 0x2de   : > { %v1817_v47 = vld [vmem:[#allocation3 + $0x58] sm:$0xff] }
 0x2df   : > { %v1849_v55 = vadd.f32 %v1817_v47, %v4988_v26  ;;  %1596 = vst.msk [vmem:[#allocation3 + $0x60] sm:$0xff] %vm381_vm1, %v1564_v49 }
 0x2e0   : > { %v2102_v21 = vld [vmem:[#allocation3 + $0x50] sm:$0xff] }
 0x2e1   : > { %1881 = vst.msk [vmem:[#allocation3 + $0x58] sm:$0xff] %vm381_vm1, %v1849_v55  ;;  %v2134_v53 = vadd.f32 %v2102_v21, %v5147_v35  ;;  %v6081_v35 = vld [vmem:[#allocation26_spill] sm:$0xff]  ;;  %v6084_v21 = vld [vmem:[#allocation15_spill] sm:$0xff] }
 0x2e2   : > { %v2387_v25 = vld [vmem:[#allocation3 + $0x48] sm:$0xff]  ;;  %v2475_v55 = vld [vmem:[#allocation2 + $0x30] sm:$0xff] }
 0x2e3   : > { %v2419_v8 = vadd.f32 %v2387_v25, %v5296_v20  ;;  %2166 = vst.msk [vmem:[#allocation3 + $0x50] sm:$0xff] %vm381_vm1, %v2134_v53  ;;  %v5399_v31 = vpop.f32.mrf.mxu2  ;;  %v5403_v11 = vpop.f32.mrf.mxu1  ;;  %v2507_v25 = vpack.c.bf16 %v2476_v32, %v2475_v55 }
 0x2e4   : > { %v1472_v5 = vpop.f32.mrf.mxu3 }
 0x2e5   : > { %v1565_v54 = vadd.f32 %v1533_v43, %v1472_v5  ;;  %2451 = vst.msk [vmem:[#allocation3 + $0x48] sm:$0xff] %vm381_vm1, %v2419_v8 }
 0x2e6   : > { %v1818_v26 = vld [vmem:[#allocation3 + $0x60] sm:$0xff] }
 0x2e7   : > { %v1850_v24 = vadd.f32 %v1818_v26, %v5001_v30  ;;  %1597 = vst.msk [vmem:[#allocation3 + $0x68] sm:$0xff] %vm381_vm1, %v1565_v54 }
 0x2e8   : > { %v2103_v6 = vld [vmem:[#allocation3 + $0x58] sm:$0xff] }
 0x2e9   : > { %1882 = vst.msk [vmem:[#allocation3 + $0x60] sm:$0xff] %vm381_vm1, %v1850_v24  ;;  %4057 = vmatmul.msk.bf16.gmra.mxu3 %vm381_vm1, %v5170_v39  ;;  %4151 = vmatmul.msk.bf16.gmra.mxu1 %vm381_vm1, %v5050_v57  ;;  %v2135_v20 = vadd.f32 %v2103_v6, %v6081_v35  ;;  %v1536_v6 = vld [vmem:[#allocation3 + $0x80] sm:$0xff] }
 0x2ea   : > { %v2388_v19 = vld [vmem:[#allocation3 + $0x50] sm:$0xff] }
 0x2eb   : > { %v2420_v30 = vadd.f32 %v2388_v19, %v5315_v23  ;;  %2167 = vst.msk [vmem:[#allocation3 + $0x58] sm:$0xff] %vm381_vm1, %v2135_v20  ;;  %v5415_v26 = vpop.f32.mrf.mxu2  ;;  %v5418_v19 = vpop.f32.mrf.mxu1 }
 0x2ec   : > { %v1475_v50 = vpop.f32.mrf.mxu3 }
 0x2ed   : > { %v1566_v58 = vadd.f32 %v1534_v45, %v1475_v50  ;;  %2452 = vst.msk [vmem:[#allocation3 + $0x50] sm:$0xff] %vm381_vm1, %v2420_v30  ;;  %v6086_v30 = vld [vmem:[#allocation16_spill] sm:$0xff] }
 0x2ee   : > { %v1819_v1 = vld [vmem:[#allocation3 + $0x68] sm:$0xff] }
 0x2ef   : > { %v1851_v22 = vadd.f32 %v1819_v1, %v6082_v48  ;;  %1598 = vst.msk [vmem:[#allocation3 + $0x70] sm:$0xff] %vm381_vm1, %v1566_v58 }
 0x2f0   : > { %v2104_v57 = vld [vmem:[#allocation3 + $0x60] sm:$0xff] }
 0x2f1   : > { %1883 = vst.msk [vmem:[#allocation3 + $0x68] sm:$0xff] %vm381_vm1, %v1851_v22  ;;  %v2136_v7 = vadd.f32 %v2104_v57, %v6083_v60  ;;  %v1537_v22 = vld [vmem:[#allocation3 + $0x88] sm:$0xff]  ;;  %v2478_v57 = vld [vmem:[#allocation2 + $0x50] sm:$0xff] }
 0x2f2   : > { %v2389_v23 = vld [vmem:[#allocation3 + $0x58] sm:$0xff] }
 0x2f3   : > { %v2421_v17 = vadd.f32 %v2389_v23, %v5336_v12  ;;  %2168 = vst.msk [vmem:[#allocation3 + $0x60] sm:$0xff] %vm381_vm1, %v2136_v7  ;;  %v6085_v12 = vld [vmem:[#allocation30_spill] sm:$0xff]  ;;  %v2340_v7 = vpop.f32.mrf.mxu2 }
 0x2f4   : > { %v1477_v56 = vpop.f32.mrf.mxu3 }
 0x2f5   : > { %v1567_v49 = vadd.f32 %v1535_v15, %v1477_v56  ;;  %2453 = vst.msk [vmem:[#allocation3 + $0x58] sm:$0xff] %vm381_vm1, %v2421_v17  ;;  %v2477_v17 = vld [vmem:[#allocation2 + $0x48] sm:$0xff] }
 0x2f6   : > { %v1820_v47 = vld [vmem:[#allocation3 + $0x70] sm:$0xff]  ;;  %v6088_v56 = vld [vmem:[#allocation17_spill] sm:$0xff]  ;;  %v2508_v32 = vpack.c.bf16 %v2478_v57, %v2477_v17 }
 0x2f7   : > { %v1852_v53 = vadd.f32 %v1820_v47, %v6084_v21  ;;  %1599 = vst.msk [vmem:[#allocation3 + $0x78] sm:$0xff] %vm381_vm1, %v1567_v49  ;;  %v5429_v47 = vpop.f32.mrf.mxu1 }
 0x2f8   : > { %v2105_v8 = vld [vmem:[#allocation3 + $0x68] sm:$0xff] }
 0x2f9   : > { %1884 = vst.msk [vmem:[#allocation3 + $0x70] sm:$0xff] %vm381_vm1, %v1852_v53  ;;  %4110 = vmatmul.msk.bf16.vlgmr.msra.gmra.mxu3 %vm381_vm1, %v2507_v25  ;;  %4152 = vmatmul.msk.bf16.gmra.mxu1 %vm381_vm1, %v5069_v18  ;;  %v2137_v5 = vadd.f32 %v2105_v8, %v6085_v12  ;;  %v1538_v25 = vld [vmem:[#allocation3 + $0x90] sm:$0xff] }
 0x2fa   : > { %v2390_v43 = vld [vmem:[#allocation3 + $0x60] sm:$0xff] }
 0x2fb   : > { %v2422_v54 = vadd.f32 %v2390_v43, %v5353_v41  ;;  %2169 = vst.msk [vmem:[#allocation3 + $0x68] sm:$0xff] %vm381_vm1, %v2137_v5  ;;  %v6087_v41 = vld [vmem:[#allocation33_spill] sm:$0xff]  ;;  %v6089_v5 = vld [vmem:[#allocation18_spill] sm:$0xff] }
 0x2fc   : > { %v1480_v24 = vpop.f32.mrf.mxu3 }
 0x2fd   : > { %v1568_v35 = vadd.f32 %v1536_v6, %v1480_v24  ;;  %2454 = vst.msk [vmem:[#allocation3 + $0x60] sm:$0xff] %vm381_vm1, %v2422_v54  ;;  %v2343_v54 = vpop.f32.mrf.mxu2 }
 0x2fe   : > { %v1821_v20 = vld [vmem:[#allocation3 + $0x78] sm:$0xff] }
 0x2ff   : > { %v1853_v50 = vadd.f32 %v1821_v20, %v6086_v30  ;;  %1600 = vst.msk [vmem:[#allocation3 + $0x80] sm:$0xff] %vm381_vm1, %v1568_v35  ;;  %v1539_v20 = vld [vmem:[#allocation3 + $0x98] sm:$0xff] }
 0x300   : > { %v2106_v18 = vld [vmem:[#allocation3 + $0x70] sm:$0xff]  ;;  %v2480_v30 = vld [vmem:[#allocation2 + $0x68] sm:$0xff] }
 0x301   : > { %1885 = vst.msk [vmem:[#allocation3 + $0x78] sm:$0xff] %vm381_vm1, %v1853_v50  ;;  %v2138_v45 = vadd.f32 %v2106_v18, %v6087_v41  ;;  %v2479_v41 = vld [vmem:[#allocation2 + $0x60] sm:$0xff] }
 0x302   : > { %v2391_v58 = vld [vmem:[#allocation3 + $0x68] sm:$0xff] }
 0x303   : > { %v2423_v1 = vadd.f32 %v2391_v58, %v5369_v61  ;;  %2170 = vst.msk [vmem:[#allocation3 + $0x70] sm:$0xff] %vm381_vm1, %v2138_v45  ;;  %v6090_v45 = vld [vmem:[#allocation19_spill] sm:$0xff] }
 0x304   : > { %v1482_v48 = vpop.f32.mrf.mxu3 }
 0x305   : > { %v1569_v60 = vadd.f32 %v1537_v22, %v1482_v48  ;;  %2455 = vst.msk [vmem:[#allocation3 + $0x68] sm:$0xff] %vm381_vm1, %v2423_v1  ;;  %v2345_v48 = vpop.f32.mrf.mxu2 }
 0x306   : > { %v1822_v23 = vld [vmem:[#allocation3 + $0x80] sm:$0xff] }
 0x307   : > { %v1854_v15 = vadd.f32 %v1822_v23, %v6088_v56  ;;  %1601 = vst.msk [vmem:[#allocation3 + $0x88] sm:$0xff] %vm381_vm1, %v1569_v60  ;;  %v1540_v23 = vld [vmem:[#allocation3 + $0xa0] sm:$0xff] }
 0x308   : > { %v2107_v49 = vld [vmem:[#allocation3 + $0x78] sm:$0xff] }
 0x309   : > { %1886 = vst.msk [vmem:[#allocation3 + $0x80] sm:$0xff] %vm381_vm1, %v1854_v15  ;;  %4111 = vmatmul.msk.bf16.gmra.mxu3 %vm381_vm1, %v2508_v32  ;;  %4153 = vmatmul.msk.bf16.gmra.mxu1 %vm381_vm1, %v5086_v33  ;;  %v2139_v61 = vadd.f32 %v2107_v49, %v5210_v63  ;;  %v6091_v32 = vld [vmem:[#allocation20_spill] sm:$0xff] }
 0x30a   : > { %v2392_v55 = vld [vmem:[#allocation3 + $0x70] sm:$0xff] }
 0x30b   : > { %v2424_v21 = vadd.f32 %v2392_v55, %v5382_v16  ;;  %2171 = vst.msk [vmem:[#allocation3 + $0x78] sm:$0xff] %vm381_vm1, %v2139_v61  ;;  %v5443_v16 = vpop.f32.mrf.mxu1 }
 0x30c   : > { %v1485_v53 = vpop.f32.mrf.mxu3 }
 0x30d   : > { %v1570_v8 = vadd.f32 %v1538_v25, %v1485_v53  ;;  %2456 = vst.msk [vmem:[#allocation3 + $0x70] sm:$0xff] %vm381_vm1, %v2424_v21  ;;  %v2348_v55 = vpop.f32.mrf.mxu2  ;;  %v1541_v53 = vld [vmem:[#allocation3 + $0xa8] sm:$0xff]  ;;  %v2482_v25 = vld [vmem:[#allocation2 + $0x80] sm:$0xff] }
 0x30e   : > { %v1823_v12 = vld [vmem:[#allocation3 + $0x88] sm:$0xff] }
 0x30f   : > { %v1855_v43 = vadd.f32 %v1823_v12, %v6089_v5  ;;  %1602 = vst.msk [vmem:[#allocation3 + $0x90] sm:$0xff] %vm381_vm1, %v1570_v8  ;;  %v2481_v5 = vld [vmem:[#allocation2 + $0x78] sm:$0xff] }
 0x310   : > { %v2108_v24 = vld [vmem:[#allocation3 + $0x80] sm:$0xff] }
 0x311   : > { %1887 = vst.msk [vmem:[#allocation3 + $0x88] sm:$0xff] %vm381_vm1, %v1855_v43  ;;  %v2140_v33 = vadd.f32 %v2108_v24, %v5216_v34  ;;  %v2509_v34 = vpack.c.bf16 %v2480_v30, %v2479_v41  ;;  %v6092_v24 = vld [vmem:[#allocation21_spill] sm:$0xff]  ;;  %v1542_v30 = vld [vmem:[#allocation3 + $0xb0] sm:$0xff] }
 0x312   : > { %v2393_v63 = vld [vmem:[#allocation3 + $0x78] sm:$0xff] }
 0x313   : > { %v2425_v6 = vadd.f32 %v2393_v63, %v5399_v31  ;;  %2172 = vst.msk [vmem:[#allocation3 + $0x80] sm:$0xff] %vm381_vm1, %v2140_v33  ;;  %v5457_v17 = vpop.f32.mrf.mxu1 }
 0x314   : > { %v1487_v35 = vpop.f32.mrf.mxu3 }
 0x315   : > { %v1571_v50 = vadd.f32 %v1539_v20, %v1487_v35  ;;  %2457 = vst.msk [vmem:[#allocation3 + $0x78] sm:$0xff] %vm381_vm1, %v2425_v6 }
 0x316   : > { %v1824_v18 = vld [vmem:[#allocation3 + $0x90] sm:$0xff] }
 0x317   : > { %v1856_v58 = vadd.f32 %v1824_v18, %v6090_v45  ;;  %1603 = vst.msk [vmem:[#allocation3 + $0x98] sm:$0xff] %vm381_vm1, %v1571_v50  ;;  %v2350_v18 = vpop.f32.mrf.mxu2  ;;  %v6093_v45 = vld [vmem:[#allocation22_spill] sm:$0xff] }
 0x318   : > { %v2109_v1 = vld [vmem:[#allocation3 + $0x88] sm:$0xff] }
 0x319   : > { %1888 = vst.msk [vmem:[#allocation3 + $0x90] sm:$0xff] %vm381_vm1, %v1856_v58  ;;  %4112 = vmatmul.msk.bf16.gmra.mxu3 %vm381_vm1, %v2509_v34  ;;  %4154 = vmatmul.msk.bf16.gmra.mxu1 %vm381_vm1, %v5107_v59  ;;  %v2141_v31 = vadd.f32 %v2109_v1, %v5229_v4 }
 0x31a   : > { %v2394_v22 = vld [vmem:[#allocation3 + $0x80] sm:$0xff] }
 0x31b   : > { %v2426_v57 = vadd.f32 %v2394_v22, %v5415_v26  ;;  %2173 = vst.msk [vmem:[#allocation3 + $0x88] sm:$0xff] %vm381_vm1, %v2141_v31  ;;  %v5466_v43 = vpop.f32.mrf.mxu1  ;;  %v1543_v22 = vld [vmem:[#allocation3 + $0xb8] sm:$0xff] }
 0x31c   : > { %v1490_v60 = vpop.f32.mrf.mxu3 }
 0x31d   : > { %v1572_v56 = vadd.f32 %v1540_v23, %v1490_v60  ;;  %2458 = vst.msk [vmem:[#allocation3 + $0x80] sm:$0xff] %vm381_vm1, %v2426_v57  ;;  %v2484_v57 = vld [vmem:[#allocation2 + $0x98] sm:$0xff] }
 0x31e   : > { %v1825_v15 = vld [vmem:[#allocation3 + $0x98] sm:$0xff] }
 0x31f   : > { %v1857_v49 = vadd.f32 %v1825_v15, %v6091_v32  ;;  %1604 = vst.msk [vmem:[#allocation3 + $0xa0] sm:$0xff] %vm381_vm1, %v1572_v56  ;;  %v2483_v56 = vld [vmem:[#allocation2 + $0x90] sm:$0xff]  ;;  %v6094_v15 = vld [vmem:[#allocation23_spill] sm:$0xff] }
 0x320   : > { %v2110_v59 = vld [vmem:[#allocation3 + $0x90] sm:$0xff] }
 0x321   : > { %1889 = vst.msk [vmem:[#allocation3 + $0x98] sm:$0xff] %vm381_vm1, %v1857_v49  ;;  %v2142_v4 = vadd.f32 %v2110_v59, %v5250_v38  ;;  %v2510_v38 = vpack.c.bf16 %v2482_v25, %v2481_v5  ;;  %v2511_v49 = vpack.c.bf16 %v2484_v57, %v2483_v56  ;;  %v2353_v59 = vpop.f32.mrf.mxu2 }
 0x322   : > { %v2395_v26 = vld [vmem:[#allocation3 + $0x88] sm:$0xff] }
 0x323   : > { %v2427_v61 = vadd.f32 %v2395_v26, %v2340_v7  ;;  %2174 = vst.msk [vmem:[#allocation3 + $0x90] sm:$0xff] %vm381_vm1, %v2142_v4  ;;  %v5479_v1 = vpop.f32.mrf.mxu1 }
 0x324   : > { %v1492_v21 = vpop.f32.mrf.mxu3 }
 0x325   : > { %v1573_v8 = vadd.f32 %v1541_v53, %v1492_v21  ;;  %2459 = vst.msk [vmem:[#allocation3 + $0x88] sm:$0xff] %vm381_vm1, %v2427_v61  ;;  %v1544_v53 = vld [vmem:[#allocation3 + $0xc0] sm:$0xff] }
 0x326   : > { %v1826_v12 = vld [vmem:[#allocation3 + $0xa0] sm:$0xff] }
 0x327   : > { %v1858_v33 = vadd.f32 %v1826_v12, %v6092_v24  ;;  %1605 = vst.msk [vmem:[#allocation3 + $0xa8] sm:$0xff] %vm381_vm1, %v1573_v8  ;;  %v6095_v12 = vld [vmem:[#allocation24_spill] sm:$0xff] }
 0x328   : > { %v2111_v63 = vld [vmem:[#allocation3 + $0x98] sm:$0xff] }
 0x329   : > { %1890 = vst.msk [vmem:[#allocation3 + $0xa0] sm:$0xff] %vm381_vm1, %v1858_v33  ;;  %4113 = vmatmul.msk.bf16.gmra.mxu3 %vm381_vm1, %v2510_v38  ;;  %4155 = vmatmul.msk.bf16.gmra.mxu1 %vm381_vm1, %v5128_v28  ;;  %v2143_v7 = vadd.f32 %v2111_v63, %v5265_v51  ;;  %v1545_v63 = vld [vmem:[#allocation3 + $0xc8] sm:$0xff] }
 0x32a   : > { %v2396_v6 = vld [vmem:[#allocation3 + $0x90] sm:$0xff] }
 0x32b   : > { %v2428_v35 = vadd.f32 %v2396_v6, %v2343_v54  ;;  %2175 = vst.msk [vmem:[#allocation3 + $0x98] sm:$0xff] %vm381_vm1, %v2143_v7  ;;  %v5492_v26 = vpop.f32.mrf.mxu1  ;;  %v2486_v7 = vld [vmem:[#allocation2 + $0xb0] sm:$0xff] }
 0x32c   : > { %v1495_v20 = vpop.f32.mrf.mxu3 }
 0x32d   : > { %v1574_v50 = vadd.f32 %v1542_v30, %v1495_v20  ;;  %2460 = vst.msk [vmem:[#allocation3 + $0x90] sm:$0xff] %vm381_vm1, %v2428_v35  ;;  %v2485_v30 = vld [vmem:[#allocation2 + $0xa8] sm:$0xff] }
 0x32e   : > { %v1827_v41 = vld [vmem:[#allocation3 + $0xa8] sm:$0xff] }
 0x32f   : > { %v1859_v58 = vadd.f32 %v1827_v41, %v6093_v45  ;;  %1606 = vst.msk [vmem:[#allocation3 + $0xb0] sm:$0xff] %vm381_vm1, %v1574_v50  ;;  %v6096_v50 = vld [vmem:[#allocation25_spill] sm:$0xff] }
 0x330   : > { %v2112_v34 = vld [vmem:[#allocation3 + $0xa0] sm:$0xff] }
 0x331   : > { %1891 = vst.msk [vmem:[#allocation3 + $0xa8] sm:$0xff] %vm381_vm1, %v1859_v58  ;;  %v2144_v28 = vadd.f32 %v2112_v34, %v5283_v36 }
 0x332   : > { %v2397_v51 = vld [vmem:[#allocation3 + $0x98] sm:$0xff] }
 0x333   : > { %v2429_v54 = vadd.f32 %v2397_v51, %v2345_v48  ;;  %2176 = vst.msk [vmem:[#allocation3 + $0xa0] sm:$0xff] %vm381_vm1, %v2144_v28  ;;  %v5501_v6 = vpop.f32.mrf.mxu1 }
 0x334   : > { %v1497_v31 = vpop.f32.mrf.mxu3 }
 0x335   : > { %v1575_v60 = vadd.f32 %v1543_v22, %v1497_v31  ;;  %2461 = vst.msk [vmem:[#allocation3 + $0x98] sm:$0xff] %vm381_vm1, %v2429_v54  ;;  %v1546_v54 = vld [vmem:[#allocation3 + $0xd0] sm:$0xff] }
 0x336   : > { %v1828_v23 = vld [vmem:[#allocation3 + $0xb0] sm:$0xff] }
 0x337   : > { %v1860_v32 = vadd.f32 %v1828_v23, %v6094_v15  ;;  %1607 = vst.msk [vmem:[#allocation3 + $0xb8] sm:$0xff] %vm381_vm1, %v1575_v60  ;;  %v6097_v60 = vld [vmem:[#allocation27_spill] sm:$0xff] }
 0x338   : > { %v2113_v4 = vld [vmem:[#allocation3 + $0xa8] sm:$0xff] }
 0x339   : > { %1892 = vst.msk [vmem:[#allocation3 + $0xb0] sm:$0xff] %vm381_vm1, %v1860_v32  ;;  %4114 = vmatmul.msk.bf16.gmra.mxu3 %vm381_vm1, %v2511_v49  ;;  %4156 = vmatmul.msk.bf16.gmra.mxu1 %vm381_vm1, %v5149_v40  ;;  %v2145_v36 = vadd.f32 %v2113_v4, %v5300_v42  ;;  %v2355_v42 = vpop.f32.mrf.mxu2  ;;  %v1547_v49 = vld [vmem:[#allocation3 + $0xd8] sm:$0xff] }
 0x33a   : > { %v2398_v48 = vld [vmem:[#allocation3 + $0xa0] sm:$0xff] }
 0x33b   : > { %v2430_v61 = vadd.f32 %v2398_v48, %v2348_v55  ;;  %2177 = vst.msk [vmem:[#allocation3 + $0xa8] sm:$0xff] %vm381_vm1, %v2145_v36  ;;  %v5513_v57 = vpop.f32.mrf.mxu1 }
 0x33c   : > { %v1500_v21 = vpop.f32.mrf.mxu3 }
 0x33d   : > { %v1576_v25 = vadd.f32 %v1544_v53, %v1500_v21  ;;  %2462 = vst.msk [vmem:[#allocation3 + $0xa0] sm:$0xff] %vm381_vm1, %v2430_v61  ;;  %v2487_v61 = vld [vmem:[#allocation2 + $0xc0] sm:$0xff]  ;;  %v6098_v21 = vld [vmem:[#allocation29_spill] sm:$0xff] }
 0x33e   : > { %v1829_v8 = vld [vmem:[#allocation3 + $0xb8] sm:$0xff] }
 0x33f   : > { %v1861_v5 = vadd.f32 %v1829_v8, %v6095_v12  ;;  %1608 = vst.msk [vmem:[#allocation3 + $0xc0] sm:$0xff] %vm381_vm1, %v1576_v25  ;;  %v6099_v12 = vld [vmem:[#allocation31_spill] sm:$0xff] }
 0x340   : > { %v2114_v24 = vld [vmem:[#allocation3 + $0xb0] sm:$0xff] }
 0x341   : > { %1893 = vst.msk [vmem:[#allocation3 + $0xb8] sm:$0xff] %vm381_vm1, %v1861_v5  ;;  %v2146_v40 = vadd.f32 %v2114_v24, %v5319_v2  ;;  %v2512_v2 = vpack.c.bf16 %v2486_v7, %v2485_v30  ;;  %v2358_v28 = vpop.f32.mrf.mxu2 }
 0x342   : > { %v2399_v33 = vld [vmem:[#allocation3 + $0xa8] sm:$0xff] }
 0x343   : > { %v2431_v55 = vadd.f32 %v2399_v33, %v2350_v18  ;;  %2178 = vst.msk [vmem:[#allocation3 + $0xb0] sm:$0xff] %vm381_vm1, %v2146_v40  ;;  %v1548_v33 = vld [vmem:[#allocation3 + $0xe0] sm:$0xff] }
 0x344   : > { %v1502_v38 = vpop.f32.mrf.mxu3 }
 0x345   : > { %v1577_v35 = vadd.f32 %v1545_v63, %v1502_v38  ;;  %2463 = vst.msk [vmem:[#allocation3 + $0xa8] sm:$0xff] %vm381_vm1, %v2431_v55  ;;  %v6100_v63 = vld [vmem:[#allocation32_spill] sm:$0xff] }
 0x346   : > { %v1830_v20 = vld [vmem:[#allocation3 + $0xc0] sm:$0xff] }
 0x347   : > { %v1862_v41 = vadd.f32 %v1830_v20, %v6096_v50  ;;  %1609 = vst.msk [vmem:[#allocation3 + $0xc8] sm:$0xff] %vm381_vm1, %v1577_v35 }
 0x348   : > { %v2115_v45 = vld [vmem:[#allocation3 + $0xb8] sm:$0xff] }
 0x349   : > { %1894 = vst.msk [vmem:[#allocation3 + $0xc0] sm:$0xff] %vm381_vm1, %v1862_v41  ;;  %4115 = vmatmul.msk.bf16.gmra.mxu3 %vm381_vm1, %v2512_v2  ;;  %4157 = vmatmul.msk.bf16.gmra.mxu1 %vm381_vm1, %v5170_v39  ;;  %v2147_v18 = vadd.f32 %v2115_v45, %v5340_v44  ;;  %v2360_v36 = vpop.f32.mrf.mxu2  ;;  %v1549_v2 = vld [vmem:[#allocation3 + $0xe8] sm:$0xff]  ;;  %v2490_v45 = vld [vmem:[#allocation2 + $0xe0] sm:$0xff] }
 0x34a   : > { %v2400_v58 = vld [vmem:[#allocation3 + $0xb0] sm:$0xff] }
 0x34b   : > { %v2432_v34 = vadd.f32 %v2400_v58, %v2353_v59  ;;  %2179 = vst.msk [vmem:[#allocation3 + $0xb8] sm:$0xff] %vm381_vm1, %v2147_v18  ;;  %v2488_v59 = vld [vmem:[#allocation2 + $0xc8] sm:$0xff] }
 0x34c   : > { %v1505_v51 = vpop.f32.mrf.mxu3  ;;  %v2513_v25 = vpack.c.bf16 %v2488_v59, %v2487_v61  ;;  %v1551_v61 = vld [vmem:[#allocation3 + $0xf8] sm:$0xff] }
 0x34d   : > { %v1578_v31 = vadd.f32 %v1546_v54, %v1505_v51  ;;  %2464 = vst.msk [vmem:[#allocation3 + $0xb0] sm:$0xff] %vm381_vm1, %v2432_v34  ;;  %v2489_v34 = vld [vmem:[#allocation2 + $0xd8] sm:$0xff] }
 0x34e   : > { %v1831_v22 = vld [vmem:[#allocation3 + $0xc8] sm:$0xff]  ;;  %v2514_v54 = vpack.c.bf16 %v2490_v45, %v2489_v34  ;;  %v2493_v45 = vld [vmem:[#allocation2 + $0x108] sm:$0xff] }
 0x34f   : > { %v1863_v23 = vadd.f32 %v1831_v22, %v6097_v60  ;;  %1610 = vst.msk [vmem:[#allocation3 + $0xd0] sm:$0xff] %vm381_vm1, %v1578_v31 }
 0x350   : > { %v2116_v39 = vld [vmem:[#allocation3 + $0xc0] sm:$0xff] }
 0x351   : > { %1895 = vst.msk [vmem:[#allocation3 + $0xc8] sm:$0xff] %vm381_vm1, %v1863_v23  ;;  %v2148_v44 = vadd.f32 %v2116_v39, %v5356_v62  ;;  %v5523_v62 = vpop.f32.mrf.mxu1  ;;  %v2363_v35 = vpop.f32.mrf.mxu2 }
 0x352   : > { %v2401_v56 = vld [vmem:[#allocation3 + $0xb8] sm:$0xff] }
 0x353   : > { %v2433_v15 = vadd.f32 %v2401_v56, %v2355_v42  ;;  %2180 = vst.msk [vmem:[#allocation3 + $0xc0] sm:$0xff] %vm381_vm1, %v2148_v44  ;;  %v1550_v44 = vld [vmem:[#allocation3 + $0xf0] sm:$0xff] }
 0x354   : > { %v1507_v32 = vpop.f32.mrf.mxu3 }
 0x355   : > { %v1579_v4 = vadd.f32 %v1547_v49, %v1507_v32  ;;  %2465 = vst.msk [vmem:[#allocation3 + $0xb8] sm:$0xff] %vm381_vm1, %v2433_v15 }
 0x356   : > { %v1832_v48 = vld [vmem:[#allocation3 + $0xd0] sm:$0xff] }
 0x357   : > { %v1864_v53 = vadd.f32 %v1832_v48, %v6098_v21  ;;  %1611 = vst.msk [vmem:[#allocation3 + $0xd8] sm:$0xff] %vm381_vm1, %v1579_v4  ;;  %v2492_v21 = vld [vmem:[#allocation2 + $0xf8] sm:$0xff] }
 0x358   : > { %v2117_v8 = vld [vmem:[#allocation3 + $0xc8] sm:$0xff] }
 0x359   : > { %1896 = vst.msk [vmem:[#allocation3 + $0xd0] sm:$0xff] %vm381_vm1, %v1864_v53  ;;  %4116 = vmatmul.msk.bf16.gmra.mxu3 %vm381_vm1, %v2513_v25  ;;  %4158 = vmatmul.msk.bf16.gmra.mxu1 %vm381_vm1, %v6099_v12  ;;  %v2149_v5 = vadd.f32 %v2117_v8, %v5373_v46  ;;  %v2365_v22 = vpop.f32.mrf.mxu2 }
 0x35a   : > { %v2402_v24 = vld [vmem:[#allocation3 + $0xc0] sm:$0xff] }
 0x35b   : > { %v2434_v40 = vadd.f32 %v2402_v24, %v2358_v28  ;;  %2181 = vst.msk [vmem:[#allocation3 + $0xc8] sm:$0xff] %vm381_vm1, %v2149_v5  ;;  %v6101_v28 = vld [vmem:[#allocation34_spill] sm:$0xff] }
 0x35c   : > { %v1510_v42 = vpop.f32.mrf.mxu3 }
 0x35d   : > { %v1580_v55 = vadd.f32 %v1548_v33, %v1510_v42  ;;  %2466 = vst.msk [vmem:[#allocation3 + $0xc0] sm:$0xff] %vm381_vm1, %v2434_v40  ;;  %v2665_v33 = vld [vmem:[#allocation3] sm:$0xff] }
 0x35e   : > { %v1833_v38 = vld [vmem:[#allocation3 + $0xd8] sm:$0xff] }
 0x35f   : > { %v1865_v7 = vadd.f32 %v1833_v38, %v6100_v63  ;;  %1612 = vst.msk [vmem:[#allocation3 + $0xe0] sm:$0xff] %vm381_vm1, %v1580_v55 }
 0x360   : > { %v2118_v20 = vld [vmem:[#allocation3 + $0xd0] sm:$0xff] }
 0x361   : > { %1897 = vst.msk [vmem:[#allocation3 + $0xd8] sm:$0xff] %vm381_vm1, %v1865_v7  ;;  %v2150_v46 = vadd.f32 %v2118_v20, %v5390_v52 }
 0x362   : > { %v2403_v30 = vld [vmem:[#allocation3 + $0xc8] sm:$0xff] }
 0x363   : > { %v2435_v50 = vadd.f32 %v2403_v30, %v2360_v36  ;;  %2182 = vst.msk [vmem:[#allocation3 + $0xd0] sm:$0xff] %vm381_vm1, %v2150_v46  ;;  %v2368_v36 = vpop.f32.mrf.mxu2  ;;  %v2666_v30 = vld [vmem:[#allocation3 + $0x8] sm:$0xff] }
 0x364   : > { %v1512_v41 = vpop.f32.mrf.mxu3 }
 0x365   : > { %v1581_v18 = vadd.f32 %v1549_v2, %v1512_v41  ;;  %2467 = vst.msk [vmem:[#allocation3 + $0xc8] sm:$0xff] %vm381_vm1, %v2435_v50  ;;  %v2494_v50 = vld [vmem:[#allocation2 + $0x110] sm:$0xff] }
 0x366   : > { %v1834_v58 = vld [vmem:[#allocation3 + $0xe0] sm:$0xff] }
 0x367   : > { %v1866_v51 = vadd.f32 %v1834_v58, %v6101_v28  ;;  %1613 = vst.msk [vmem:[#allocation3 + $0xe8] sm:$0xff] %vm381_vm1, %v1581_v18  ;;  %v2516_v58 = vpack.c.bf16 %v2494_v50, %v2493_v45 }
 0x368   : > { %v2119_v31 = vld [vmem:[#allocation3 + $0xd8] sm:$0xff] }
 0x369   : > { %1898 = vst.msk [vmem:[#allocation3 + $0xe0] sm:$0xff] %vm381_vm1, %v1866_v51  ;;  %4117 = vmatmul.msk.bf16.gmra.mxu3 %vm381_vm1, %v2514_v54  ;;  %v2151_v52 = vadd.f32 %v2119_v31, %v5403_v11 }
 0x36a   : > { %v2404_v60 = vld [vmem:[#allocation3 + $0xd0] sm:$0xff] }
 0x36b   : > { %v2436_v23 = vadd.f32 %v2404_v60, %v2363_v35  ;;  %2183 = vst.msk [vmem:[#allocation3 + $0xd8] sm:$0xff] %vm381_vm1, %v2151_v52  ;;  %v2667_v52 = vld [vmem:[#allocation3 + $0x10] sm:$0xff] }
 0x36c   : > { %v1515_v39 = vpop.f32.mrf.mxu3 }
 0x36d   : > { %v1582_v56 = vadd.f32 %v1550_v44, %v1515_v39  ;;  %2468 = vst.msk [vmem:[#allocation3 + $0xd0] sm:$0xff] %vm381_vm1, %v2436_v23  ;;  %v5577_v44 = vpop.f32.mrf.mxu1 }
 0x36e   : > { %v1835_v15 = vld [vmem:[#allocation3 + $0xe8] sm:$0xff] }
 0x36f   : > { %v1867_v32 = vadd.f32 %v1835_v15, %v5213_v37  ;;  %1614 = vst.msk [vmem:[#allocation3 + $0xf0] sm:$0xff] %vm381_vm1, %v1582_v56  ;;  %v2491_v37 = vld [vmem:[#allocation2 + $0xf0] sm:$0xff] }
 0x370   : > { %v2120_v49 = vld [vmem:[#allocation3 + $0xe0] sm:$0xff]  ;;  %v2515_v12 = vpack.c.bf16 %v2492_v21, %v2491_v37 }
 0x371   : > { %1899 = vst.msk [vmem:[#allocation3 + $0xe8] sm:$0xff] %vm381_vm1, %v1867_v32  ;;  %v2152_v11 = vadd.f32 %v2120_v49, %v5418_v19 }
 0x372   : > { %v2405_v59 = vld [vmem:[#allocation3 + $0xd8] sm:$0xff] }
 0x373   : > { %v2437_v4 = vadd.f32 %v2405_v59, %v2365_v22  ;;  %2184 = vst.msk [vmem:[#allocation3 + $0xe0] sm:$0xff] %vm381_vm1, %v2152_v11  ;;  %v2668_v11 = vld [vmem:[#allocation3 + $0x18] sm:$0xff] }
 0x374   : > { %v1517_v48 = vpop.f32.mrf.mxu3  ;;  %v2496_v59 = vld [vmem:[#allocation2 + $0x128] sm:$0xff] }
 0x375   : > { %v1583_v53 = vadd.f32 %v1551_v61, %v1517_v48  ;;  %2469 = vst.msk [vmem:[#allocation3 + $0xd8] sm:$0xff] %vm381_vm1, %v2437_v4 }
 0x376   : > { %v1836_v25 = vld [vmem:[#allocation3 + $0xf0] sm:$0xff] }
 0x377   : > { %v1868_v8 = vadd.f32 %v1836_v25, %v5225_v29  ;;  %1615 = vst.msk [vmem:[#allocation3 + $0xf8] sm:$0xff] %vm381_vm1, %v1583_v53  ;;  %v2370_v29 = vpop.f32.mrf.mxu2  ;;  %v5590_v25 = vpop.f32.mrf.mxu1 }
 0x378   : > { %v2121_v5 = vld [vmem:[#allocation3 + $0xe8] sm:$0xff] }
 0x379   : > { %1900 = vst.msk [vmem:[#allocation3 + $0xf0] sm:$0xff] %vm381_vm1, %v1868_v8  ;;  %4118 = vmatmul.msk.bf16.gmra.mxu3 %vm381_vm1, %v2515_v12  ;;  %v2153_v19 = vadd.f32 %v2121_v5, %v5429_v47  ;;  %v2669_v8 = vld [vmem:[#allocation3 + $0x20] sm:$0xff] }
 0x37a   : > { %v2406_v24 = vld [vmem:[#allocation3 + $0xe0] sm:$0xff] }
 0x37b   : > { %v2438_v40 = vadd.f32 %v2406_v24, %v2368_v36  ;;  %2185 = vst.msk [vmem:[#allocation3 + $0xe8] sm:$0xff] %vm381_vm1, %v2153_v19  ;;  %v2495_v36 = vld [vmem:[#allocation2 + $0x120] sm:$0xff] }
 0x37c   : > { %v2585_v42 = vpop.f32.mrf.mxu3 }
 0x37d   : > { %v2697_v55 = vadd.f32 %v2665_v33, %v2585_v42  ;;  %2470 = vst.msk [vmem:[#allocation3 + $0xe0] sm:$0xff] %vm381_vm1, %v2438_v40  ;;  %v5604_v40 = vld [vmem:[%s6041_s6] ss:$0 sm:$0xff] }
 0x37e   : > { %v1837_v38 = vld [vmem:[#allocation3 + $0xf8] sm:$0xff] }
 0x37f   : > { %v1869_v63 = vadd.f32 %v1837_v38, %v5240_v27  ;;  %2729 = vst.msk [vmem:[#allocation3] sm:$0xff] %vm381_vm1, %v2697_v55  ;;  %v5564_v27 = vpop.f32.mrf.mxu0 }
 0x380   : > { %v2122_v7 = vld [vmem:[#allocation3 + $0xf0] sm:$0xff] }
 0x381   : > { %1901 = vst.msk [vmem:[#allocation3 + $0xf8] sm:$0xff] %vm381_vm1, %v1869_v63  ;;  %v2154_v47 = vadd.f32 %v2122_v7, %v5443_v16  ;;  %v2373_v16 = vpop.f32.mrf.mxu2  ;;  %v2670_v63 = vld [vmem:[#allocation3 + $0x28] sm:$0xff] }
 0x382   : > { %v2407_v35 = vld [vmem:[#allocation3 + $0xe8] sm:$0xff] }
 0x383   : > { %v2439_v20 = vadd.f32 %v2407_v35, %v2370_v29  ;;  %2186 = vst.msk [vmem:[#allocation3 + $0xf0] sm:$0xff] %vm381_vm1, %v2154_v47  ;;  %v2497_v7 = vld [vmem:[#allocation2 + $0x138] sm:$0xff]  ;;  %v2498_v47 = vld [vmem:[#allocation2 + $0x140] sm:$0xff] }
 0x384   : > { %v2587_v46 = vpop.f32.mrf.mxu3 }
 0x385   : > { %v2698_v41 = vadd.f32 %v2666_v30, %v2587_v46  ;;  %2471 = vst.msk [vmem:[#allocation3 + $0xe8] sm:$0xff] %vm381_vm1, %v2439_v20  ;;  %v5613_v20 = vpop.f32.mrf.mxu1 }
 0x386   : > { %v2951_v2 = vld [vmem:[#allocation3] sm:$0xff] }
 0x387   : > { %v2983_v18 = vadd.f32 %v2951_v2, %v5257_v0  ;;  %2730 = vst.msk [vmem:[#allocation3 + $0x8] sm:$0xff] %vm381_vm1, %v2698_v41  ;;  %v5575_v39 = vpop.f32.mrf.mxu0  ;;  %v2518_v41 = vpack.c.bf16 %v2498_v47, %v2497_v7  ;;  %v2674_v7 = vld [vmem:[#allocation3 + $0x48] sm:$0xff]  ;;  %v2501_v47 = vld [vmem:[#allocation2 + $0x168] sm:$0xff] }
 0x388   : > { %v2123_v34 = vld [vmem:[#allocation3 + $0xf8] sm:$0xff] }
 0x389   : > { %3015 = vst.msk [vmem:[#allocation3] sm:$0xff] %vm381_vm1, %v2983_v18  ;;  %4119 = vmatmul.msk.bf16.gmra.mxu3 %vm381_vm1, %v2516_v58  ;;  %v2155_v28 = vadd.f32 %v2123_v34, %v5457_v17  ;;  %v2375_v56 = vpop.f32.mrf.mxu2 }
 0x38a   : > { %v2408_v51 = vld [vmem:[#allocation3 + $0xf0] sm:$0xff] }
 0x38b   : > { %v2440_v54 = vadd.f32 %v2408_v51, %v2373_v16  ;;  %2187 = vst.msk [vmem:[#allocation3 + $0xf8] sm:$0xff] %vm381_vm1, %v2155_v28  ;;  %v2671_v28 = vld [vmem:[#allocation3 + $0x30] sm:$0xff] }
 0x38c   : > { %v2590_v31 = vpop.f32.mrf.mxu3 }
 0x38d   : > { %v2699_v22 = vadd.f32 %v2667_v52, %v2590_v31  ;;  %2472 = vst.msk [vmem:[#allocation3 + $0xf0] sm:$0xff] %vm381_vm1, %v2440_v54  ;;  %v5625_v52 = vpop.f32.mrf.mxu1 }
 0x38e   : > { %v2952_v0 = vld [vmem:[#allocation3 + $0x8] sm:$0xff] }
 0x38f   : > { %v2984_v60 = vadd.f32 %v2952_v0, %v5276_v13  ;;  %2731 = vst.msk [vmem:[#allocation3 + $0x10] sm:$0xff] %vm381_vm1, %v2699_v22  ;;  %v5588_v53 = vpop.f32.mrf.mxu0 }
 0x390   : > { %v3237_v23 = vld [vmem:[#allocation3] sm:$0xff] }
 0x391   : > { %v3269_v17 = vadd.f32 %v3237_v23, %v5466_v43  ;;  %3016 = vst.msk [vmem:[#allocation3 + $0x8] sm:$0xff] %vm381_vm1, %v2984_v60  ;;  %v2517_v43 = vpack.c.bf16 %v2496_v59, %v2495_v36 }
 0x392   : > { %v2409_v15 = vld [vmem:[#allocation3 + $0xf8] sm:$0xff] }
 0x393   : > { %3301 = vst.msk [vmem:[#allocation3] sm:$0xff] %vm381_vm1, %v3269_v17  ;;  %v2441_v32 = vadd.f32 %v2409_v15, %v2375_v56 }
 0x394   : > { %v2592_v49 = vpop.f32.mrf.mxu3 }
 0x395   : > { %v2700_v13 = vadd.f32 %v2668_v11, %v2592_v49  ;;  %2473 = vst.msk [vmem:[#allocation3 + $0xf8] sm:$0xff] %vm381_vm1, %v2441_v32  ;;  %v2672_v32 = vld [vmem:[#allocation3 + $0x38] sm:$0xff]  ;;  %v2499_v49 = vld [vmem:[#allocation2 + $0x150] sm:$0xff] }
 0x396   : > { %v2953_v4 = vld [vmem:[#allocation3 + $0x10] sm:$0xff] }
 0x397   : > { %v2985_v48 = vadd.f32 %v2953_v4, %v5293_v9  ;;  %2732 = vst.msk [vmem:[#allocation3 + $0x18] sm:$0xff] %vm381_vm1, %v2700_v13  ;;  %v5596_v9 = vld [vmem:[%s6040_s5] ss:$0 sm:$0xff]  ;;  %v5611_v35 = vpop.f32.mrf.mxu0 }
 0x398   : > { %v3238_v61 = vld [vmem:[#allocation3 + $0x8] sm:$0xff] }
 0x399   : > { %v3270_v21 = vadd.f32 %v3238_v61, %v5479_v1  ;;  %3017 = vst.msk [vmem:[#allocation3 + $0x10] sm:$0xff] %vm381_vm1, %v2985_v48  ;;  %4120 = vmatmul.msk.bf16.gmra.mxu3 %vm381_vm1, %v2517_v43 }
 0x39a   : > { %v3333_v12 = vld [vmem:[#allocation3] sm:$0xff] }
 0x39b   : > { %3302 = vst.msk [vmem:[#allocation3 + $0x8] sm:$0xff] %vm381_vm1, %v3270_v21  ;;  %v3369_v24 = vmul.f32 %v5596_v9, %v3333_v12  ;;  %v5640_v21 = vpop.f32.mrf.mxu1  ;;  %v2673_v12 = vld [vmem:[#allocation3 + $0x40] sm:$0xff] }
 0x39c   : > { %v2595_v37 = vpop.f32.mrf.mxu3 }
 0x39d   : > { %v2701_v5 = vadd.f32 %v2669_v8, %v2595_v37 }
 0x39e   : > { %v2954_v1 = vld [vmem:[#allocation3 + $0x18] sm:$0xff] }
 0x39f   : > { %v2986_v19 = vadd.f32 %v2954_v1, %v5311_v10  ;;  %2733 = vst.msk [vmem:[#allocation3 + $0x20] sm:$0xff] %vm381_vm1, %v2701_v5  ;;  %v3405_v10 = vadd.f32 %v5604_v40, %v3369_v24  ;;  %v5623_v31 = vpop.f32.mrf.mxu0 }
 0x3a0   : > { %v3239_v42 = vld [vmem:[#allocation3 + $0x10] sm:$0xff] }
 0x3a1   : > { %v3271_v33 = vadd.f32 %v3239_v42, %v5492_v26  ;;  %3018 = vst.msk [vmem:[#allocation3 + $0x18] sm:$0xff] %vm381_vm1, %v2986_v19  ;;  %v3437_v2 = vmax.f32 %v3405_v10, 0.0 }
 0x3a2   : > { %v3334_v55 = vld [vmem:[#allocation3 + $0x8] sm:$0xff] }
 0x3a3   : > { %3303 = vst.msk [vmem:[#allocation3 + $0x10] sm:$0xff] %vm381_vm1, %v3271_v33  ;;  %v3370_v29 = vmul.f32 %v5596_v9, %v3334_v55  ;;  %v5654_v10 = vpop.f32.mrf.mxu1 }
 0x3a4   : > { %v2597_v38 = vpop.f32.mrf.mxu3 }
 0x3a5   : > { %v2702_v46 = vadd.f32 %v2670_v63, %v2597_v38  ;;  %v3406_v26 = vadd.f32 %v5604_v40, %v3370_v29 }
 0x3a6   : > { %v2955_v30 = vld [vmem:[#allocation3 + $0x20] sm:$0xff] }
 0x3a7   : > { %v2987_v50 = vadd.f32 %v2955_v30, %v5328_v3  ;;  %2734 = vst.msk [vmem:[#allocation3 + $0x28] sm:$0xff] %vm381_vm1, %v2702_v46  ;;  %v3438_v45 = vmax.f32 %v3406_v26, 0.0  ;;  %v5638_v61 = vpop.f32.mrf.mxu0  ;;  %v2502_v46 = vld [vmem:[#allocation2 + $0x170] sm:$0xff] }
 0x3a8   : > { %v3240_v18 = vld [vmem:[#allocation3 + $0x18] sm:$0xff] }
 0x3a9   : > { %v3272_v58 = vadd.f32 %v3240_v18, %v5501_v6  ;;  %3019 = vst.msk [vmem:[#allocation3 + $0x20] sm:$0xff] %vm381_vm1, %v2987_v50  ;;  %4121 = vmatmul.msk.bf16.gmra.mxu3 %vm381_vm1, %v2518_v41  ;;  %v3469_v16 = vpack.c.bf16 %v3438_v45, %v3437_v2  ;;  %v2520_v41 = vpack.c.bf16 %v2502_v46, %v2501_v47  ;;  %v2505_v46 = vld [vmem:[#allocation2 + $0x198] sm:$0xff] }
 0x3aa   : > { %v3335_v3 = vld [vmem:[#allocation3 + $0x10] sm:$0xff] }
 0x3ab   : > { %3304 = vst.msk [vmem:[#allocation3 + $0x18] sm:$0xff] %vm381_vm1, %v3272_v58  ;;  %4160 = vmatmul.msk.bf16.vlgmr.msra.gmra.mxu2 %vm381_vm1, %v3469_v16  ;;  %v3371_v22 = vmul.f32 %v5596_v9, %v3335_v3 }
 0x3ac   : > { %v2600_v34 = vpop.f32.mrf.mxu3 }
 0x3ad   : > { %v2703_v51 = vadd.f32 %v2671_v28, %v2600_v34  ;;  %v3407_v56 = vadd.f32 %v5604_v40, %v3371_v22  ;;  %v2675_v28 = vld [vmem:[#allocation3 + $0x50] sm:$0xff] }
 0x3ae   : > { %v2956_v54 = vld [vmem:[#allocation3 + $0x28] sm:$0xff] }
 0x3af   : > { %v2988_v6 = vadd.f32 %v2956_v54, %v5347_v14  ;;  %2735 = vst.msk [vmem:[#allocation3 + $0x30] sm:$0xff] %vm381_vm1, %v2703_v51  ;;  %v2500_v14 = vld [vmem:[#allocation2 + $0x158] sm:$0xff]  ;;  %v3439_v36 = vmax.f32 %v3407_v56, 0.0  ;;  %v5652_v29 = vpop.f32.mrf.mxu0  ;;  %v5669_v51 = vpop.f32.mrf.mxu1 }
 0x3b0   : > { %v3241_v0 = vld [vmem:[#allocation3 + $0x20] sm:$0xff] }
 0x3b1   : > { %v3273_v60 = vadd.f32 %v3241_v0, %v5513_v57  ;;  %3020 = vst.msk [vmem:[#allocation3 + $0x28] sm:$0xff] %vm381_vm1, %v2988_v6  ;;  %v2519_v57 = vpack.c.bf16 %v2500_v14, %v2499_v49  ;;  %v2503_v14 = vld [vmem:[#allocation2 + $0x180] sm:$0xff] }
 0x3b2   : > { %v3336_v23 = vld [vmem:[#allocation3 + $0x18] sm:$0xff] }
 0x3b3   : > { %3305 = vst.msk [vmem:[#allocation3 + $0x20] sm:$0xff] %vm381_vm1, %v3273_v60  ;;  %v3372_v17 = vmul.f32 %v5596_v9, %v3336_v23 }
 0x3b4   : > { %v2602_v15 = vpop.f32.mrf.mxu3 }
 0x3b5   : > { %v2704_v11 = vadd.f32 %v2672_v32, %v2602_v15  ;;  %v3408_v59 = vadd.f32 %v5604_v40, %v3372_v17  ;;  %v2791_v15 = vld [vmem:[#allocation2 + $0x199] sm:$0xff]  ;;  %v2792_v32 = vld [vmem:[#allocation2 + $0x1a1] sm:$0xff] }
 0x3b6   : > { %v2957_v13 = vld [vmem:[#allocation3 + $0x30] sm:$0xff] }
 0x3b7   : > { %v2989_v4 = vadd.f32 %v2957_v13, %v5564_v27  ;;  %2736 = vst.msk [vmem:[#allocation3 + $0x38] sm:$0xff] %vm381_vm1, %v2704_v11  ;;  %v3440_v48 = vmax.f32 %v3408_v59, 0.0  ;;  %v5667_v3 = vpop.f32.mrf.mxu0  ;;  %v2504_v11 = vld [vmem:[#allocation2 + $0x188] sm:$0xff]  ;;  %v2808_v59 = vpack.c.bf16 %v2792_v32, %v2791_v15 }
 0x3b8   : > { %v3242_v43 = vld [vmem:[#allocation3 + $0x28] sm:$0xff] }
 0x3b9   : > { %v3274_v37 = vadd.f32 %v3242_v43, %v5523_v62  ;;  %3021 = vst.msk [vmem:[#allocation3 + $0x30] sm:$0xff] %vm381_vm1, %v2989_v4  ;;  %4122 = vmatmul.msk.bf16.gmra.mxu3 %vm381_vm1, %v2519_v57  ;;  %v3470_v8 = vpack.c.bf16 %v3440_v48, %v3439_v36  ;;  %4142 = vmatmul.msk.bf16.gmra.mxu0 %vm381_vm1, %v2808_v59  ;;  %v5683_v36 = vpop.f32.mrf.mxu1 }
 0x3ba   : > { %v3337_v5 = vld [vmem:[#allocation3 + $0x20] sm:$0xff]  ;;  %v2521_v43 = vpack.c.bf16 %v2504_v11, %v2503_v14  ;;  %v2680_v11 = vld [vmem:[#allocation3 + $0x78] sm:$0xff] }
 0x3bb   : > { %3306 = vst.msk [vmem:[#allocation3 + $0x28] sm:$0xff] %vm381_vm1, %v3274_v37  ;;  %4161 = vmatmul.msk.bf16.gmra.mxu2 %vm381_vm1, %v3470_v8  ;;  %v3373_v62 = vmul.f32 %v5596_v9, %v3337_v5 }
 0x3bc   : > { %v2605_v27 = vpop.f32.mrf.mxu3 }
 0x3bd   : > { %v2705_v1 = vadd.f32 %v2673_v12, %v2605_v27 }
 0x3be   : > { %v2958_v19 = vld [vmem:[#allocation3 + $0x38] sm:$0xff] }
 0x3bf   : > { %v2990_v24 = vadd.f32 %v2958_v19, %v5575_v39  ;;  %2737 = vst.msk [vmem:[#allocation3 + $0x40] sm:$0xff] %vm381_vm1, %v2705_v1  ;;  %v3409_v39 = vadd.f32 %v5604_v40, %v3373_v62  ;;  %v5681_v57 = vpop.f32.mrf.mxu0  ;;  %v2677_v19 = vld [vmem:[#allocation3 + $0x60] sm:$0xff]  ;;  %v3077_v62 = vld [vmem:[#allocation2 + $0x19a] sm:$0xff] }
 0x3c0   : > { %v3243_v42 = vld [vmem:[#allocation3 + $0x30] sm:$0xff] }
 0x3c1   : > { %v3275_v33 = vadd.f32 %v3243_v42, %v5577_v44  ;;  %3022 = vst.msk [vmem:[#allocation3 + $0x38] sm:$0xff] %vm381_vm1, %v2990_v24  ;;  %v3441_v2 = vmax.f32 %v3409_v39, 0.0  ;;  %v3078_v42 = vld [vmem:[#allocation2 + $0x1a2] sm:$0xff] }
 0x3c2   : > { %v3338_v55 = vld [vmem:[#allocation3 + $0x28] sm:$0xff] }
 0x3c3   : > { %3307 = vst.msk [vmem:[#allocation3 + $0x30] sm:$0xff] %vm381_vm1, %v3275_v33  ;;  %v3374_v38 = vmul.f32 %v5596_v9, %v3338_v55  ;;  %v3094_v55 = vpack.c.bf16 %v3078_v42, %v3077_v62 }
 0x3c4   : > { %v2607_v63 = vpop.f32.mrf.mxu3 }
 0x3c5   : > { %v2706_v26 = vadd.f32 %v2674_v7, %v2607_v63  ;;  %v3410_v44 = vadd.f32 %v5604_v40, %v3374_v38  ;;  %4159 = vmatmul.msk.bf16.gmra.mxu1 %vm381_vm1, %v3094_v55  ;;  %v5698_v7 = vpop.f32.mrf.mxu1 }
 0x3c6   : > { %v2959_v30 = vld [vmem:[#allocation3 + $0x40] sm:$0xff] }
 0x3c7   : > { %v2991_v50 = vadd.f32 %v2959_v30, %v5588_v53  ;;  %2738 = vst.msk [vmem:[#allocation3 + $0x48] sm:$0xff] %vm381_vm1, %v2706_v26  ;;  %v3442_v45 = vmax.f32 %v3410_v44, 0.0  ;;  %v5696_v63 = vpop.f32.mrf.mxu0  ;;  %v2506_v26 = vld [vmem:[#allocation2 + $0x1a0] sm:$0xff] }
 0x3c8   : > { %v3244_v18 = vld [vmem:[#allocation3 + $0x38] sm:$0xff] }
 0x3c9   : > { %v3276_v58 = vadd.f32 %v3244_v18, %v5590_v25  ;;  %3023 = vst.msk [vmem:[#allocation3 + $0x40] sm:$0xff] %vm381_vm1, %v2991_v50  ;;  %4123 = vmatmul.msk.bf16.gmra.mxu3 %vm381_vm1, %v2520_v41  ;;  %v3471_v16 = vpack.c.bf16 %v3442_v45, %v3441_v2  ;;  %v2678_v41 = vld [vmem:[#allocation3 + $0x68] sm:$0xff]  ;;  %v2522_v45 = vpack.c.bf16 %v2506_v26, %v2505_v46 }
 0x3ca   : > { %v3339_v53 = vld [vmem:[#allocation3 + $0x30] sm:$0xff] }
 0x3cb   : > { %3308 = vst.msk [vmem:[#allocation3 + $0x38] sm:$0xff] %vm381_vm1, %v3276_v58  ;;  %4162 = vmatmul.msk.bf16.gmra.mxu2 %vm381_vm1, %v3471_v16  ;;  %v3375_v22 = vmul.f32 %v5596_v9, %v3339_v53 }
 0x3cc   : > { %v2610_v34 = vpop.f32.mrf.mxu3 }
 0x3cd   : > { %v2707_v54 = vadd.f32 %v2675_v28, %v2610_v34  ;;  %v3411_v56 = vadd.f32 %v5604_v40, %v3375_v22  ;;  %v2679_v22 = vld [vmem:[#allocation3 + $0x70] sm:$0xff] }
 0x3ce   : > { %v2960_v6 = vld [vmem:[#allocation3 + $0x48] sm:$0xff] }
 0x3cf   : > { %v2992_v25 = vadd.f32 %v2960_v6, %v5611_v35  ;;  %2739 = vst.msk [vmem:[#allocation3 + $0x50] sm:$0xff] %vm381_vm1, %v2707_v54  ;;  %v2676_v35 = vld [vmem:[#allocation3 + $0x58] sm:$0xff]  ;;  %v3443_v37 = vmax.f32 %v3411_v56, 0.0  ;;  %v2911_v6 = vpop.f32.mrf.mxu0 }
 0x3d0   : > { %v3245_v0 = vld [vmem:[#allocation3 + $0x40] sm:$0xff] }
 0x3d1   : > { %v3277_v60 = vadd.f32 %v3245_v0, %v5613_v20  ;;  %3024 = vst.msk [vmem:[#allocation3 + $0x48] sm:$0xff] %vm381_vm1, %v2992_v25  ;;  %v5711_v25 = vpop.f32.mrf.mxu1 }
 0x3d2   : > { %v3340_v23 = vld [vmem:[#allocation3 + $0x38] sm:$0xff] }
 0x3d3   : > { %3309 = vst.msk [vmem:[#allocation3 + $0x40] sm:$0xff] %vm381_vm1, %v3277_v60  ;;  %v3376_v17 = vmul.f32 %v5596_v9, %v3340_v23 }
 0x3d4   : > { %v2612_v49 = vpop.f32.mrf.mxu3 }
 0x3d5   : > { %v2708_v13 = vadd.f32 %v2676_v35, %v2612_v49  ;;  %v3412_v4 = vadd.f32 %v5604_v40, %v3376_v17 }
 0x3d6   : > { %v2961_v20 = vld [vmem:[#allocation3 + $0x50] sm:$0xff] }
 0x3d7   : > { %v2993_v48 = vadd.f32 %v2961_v20, %v5623_v31  ;;  %2740 = vst.msk [vmem:[#allocation3 + $0x58] sm:$0xff] %vm381_vm1, %v2708_v13  ;;  %v3444_v8 = vmax.f32 %v3412_v4, 0.0  ;;  %v2913_v59 = vpop.f32.mrf.mxu0 }
 0x3d8   : > { %v3246_v27 = vld [vmem:[#allocation3 + $0x48] sm:$0xff] }
 0x3d9   : > { %v3278_v12 = vadd.f32 %v3246_v27, %v5625_v52  ;;  %3025 = vst.msk [vmem:[#allocation3 + $0x50] sm:$0xff] %vm381_vm1, %v2993_v48  ;;  %4124 = vmatmul.msk.bf16.gmra.mxu3 %vm381_vm1, %v2521_v43  ;;  %v3472_v5 = vpack.c.bf16 %v3444_v8, %v3443_v37 }
 0x3da   : > { %v3341_v31 = vld [vmem:[#allocation3 + $0x40] sm:$0xff] }
 0x3db   : > { %3310 = vst.msk [vmem:[#allocation3 + $0x48] sm:$0xff] %vm381_vm1, %v3278_v12  ;;  %4163 = vmatmul.msk.bf16.gmra.mxu2 %vm381_vm1, %v3472_v5  ;;  %v3377_v52 = vmul.f32 %v5596_v9, %v3341_v31  ;;  %v2681_v5 = vld [vmem:[#allocation3 + $0x80] sm:$0xff] }
 0x3dc   : > { %v2615_v1 = vpop.f32.mrf.mxu3 }
 0x3dd   : > { %v2709_v24 = vadd.f32 %v2677_v19, %v2615_v1  ;;  %v3413_v30 = vadd.f32 %v5604_v40, %v3377_v52 }
 0x3de   : > { %v2962_v33 = vld [vmem:[#allocation3 + $0x58] sm:$0xff] }
 0x3df   : > { %v2994_v38 = vadd.f32 %v2962_v33, %v5638_v61  ;;  %2741 = vst.msk [vmem:[#allocation3 + $0x60] sm:$0xff] %vm381_vm1, %v2709_v24  ;;  %v3445_v16 = vmax.f32 %v3413_v30, 0.0 }
 0x3e0   : > { %v3247_v39 = vld [vmem:[#allocation3 + $0x50] sm:$0xff] }
 0x3e1   : > { %v3279_v47 = vadd.f32 %v3247_v39, %v5640_v21  ;;  %3026 = vst.msk [vmem:[#allocation3 + $0x58] sm:$0xff] %vm381_vm1, %v2994_v38 }
 0x3e2   : > { %v3342_v44 = vld [vmem:[#allocation3 + $0x48] sm:$0xff] }
 0x3e3   : > { %3311 = vst.msk [vmem:[#allocation3 + $0x50] sm:$0xff] %vm381_vm1, %v3279_v47  ;;  %v3378_v61 = vmul.f32 %v5596_v9, %v3342_v44  ;;  %v2682_v47 = vld [vmem:[#allocation3 + $0x88] sm:$0xff] }
 0x3e4   : > { %v2617_v50 = vpop.f32.mrf.mxu3 }
 0x3e5   : > { %v2710_v2 = vadd.f32 %v2678_v41, %v2617_v50  ;;  %v3414_v18 = vadd.f32 %v5604_v40, %v3378_v61 }
 0x3e6   : > { %v2963_v58 = vld [vmem:[#allocation3 + $0x60] sm:$0xff] }
 0x3e7   : > { %v2995_v21 = vadd.f32 %v2963_v58, %v5652_v29  ;;  %2742 = vst.msk [vmem:[#allocation3 + $0x68] sm:$0xff] %vm381_vm1, %v2710_v2  ;;  %v3446_v34 = vmax.f32 %v3414_v18, 0.0  ;;  %v2683_v58 = vld [vmem:[#allocation3 + $0x90] sm:$0xff] }
 0x3e8   : > { %v3248_v28 = vld [vmem:[#allocation3 + $0x58] sm:$0xff] }
 0x3e9   : > { %v3280_v53 = vadd.f32 %v3248_v28, %v5654_v10  ;;  %3027 = vst.msk [vmem:[#allocation3 + $0x60] sm:$0xff] %vm381_vm1, %v2995_v21  ;;  %4125 = vmatmul.msk.bf16.gmra.mxu3 %vm381_vm1, %v2522_v45  ;;  %v3473_v54 = vpack.c.bf16 %v3446_v34, %v3445_v16 }
 0x3ea   : > { %v3343_v0 = vld [vmem:[#allocation3 + $0x50] sm:$0xff] }
 0x3eb   : > { %3312 = vst.msk [vmem:[#allocation3 + $0x58] sm:$0xff] %vm381_vm1, %v3280_v53  ;;  %4164 = vmatmul.msk.bf16.gmra.mxu2 %vm381_vm1, %v3473_v54  ;;  %v3379_v10 = vmul.f32 %v5596_v9, %v3343_v0 }
 0x3ec   : > { %v2620_v29 = vpop.f32.mrf.mxu3 }
 0x3ed   : > { %v2711_v60 = vadd.f32 %v2679_v22, %v2620_v29  ;;  %v3415_v35 = vadd.f32 %v5604_v40, %v3379_v10 }
 0x3ee   : > { %v2964_v23 = vld [vmem:[#allocation3 + $0x68] sm:$0xff] }
 0x3ef   : > { %v2996_v17 = vadd.f32 %v2964_v23, %v5667_v3  ;;  %2743 = vst.msk [vmem:[#allocation3 + $0x70] sm:$0xff] %vm381_vm1, %v2711_v60  ;;  %v3197_v3 = vpop.f32.mrf.mxu1 }
 0x3f0   : > { %v3249_v56 = vld [vmem:[#allocation3 + $0x60] sm:$0xff] }
 0x3f1   : > { %v3281_v15 = vadd.f32 %v3249_v56, %v5669_v51  ;;  %3028 = vst.msk [vmem:[#allocation3 + $0x68] sm:$0xff] %vm381_vm1, %v2996_v17  ;;  %v3447_v51 = vmax.f32 %v3415_v35, 0.0  ;;  %v2684_v17 = vld [vmem:[#allocation3 + $0x98] sm:$0xff] }
 0x3f2   : > { %v3344_v32 = vld [vmem:[#allocation3 + $0x58] sm:$0xff] }
 0x3f3   : > { %3313 = vst.msk [vmem:[#allocation3 + $0x60] sm:$0xff] %vm381_vm1, %v3281_v15  ;;  %v3380_v49 = vmul.f32 %v5596_v9, %v3344_v32 }
 0x3f4   : > { %v2622_v14 = vpop.f32.mrf.mxu3 }
 0x3f5   : > { %v2712_v13 = vadd.f32 %v2680_v11, %v2622_v14  ;;  %v3416_v4 = vadd.f32 %v5604_v40, %v3380_v49 }
 0x3f6   : > { %v2965_v20 = vld [vmem:[#allocation3 + $0x70] sm:$0xff] }
 0x3f7   : > { %v2997_v48 = vadd.f32 %v2965_v20, %v5681_v57  ;;  %2744 = vst.msk [vmem:[#allocation3 + $0x78] sm:$0xff] %vm381_vm1, %v2712_v13  ;;  %v3448_v43 = vmax.f32 %v3416_v4, 0.0  ;;  %v2916_v57 = vpop.f32.mrf.mxu0  ;;  %v3199_v24 = vpop.f32.mrf.mxu1  ;;  %v2685_v13 = vld [vmem:[#allocation3 + $0xa0] sm:$0xff] }
 0x3f8   : > { %v3250_v37 = vld [vmem:[#allocation3 + $0x68] sm:$0xff] }
 0x3f9   : > { %v3282_v8 = vadd.f32 %v3250_v37, %v5683_v36  ;;  %3029 = vst.msk [vmem:[#allocation3 + $0x70] sm:$0xff] %vm381_vm1, %v2997_v48  ;;  %v3474_v27 = vpack.c.bf16 %v3448_v43, %v3447_v51 }
 0x3fa   : > { %v3345_v1 = vld [vmem:[#allocation3 + $0x60] sm:$0xff] }
 0x3fb   : > { %3314 = vst.msk [vmem:[#allocation3 + $0x68] sm:$0xff] %vm381_vm1, %v3282_v8  ;;  %4165 = vmatmul.msk.bf16.gmra.mxu2 %vm381_vm1, %v3474_v27  ;;  %v3381_v36 = vmul.f32 %v5596_v9, %v3345_v1 }
 0x3fc   : > { %v2625_v12 = vpop.f32.mrf.mxu3 }
 0x3fd   : > { %v2713_v19 = vadd.f32 %v2681_v5, %v2625_v12  ;;  %v3417_v52 = vadd.f32 %v5604_v40, %v3381_v36 }
 0x3fe   : > { %v2966_v31 = vld [vmem:[#allocation3 + $0x78] sm:$0xff] }
 0x3ff   : > { %v2998_v62 = vadd.f32 %v2966_v31, %v5696_v63  ;;  %2745 = vst.msk [vmem:[#allocation3 + $0x80] sm:$0xff] %vm381_vm1, %v2713_v19  ;;  %v3449_v61 = vmax.f32 %v3417_v52, 0.0  ;;  %v2918_v50 = vpop.f32.mrf.mxu0  ;;  %v3202_v41 = vpop.f32.mrf.mxu1 }
 0x400   : > { %v3251_v42 = vld [vmem:[#allocation3 + $0x70] sm:$0xff] }
 0x401   : > { %v3283_v33 = vadd.f32 %v3251_v42, %v5698_v7  ;;  %3030 = vst.msk [vmem:[#allocation3 + $0x78] sm:$0xff] %vm381_vm1, %v2998_v62 }
 0x402   : > { %v3346_v55 = vld [vmem:[#allocation3 + $0x68] sm:$0xff] }
 0x403   : > { %3315 = vst.msk [vmem:[#allocation3 + $0x70] sm:$0xff] %vm381_vm1, %v3283_v33  ;;  %v3382_v38 = vmul.f32 %v5596_v9, %v3346_v55 }
 0x404   : > { %v2627_v39 = vpop.f32.mrf.mxu3 }
 0x405   : > { %v2714_v46 = vadd.f32 %v2682_v47, %v2627_v39  ;;  %v3418_v63 = vadd.f32 %v5604_v40, %v3382_v38 }
 0x406   : > { %v2967_v26 = vld [vmem:[#allocation3 + $0x80] sm:$0xff] }
 0x407   : > { %v2999_v44 = vadd.f32 %v2967_v26, %v2911_v6  ;;  %2746 = vst.msk [vmem:[#allocation3 + $0x88] sm:$0xff] %vm381_vm1, %v2714_v46  ;;  %v3450_v7 = vmax.f32 %v3418_v63, 0.0  ;;  %v2921_v29 = vpop.f32.mrf.mxu0  ;;  %v3204_v22 = vpop.f32.mrf.mxu1  ;;  %v5769_v63 = vld [vmem:[%s6043_s8] ss:$0 sm:$0xff] }
 0x408   : > { %v3252_v30 = vld [vmem:[#allocation3 + $0x78] sm:$0xff] }
 0x409   : > { %v3284_v2 = vadd.f32 %v3252_v30, %v5711_v25  ;;  %3031 = vst.msk [vmem:[#allocation3 + $0x80] sm:$0xff] %vm381_vm1, %v2999_v44  ;;  %v3475_v45 = vpack.c.bf16 %v3450_v7, %v3449_v61  ;;  %v2687_v44 = vld [vmem:[#allocation3 + $0xb0] sm:$0xff]  ;;  %v427_v61 = vld [vmem:[%s4510_s28] sm:$0xff]  }
 0x40a   : > { %v3347_v21 = vld [vmem:[#allocation3 + $0x70] sm:$0xff] }
 0x40b   : > { %3316 = vst.msk [vmem:[#allocation3 + $0x78] sm:$0xff] %vm381_vm1, %v3284_v2  ;;  %4166 = vmatmul.msk.bf16.gmra.mxu2 %vm381_vm1, %v3475_v45  ;;  %v3383_v53 = vmul.f32 %v5596_v9, %v3347_v21 }
 0x40c   : > { %v2630_v18 = vpop.f32.mrf.mxu3 }
 0x40d   : > { %v2715_v16 = vadd.f32 %v2683_v58, %v2630_v18  ;;  %v3419_v60 = vadd.f32 %v5604_v40, %v3383_v53  ;;  %v3698_v58 = vunpack.c.l.bf16 %v427_v61 }
 0x40e   : > { %v2968_v34 = vld [vmem:[#allocation3 + $0x88] sm:$0xff] }
 0x40f   : > { %v3000_v28 = vadd.f32 %v2968_v34, %v2913_v59  ;;  %2747 = vst.msk [vmem:[#allocation3 + $0x90] sm:$0xff] %vm381_vm1, %v2715_v16  ;;  %v3451_v49 = vmax.f32 %v3419_v60, 0.0  ;;  %v2923_v20 = vpop.f32.mrf.mxu0  ;;  %v3207_v48 = vpop.f32.mrf.mxu1  ;;  %v2688_v60 = vld [vmem:[#allocation3 + $0xb8] sm:$0xff] }
 0x410   : > { %v3253_v54 = vld [vmem:[#allocation3 + $0x80] sm:$0xff] }
 0x411   : > { %v3285_v6 = vadd.f32 %v3253_v54, %v3197_v3  ;;  %3032 = vst.msk [vmem:[#allocation3 + $0x88] sm:$0xff] %vm381_vm1, %v3000_v28 }
 0x412   : > { %v3348_v25 = vld [vmem:[#allocation3 + $0x78] sm:$0xff] }
 0x413   : > { %3317 = vst.msk [vmem:[#allocation3 + $0x80] sm:$0xff] %vm381_vm1, %v3285_v6  ;;  %v3384_v0 = vmul.f32 %v5596_v9, %v3348_v25 }
 0x414   : > { %v2632_v23 = vpop.f32.mrf.mxu3 }
 0x415   : > { %v2716_v10 = vadd.f32 %v2684_v17, %v2632_v23  ;;  %v3420_v56 = vadd.f32 %v5604_v40, %v3384_v0 }
 0x416   : > { %v2969_v15 = vld [vmem:[#allocation3 + $0x90] sm:$0xff] }
 0x417   : > { %v3001_v32 = vadd.f32 %v2969_v15, %v2916_v57  ;;  %2748 = vst.msk [vmem:[#allocation3 + $0x98] sm:$0xff] %vm381_vm1, %v2716_v10  ;;  %v3452_v35 = vmax.f32 %v3420_v56, 0.0  ;;  %v2686_v57 = vld [vmem:[#allocation3 + $0xa8] sm:$0xff]  ;;  %v2926_v42 = vpop.f32.mrf.mxu0  ;;  %v3209_v33 = vpop.f32.mrf.mxu1 }
 0x418   : > { %v3254_v14 = vld [vmem:[#allocation3 + $0x88] sm:$0xff] }
 0x419   : > { %v3286_v11 = vadd.f32 %v3254_v14, %v3199_v24  ;;  %3033 = vst.msk [vmem:[#allocation3 + $0x90] sm:$0xff] %vm381_vm1, %v3001_v32  ;;  %v3476_v59 = vpack.c.bf16 %v3452_v35, %v3451_v49  ;;  %v3699_v32 = vunpack.c.h.bf16 %v427_v61 }
 0x41a   : > { %v3349_v4 = vld [vmem:[#allocation3 + $0x80] sm:$0xff] }
 0x41b   : > { %3318 = vst.msk [vmem:[#allocation3 + $0x88] sm:$0xff] %vm381_vm1, %v3286_v11  ;;  %4167 = vmatmul.msk.bf16.gmra.mxu2 %vm381_vm1, %v3476_v59  ;;  %v3385_v8 = vmul.f32 %v5596_v9, %v3349_v4 }
 0x41c   : > { %v2635_v3 = vpop.f32.mrf.mxu3 }
 0x41d   : > { %v2717_v51 = vadd.f32 %v2685_v13, %v2635_v3  ;;  %v3421_v19 = vadd.f32 %v5604_v40, %v3385_v8  ;;  %v429_v8 = vld [vmem:[%s4510_s28 + $0x8] sm:$0xff]  }
 0x41e   : > { %v2970_v43 = vld [vmem:[#allocation3 + $0x98] sm:$0xff] }
 0x41f   : > { %v3002_v37 = vadd.f32 %v2970_v43, %v2918_v50  ;;  %2749 = vst.msk [vmem:[#allocation3 + $0xa0] sm:$0xff] %vm381_vm1, %v2717_v51  ;;  %v3453_v38 = vmax.f32 %v3421_v19, 0.0  ;;  %v5775_v50 = vld [vmem:[%s6044_s9] ss:$0 sm:$0xff]  ;;  %v2928_v34 = vpop.f32.mrf.mxu0  ;;  %v3212_v28 = vpop.f32.mrf.mxu1 }
 0x420   : > { %v3255_v27 = vld [vmem:[#allocation3 + $0x90] sm:$0xff] }
 0x421   : > { %v3287_v12 = vadd.f32 %v3255_v27, %v3202_v41  ;;  %3034 = vst.msk [vmem:[#allocation3 + $0x98] sm:$0xff] %vm381_vm1, %v3002_v37  ;;  %v2689_v37 = vld [vmem:[#allocation3 + $0xc0] sm:$0xff] }
 0x422   : > { %v3350_v5 = vld [vmem:[#allocation3 + $0x88] sm:$0xff] }
 0x423   : > { %3319 = vst.msk [vmem:[#allocation3 + $0x90] sm:$0xff] %vm381_vm1, %v3287_v12  ;;  %v3386_v1 = vmul.f32 %v5596_v9, %v3350_v5 }
 0x424   : > { %v2637_v31 = vpop.f32.mrf.mxu3 }
 0x425   : > { %v2718_v24 = vadd.f32 %v2686_v57, %v2637_v31  ;;  %v3422_v62 = vadd.f32 %v5604_v40, %v3386_v1  ;;  %v3700_v57 = vunpack.c.l.bf16 %v429_v8 }
 0x426   : > { %v2971_v36 = vld [vmem:[#allocation3 + $0xa0] sm:$0xff] }
 0x427   : > { %v3003_v55 = vadd.f32 %v2971_v36, %v2921_v29  ;;  %2750 = vst.msk [vmem:[#allocation3 + $0xa8] sm:$0xff] %vm381_vm1, %v2718_v24  ;;  %v3454_v52 = vmax.f32 %v3422_v62, 0.0 }
 0x428   : > { %v3256_v39 = vld [vmem:[#allocation3 + $0x98] sm:$0xff] }
 0x429   : > { %v3288_v47 = vadd.f32 %v3256_v39, %v3204_v22  ;;  %3035 = vst.msk [vmem:[#allocation3 + $0xa0] sm:$0xff] %vm381_vm1, %v3003_v55  ;;  %v3477_v46 = vpack.c.bf16 %v3454_v52, %v3453_v38 }
 0x42a   : > { %v3351_v7 = vld [vmem:[#allocation3 + $0x90] sm:$0xff] }
 0x42b   : > { %3320 = vst.msk [vmem:[#allocation3 + $0x98] sm:$0xff] %vm381_vm1, %v3288_v47  ;;  %4168 = vmatmul.msk.bf16.gmra.mxu2 %vm381_vm1, %v3477_v46  ;;  %v3387_v21 = vmul.f32 %v5596_v9, %v3351_v7  ;;  %v2690_v46 = vld [vmem:[#allocation3 + $0xc8] sm:$0xff] }
 0x42c   : > { %v2640_v26 = vpop.f32.mrf.mxu3 }
 0x42d   : > { %v2719_v30 = vadd.f32 %v2687_v44, %v2640_v26  ;;  %v3423_v22 = vadd.f32 %v5604_v40, %v3387_v21 }
 0x42e   : > { %v2972_v41 = vld [vmem:[#allocation3 + $0xa8] sm:$0xff]  ;;  %v3546_v2 = vpop.f32.mrf.mxu2 }
 0x42f   : > { %v3004_v45 = vadd.f32 %v2972_v41, %v2923_v20  ;;  %2751 = vst.msk [vmem:[#allocation3 + $0xb0] sm:$0xff] %vm381_vm1, %v2719_v30  ;;  %v3630_v18 = vmul.f32 %v5769_v63, %v3546_v2  ;;  %v3455_v14 = vmax.f32 %v3423_v22, 0.0  ;;  %v2931_v20 = vpop.f32.mrf.mxu0  ;;  %v431_v22 = vld [vmem:[%s4510_s28 + $0x10] sm:$0xff]  }
 0x430   : > { %v3257_v16 = vld [vmem:[#allocation3 + $0xa0] sm:$0xff] }
 0x431   : > { %v3289_v53 = vadd.f32 %v3257_v16, %v3207_v48  ;;  %3036 = vst.msk [vmem:[#allocation3 + $0xa8] sm:$0xff] %vm381_vm1, %v3004_v45  ;;  %v3666_v54 = vadd.f32 %v5775_v50, %v3630_v18  ;;  %v3214_v48 = vpop.f32.mrf.mxu1  ;;  %v3701_v18 = vunpack.c.h.bf16 %v429_v8 }
 0x432   : > { %v3352_v6 = vld [vmem:[#allocation3 + $0x98] sm:$0xff] }
 0x433   : > { %3321 = vst.msk [vmem:[#allocation3 + $0xa0] sm:$0xff] %vm381_vm1, %v3289_v53  ;;  %v3730_v25 = vadd.f32 %v3698_v58, %v3666_v54  ;;  %v3388_v29 = vmul.f32 %v5596_v9, %v3352_v6 }
 0x434   : > { %v2642_v0 = vpop.f32.mrf.mxu3 }
 0x435   : > { %v3762_v23 = vmax.f32 %v3730_v25, 0.0  ;;  %v2720_v17 = vadd.f32 %v2688_v60, %v2642_v0  ;;  %v3424_v10 = vadd.f32 %v5604_v40, %v3388_v29  ;;  %v2691_v29 = vld [vmem:[#allocation3 + $0xd0] sm:$0xff] }
 0x436   : > { %v2973_v56 = vld [vmem:[#allocation3 + $0xb0] sm:$0xff]  ;;  %v3548_v15 = vpop.f32.mrf.mxu2 }
 0x437   : > { %v3005_v49 = vadd.f32 %v2973_v56, %v2926_v42  ;;  %3794 = vst.msk [vmem:[%s5787_s27] sm:$0xff] %vm547_vm0, %v3762_v23  ;;  %v3631_v35 = vmul.f32 %v5769_v63, %v3548_v15  ;;  %v3456_v11 = vmax.f32 %v3424_v10, 0.0  ;;  %v2933_v26 = vpop.f32.mrf.mxu0 }
 0x438   : > { %v3258_v59 = vld [vmem:[#allocation3 + $0xa8] sm:$0xff]  ;;  %2752 = vst.msk [vmem:[#allocation3 + $0xb8] sm:$0xff] %vm381_vm1, %v2720_v17 }
 0x439   : > { %v3290_v3 = vadd.f32 %v3258_v59, %v3209_v33  ;;  %3037 = vst.msk [vmem:[#allocation3 + $0xb0] sm:$0xff] %vm381_vm1, %v3005_v49  ;;  %v3667_v13 = vadd.f32 %v5775_v50, %v3631_v35  ;;  %v3478_v4 = vpack.c.bf16 %v3456_v11, %v3455_v14  ;;  %v3217_v44 = vpop.f32.mrf.mxu1  ;;  %v3702_v49 = vunpack.c.l.bf16 %v431_v22 }
 0x43a   : > { %v3353_v27 = vld [vmem:[#allocation3 + $0xa0] sm:$0xff] }
 0x43b   : > { %3322 = vst.msk [vmem:[#allocation3 + $0xa8] sm:$0xff] %vm381_vm1, %v3290_v3  ;;  %v3731_v51 = vadd.f32 %v3699_v32, %v3667_v13  ;;  %4169 = vmatmul.msk.bf16.gmra.mxu2 %vm381_vm1, %v3478_v4  ;;  %v3389_v24 = vmul.f32 %v5596_v9, %v3353_v27 }
 0x43c   : > { %v2645_v43 = vpop.f32.mrf.mxu3 }
 0x43d   : > { %v3763_v12 = vmax.f32 %v3731_v51, 0.0  ;;  %v2721_v5 = vadd.f32 %v2689_v37, %v2645_v43  ;;  %v3425_v39 = vadd.f32 %v5604_v40, %v3389_v24 }
 0x43e   : > { %v3551_v1 = vpop.f32.mrf.mxu2 }
 0x43f   : > { %v2974_v19 = vld [vmem:[#allocation3 + $0xb8] sm:$0xff]  ;;  %3795 = vst.msk [vmem:[%s5787_s27 + $0x8] sm:$0xff] %vm547_vm0, %v3763_v12  ;;  %v3632_v31 = vmul.f32 %v5769_v63, %v3551_v1  ;;  %v3457_v58 = vmax.f32 %v3425_v39, 0.0  ;;  %v2936_v10 = vpop.f32.mrf.mxu0 }
 0x440   : > { %v3259_v62 = vld [vmem:[#allocation3 + $0xb0] sm:$0xff]  ;;  %v3006_v36 = vadd.f32 %v2974_v19, %v2928_v34  ;;  %2753 = vst.msk [vmem:[#allocation3 + $0xc0] sm:$0xff] %vm381_vm1, %v2721_v5  ;;  %v3703_v19 = vunpack.c.h.bf16 %v431_v22 }
 0x441   : > { %v3291_v42 = vadd.f32 %v3259_v62, %v3212_v28  ;;  %v3668_v33 = vadd.f32 %v5775_v50, %v3632_v31  ;;  %v3219_v56 = vpop.f32.mrf.mxu1 }
 0x442   : > { %3038 = vst.msk [vmem:[#allocation3 + $0xb8] sm:$0xff] %vm381_vm1, %v3006_v36  ;;  %v3354_v55 = vld [vmem:[#allocation3 + $0xa8] sm:$0xff] }
 0x443   : > { %3323 = vst.msk [vmem:[#allocation3 + $0xb0] sm:$0xff] %vm381_vm1, %v3291_v42  ;;  %v3732_v38 = vadd.f32 %v3700_v57, %v3668_v33  ;;  %v3390_v52 = vmul.f32 %v5596_v9, %v3354_v55 }
 0x444   : > { %v2647_v47 = vpop.f32.mrf.mxu3 }
 0x445   : > { %v3764_v61 = vmax.f32 %v3732_v38, 0.0  ;;  %v2722_v7 = vadd.f32 %v2690_v46, %v2647_v47  ;;  %v3426_v30 = vadd.f32 %v5604_v40, %v3390_v52  ;;  %v2693_v47 = vld [vmem:[#allocation3 + $0xe0] sm:$0xff]  ;;  %v433_v46 = vld [vmem:[%s4510_s28 + $0x18] sm:$0xff]  }
 0x446   : > { %v3553_v41 = vpop.f32.mrf.mxu2 }
 0x447   : > { %v2975_v2 = vld [vmem:[#allocation3 + $0xc0] sm:$0xff]  ;;  %3796 = vst.msk [vmem:[%s5787_s27 + $0x10] sm:$0xff] %vm547_vm0, %v3764_v61  ;;  %v3633_v45 = vmul.f32 %v5769_v63, %v3553_v41  ;;  %v3458_v21 = vmax.f32 %v3426_v30, 0.0  ;;  %v2938_v62 = vpop.f32.mrf.mxu0 }
 0x448   : > { %v3007_v16 = vadd.f32 %v2975_v2, %v2931_v20  ;;  %2754 = vst.msk [vmem:[#allocation3 + $0xc8] sm:$0xff] %vm381_vm1, %v2722_v7  ;;  %v3704_v2 = vunpack.c.l.bf16 %v433_v46 }
 0x449   : > { %v3260_v34 = vld [vmem:[#allocation3 + $0xb8] sm:$0xff]  ;;  %v3669_v28 = vadd.f32 %v5775_v50, %v3633_v45  ;;  %v3479_v53 = vpack.c.bf16 %v3458_v21, %v3457_v58  ;;  %v3222_v36 = vpop.f32.mrf.mxu1 }
 0x44a   : > { %v3292_v54 = vadd.f32 %v3260_v34, %v3214_v48  ;;  %3039 = vst.msk [vmem:[#allocation3 + $0xc0] sm:$0xff] %vm381_vm1, %v3007_v16  ;;  %v3355_v23 = vld [vmem:[#allocation3 + $0xb0] sm:$0xff]  ;;  %v2692_v48 = vld [vmem:[#allocation3 + $0xd8] sm:$0xff] }
 0x44b   : > { %v3733_v6 = vadd.f32 %v3701_v18, %v3669_v28  ;;  %4170 = vmatmul.msk.bf16.gmra.mxu2 %vm381_vm1, %v3479_v53  ;;  %v3391_v14 = vmul.f32 %v5596_v9, %v3355_v23 }
 0x44c   : > { %3324 = vst.msk [vmem:[#allocation3 + $0xb8] sm:$0xff] %vm381_vm1, %v3292_v54  ;;  %v2650_v25 = vpop.f32.mrf.mxu3 }
 0x44d   : > { %v3765_v0 = vmax.f32 %v3733_v6, 0.0  ;;  %v2723_v60 = vadd.f32 %v2691_v29, %v2650_v25  ;;  %v3427_v43 = vadd.f32 %v5604_v40, %v3391_v14  ;;  %v2694_v25 = vld [vmem:[#allocation3 + $0xe8] sm:$0xff] }
 0x44e   : > { %v3556_v17 = vpop.f32.mrf.mxu2 }
 0x44f   : > { %v2976_v15 = vld [vmem:[#allocation3 + $0xc8] sm:$0xff]  ;;  %3797 = vst.msk [vmem:[%s5787_s27 + $0x18] sm:$0xff] %vm547_vm0, %v3765_v0  ;;  %v3634_v32 = vmul.f32 %v5769_v63, %v3556_v17  ;;  %v3459_v57 = vmax.f32 %v3427_v43, 0.0  ;;  %v2941_v34 = vpop.f32.mrf.mxu0 }
 0x450   : > { %v3008_v35 = vadd.f32 %v2976_v15, %v2933_v26  ;;  %2755 = vst.msk [vmem:[#allocation3 + $0xd0] sm:$0xff] %vm381_vm1, %v2723_v60  ;;  %v3705_v15 = vunpack.c.h.bf16 %v433_v46 }
 0x451   : > { %v3261_v11 = vld [vmem:[#allocation3 + $0xc0] sm:$0xff]  ;;  %v3670_v59 = vadd.f32 %v5775_v50, %v3634_v32  ;;  %v3224_v28 = vpop.f32.mrf.mxu1 }
 0x452   : > { %v3293_v3 = vadd.f32 %v3261_v11, %v3217_v44  ;;  %3040 = vst.msk [vmem:[#allocation3 + $0xc8] sm:$0xff] %vm381_vm1, %v3008_v35 }
 0x453   : > { %v3734_v13 = vadd.f32 %v3702_v49, %v3670_v59  ;;  %v3356_v4 = vld [vmem:[#allocation3 + $0xb8] sm:$0xff] }
 0x454   : > { %3325 = vst.msk [vmem:[#allocation3 + $0xc0] sm:$0xff] %vm381_vm1, %v3293_v3  ;;  %v2652_v20 = vpop.f32.mrf.mxu3  ;;  %v3392_v51 = vmul.f32 %v5596_v9, %v3356_v4  ;;  %v435_v4 = vld [vmem:[%s4510_s28 + $0x20] sm:$0xff]  }
 0x455   : > { %v3766_v37 = vmax.f32 %v3734_v13, 0.0  ;;  %v2724_v8 = vadd.f32 %v2692_v48, %v2652_v20  ;;  %v2695_v13 = vld [vmem:[#allocation3 + $0xf0] sm:$0xff] }
 0x456   : > { %v3558_v27 = vpop.f32.mrf.mxu2  ;;  %v3428_v12 = vadd.f32 %v5604_v40, %v3392_v51 }
 0x457   : > { %v2977_v5 = vld [vmem:[#allocation3 + $0xd0] sm:$0xff]  ;;  %3798 = vst.msk [vmem:[%s5787_s27 + $0x20] sm:$0xff] %vm547_vm0, %v3766_v37  ;;  %v3635_v1 = vmul.f32 %v5769_v63, %v3558_v27  ;;  %v2943_v20 = vpop.f32.mrf.mxu0 }
 0x458   : > { %v3009_v31 = vadd.f32 %v2977_v5, %v2936_v10  ;;  %2756 = vst.msk [vmem:[#allocation3 + $0xd8] sm:$0xff] %vm381_vm1, %v2724_v8  ;;  %v3460_v24 = vmax.f32 %v3428_v12, 0.0  ;;  %v3706_v5 = vunpack.c.l.bf16 %v435_v4 }
 0x459   : > { %v3262_v42 = vld [vmem:[#allocation3 + $0xc8] sm:$0xff]  ;;  %v3671_v33 = vadd.f32 %v5775_v50, %v3635_v1  ;;  %v3227_v48 = vpop.f32.mrf.mxu1 }
 0x45a   : > { %v3294_v55 = vadd.f32 %v3262_v42, %v3219_v56  ;;  %3041 = vst.msk [vmem:[#allocation3 + $0xd0] sm:$0xff] %vm381_vm1, %v3009_v31  ;;  %v3480_v38 = vpack.c.bf16 %v3460_v24, %v3459_v57 }
 0x45b   : > { %v3735_v52 = vadd.f32 %v3703_v19, %v3671_v33  ;;  %v3357_v61 = vld [vmem:[#allocation3 + $0xc0] sm:$0xff]  ;;  %v5865_v19 = vld [vmem:[%s6040_s5] ss:$0 sm:$0xff] }
 0x45c   : > { %3326 = vst.msk [vmem:[#allocation3 + $0xc8] sm:$0xff] %vm381_vm1, %v3294_v55  ;;  %4171 = vmatmul.msk.bf16.gmra.mxu2 %vm381_vm1, %v3480_v38  ;;  %v2655_v39 = vpop.f32.mrf.mxu3  ;;  %v3393_v18 = vmul.f32 %v5596_v9, %v3357_v61  ;;  %v2696_v55 = vld [vmem:[#allocation3 + $0xf8] sm:$0xff] }
 0x45d   : > { %v3767_v26 = vmax.f32 %v3735_v52, 0.0  ;;  %v2725_v44 = vadd.f32 %v2693_v47, %v2655_v39  ;;  %v5875_v52 = vld [vmem:[%s6041_s6] ss:$0 sm:$0xff] }
 0x45e   : > { %v3561_v7 = vpop.f32.mrf.mxu2  ;;  %v3429_v22 = vadd.f32 %v5604_v40, %v3393_v18 }
 0x45f   : > { %v2978_v30 = vld [vmem:[#allocation3 + $0xd8] sm:$0xff]  ;;  %3799 = vst.msk [vmem:[%s5787_s27 + $0x28] sm:$0xff] %vm547_vm0, %v3767_v26  ;;  %v3636_v41 = vmul.f32 %v5769_v63, %v3561_v7  ;;  %v2946_v47 = vpop.f32.mrf.mxu0 }
 0x460   : > { %v3010_v45 = vadd.f32 %v2978_v30, %v2938_v62  ;;  %2757 = vst.msk [vmem:[#allocation3 + $0xe0] sm:$0xff] %vm381_vm1, %v2725_v44  ;;  %v3461_v49 = vmax.f32 %v3429_v22, 0.0 }
 0x461   : > { %v3263_v58 = vld [vmem:[#allocation3 + $0xd0] sm:$0xff]  ;;  %v3672_v21 = vadd.f32 %v5775_v50, %v3636_v41  ;;  %v3229_v7 = vpop.f32.mrf.mxu1 }
 0x462   : > { %v3295_v16 = vadd.f32 %v3263_v58, %v3222_v36  ;;  %3042 = vst.msk [vmem:[#allocation3 + $0xd8] sm:$0xff] %vm381_vm1, %v3010_v45 }
 0x463   : > { %v3736_v53 = vadd.f32 %v3704_v2, %v3672_v21  ;;  %v3358_v54 = vld [vmem:[#allocation3 + $0xc8] sm:$0xff]  ;;  %v3707_v2 = vunpack.c.h.bf16 %v435_v4 }
 0x464   : > { %3327 = vst.msk [vmem:[#allocation3 + $0xd0] sm:$0xff] %vm381_vm1, %v3295_v16  ;;  %v2657_v6 = vpop.f32.mrf.mxu3  ;;  %v3394_v29 = vmul.f32 %v5596_v9, %v3358_v54  ;;  %v437_v54 = vld [vmem:[%s4510_s28 + $0x28] sm:$0xff]  }
 0x465   : > { %v3768_v0 = vmax.f32 %v3736_v53, 0.0  ;;  %v2726_v60 = vadd.f32 %v2694_v25, %v2657_v6  ;;  %v3709_v4 = vunpack.c.h.bf16 %v437_v54 }
 0x466   : > { %v3563_v23 = vpop.f32.mrf.mxu2  ;;  %v3430_v17 = vadd.f32 %v5604_v40, %v3394_v29 }
 0x467   : > { %v2979_v10 = vld [vmem:[#allocation3 + $0xe0] sm:$0xff]  ;;  %3800 = vst.msk [vmem:[%s5787_s27 + $0x30] sm:$0xff] %vm547_vm0, %v3768_v0  ;;  %v3637_v56 = vmul.f32 %v5769_v63, %v3563_v23  ;;  %v2948_v22 = vpop.f32.mrf.mxu0 }
 0x468   : > { %v3011_v32 = vadd.f32 %v2979_v10, %v2941_v34  ;;  %2758 = vst.msk [vmem:[#allocation3 + $0xe8] sm:$0xff] %vm381_vm1, %v2726_v60  ;;  %v3462_v35 = vmax.f32 %v3430_v17, 0.0  ;;  %v3708_v17 = vunpack.c.l.bf16 %v437_v54 }
 0x469   : > { %v3264_v9 = vld [vmem:[#allocation3 + $0xd8] sm:$0xff]  ;;  %v3673_v14 = vadd.f32 %v5775_v50, %v3637_v56  ;;  %v3232_v60 = vpop.f32.mrf.mxu1 }
 0x46a   : > { %v3296_v11 = vadd.f32 %v3264_v9, %v3224_v28  ;;  %3043 = vst.msk [vmem:[#allocation3 + $0xe0] sm:$0xff] %vm381_vm1, %v3011_v32  ;;  %v3481_v40 = vpack.c.bf16 %v3462_v35, %v3461_v49 }
 0x46b   : > { %v3737_v59 = vadd.f32 %v3705_v15, %v3673_v14  ;;  %v3359_v37 = vld [vmem:[#allocation3 + $0xd0] sm:$0xff] }
 0x46c   : > { %3328 = vst.msk [vmem:[#allocation3 + $0xd8] sm:$0xff] %vm381_vm1, %v3296_v11  ;;  %4172 = vmatmul.msk.bf16.gmra.mxu2 %vm381_vm1, %v3481_v40  ;;  %v2660_v3 = vpop.f32.mrf.mxu3  ;;  %v3395_v31 = vmul.f32 %v5865_v19, %v3359_v37 }
 0x46d   : > { %v3769_v51 = vmax.f32 %v3737_v59, 0.0  ;;  %v2727_v43 = vadd.f32 %v2695_v13, %v2660_v3 }
 0x46e   : > { %v3566_v8 = vpop.f32.mrf.mxu2  ;;  %v3431_v39 = vadd.f32 %v5875_v52, %v3395_v31 }
 0x46f   : > { %v2980_v27 = vld [vmem:[#allocation3 + $0xe8] sm:$0xff]  ;;  %3801 = vst.msk [vmem:[%s5787_s27 + $0x38] sm:$0xff] %vm547_vm0, %v3769_v51  ;;  %v3638_v12 = vmul.f32 %v5769_v63, %v3566_v8 }
 0x470   : > { %v3012_v1 = vadd.f32 %v2980_v27, %v2943_v20  ;;  %2759 = vst.msk [vmem:[#allocation3 + $0xf0] sm:$0xff] %vm381_vm1, %v2727_v43  ;;  %v3463_v18 = vmax.f32 %v3431_v39, 0.0 }
 0x471   : > { %v3265_v57 = vld [vmem:[#allocation3 + $0xe0] sm:$0xff]  ;;  %v3674_v24 = vadd.f32 %v5775_v50, %v3638_v12  ;;  %v3234_v51 = vpop.f32.mrf.mxu1 }
 0x472   : > { %v3297_v62 = vadd.f32 %v3265_v57, %v3227_v48  ;;  %3044 = vst.msk [vmem:[#allocation3 + $0xe8] sm:$0xff] %vm381_vm1, %v3012_v1 }
 0x473   : > { %v3738_v36 = vadd.f32 %v3706_v5, %v3674_v24  ;;  %v3360_v42 = vld [vmem:[#allocation3 + $0xd8] sm:$0xff]  ;;  %v439_v5 = vld [vmem:[%s4510_s28 + $0x30] sm:$0xff]  }
 0x474   : > { %3329 = vst.msk [vmem:[#allocation3 + $0xe0] sm:$0xff] %vm381_vm1, %v3297_v62  ;;  %v2662_v33 = vpop.f32.mrf.mxu3  ;;  %v3396_v38 = vmul.f32 %v5865_v19, %v3360_v42  ;;  %v3710_v62 = vunpack.c.l.bf16 %v439_v5 }
 0x475   : > { %v3770_v46 = vmax.f32 %v3738_v36, 0.0  ;;  %v2728_v26 = vadd.f32 %v2696_v55, %v2662_v33 }
 0x476   : > { %v3568_v44 = vpop.f32.mrf.mxu2  ;;  %v3432_v61 = vadd.f32 %v5875_v52, %v3396_v38 }
 0x477   : > { %v2981_v30 = vld [vmem:[#allocation3 + $0xf0] sm:$0xff]  ;;  %3802 = vst.msk [vmem:[%s5787_s27 + $0x40] sm:$0xff] %vm547_vm0, %v3770_v46  ;;  %v3639_v41 = vmul.f32 %v5769_v63, %v3568_v44 }
 0x478   : > { %v3013_v45 = vadd.f32 %v2981_v30, %v2946_v47  ;;  %2760 = vst.msk [vmem:[#allocation3 + $0xf8] sm:$0xff] %vm381_vm1, %v2728_v26  ;;  %v3464_v58 = vmax.f32 %v3432_v61, 0.0  ;;  %v3711_v61 = vunpack.c.h.bf16 %v439_v5 }
 0x479   : > { %v3266_v21 = vld [vmem:[#allocation3 + $0xe8] sm:$0xff]  ;;  %v3675_v16 = vadd.f32 %v5775_v50, %v3639_v41 }
 0x47a   : > { %v3298_v34 = vadd.f32 %v3266_v21, %v3229_v7  ;;  %3045 = vst.msk [vmem:[#allocation3 + $0xf0] sm:$0xff] %vm381_vm1, %v3013_v45  ;;  %v3482_v28 = vpack.c.bf16 %v3464_v58, %v3463_v18 }
 0x47b   : > { %v3739_v53 = vadd.f32 %v3707_v2, %v3675_v16  ;;  %v3361_v25 = vld [vmem:[#allocation3 + $0xe0] sm:$0xff] }
 0x47c   : > { %3330 = vst.msk [vmem:[#allocation3 + $0xe8] sm:$0xff] %vm381_vm1, %v3298_v34  ;;  %4173 = vmatmul.msk.bf16.gmra.mxu2 %vm381_vm1, %v3482_v28  ;;  %v3397_v56 = vmul.f32 %v5865_v19, %v3361_v25 }
 0x47d   : > { %v3771_v6 = vmax.f32 %v3739_v53, 0.0 }
 0x47e   : > { %v3571_v29 = vpop.f32.mrf.mxu2  ;;  %v3433_v11 = vadd.f32 %v5875_v52, %v3397_v56 }
 0x47f   : > { %v2982_v0 = vld [vmem:[#allocation3 + $0xf8] sm:$0xff]  ;;  %3803 = vst.msk [vmem:[%s5787_s27 + $0x48] sm:$0xff] %vm547_vm0, %v3771_v6  ;;  %v3640_v23 = vmul.f32 %v5769_v63, %v3571_v29 }
 0x480   : > { %v3014_v10 = vadd.f32 %v2982_v0, %v2948_v22  ;;  %v3465_v20 = vmax.f32 %v3433_v11, 0.0  ;;  %v443_v22 = vld [vmem:[%s4510_s28 + $0x40] sm:$0xff]   ;;  %v445_v11 = vld [vmem:[%s4510_s28 + $0x48] sm:$0xff]  }
 0x481   : > { %v3267_v15 = vld [vmem:[#allocation3 + $0xf0] sm:$0xff]  ;;  %v3676_v32 = vadd.f32 %v5775_v50, %v3640_v23 }
 0x482   : > { %3046 = vst.msk [vmem:[#allocation3 + $0xf8] sm:$0xff] %vm381_vm1, %v3014_v10  ;;  %v3299_v49 = vadd.f32 %v3267_v15, %v3232_v60 }
 0x483   : > { %v3740_v35 = vadd.f32 %v3708_v17, %v3676_v32  ;;  %v3362_v9 = vld [vmem:[#allocation3 + $0xe8] sm:$0xff]  ;;  %v3714_v17 = vunpack.c.l.bf16 %v443_v22 }
 0x484   : > { %3331 = vst.msk [vmem:[#allocation3 + $0xf0] sm:$0xff] %vm381_vm1, %v3299_v49  ;;  %v3398_v14 = vmul.f32 %v5865_v19, %v3362_v9 }
 0x485   : > { %v3772_v40 = vmax.f32 %v3740_v35, 0.0  ;;  %v3715_v35 = vunpack.c.h.bf16 %v443_v22 }
 0x486   : > { %v3573_v59 = vpop.f32.mrf.mxu2  ;;  %v3434_v3 = vadd.f32 %v5875_v52, %v3398_v14 }
 0x487   : > { %3804 = vst.msk [vmem:[%s5787_s27 + $0x50] sm:$0xff] %vm547_vm0, %v3772_v40  ;;  %v3641_v13 = vmul.f32 %v5769_v63, %v3573_v59 }
 0x488   : > { %v3466_v48 = vmax.f32 %v3434_v3, 0.0 }
 0x489   : > { %v3268_v43 = vld [vmem:[#allocation3 + $0xf8] sm:$0xff]  ;;  %v3677_v37 = vadd.f32 %v5775_v50, %v3641_v13  ;;  %v3716_v13 = vunpack.c.l.bf16 %v445_v11 }
 0x48a   : > { %v3300_v8 = vadd.f32 %v3268_v43, %v3234_v51  ;;  %v3483_v27 = vpack.c.bf16 %v3466_v48, %v3465_v20 }
 0x48b   : > { %v3741_v12 = vadd.f32 %v3709_v4, %v3677_v37  ;;  %v3363_v31 = vld [vmem:[#allocation3 + $0xf0] sm:$0xff]  ;;  %v3717_v37 = vunpack.c.h.bf16 %v445_v11 }
 0x48c   : > { %3332 = vst.msk [vmem:[#allocation3 + $0xf8] sm:$0xff] %vm381_vm1, %v3300_v8  ;;  %4174 = vmatmul.msk.bf16.gmra.mxu2 %vm381_vm1, %v3483_v27  ;;  %v3399_v36 = vmul.f32 %v5865_v19, %v3363_v31 }
 0x48d   : > { %v3773_v1 = vmax.f32 %v3741_v12, 0.0  ;;  %v447_v12 = vld [vmem:[%s4510_s28 + $0x50] sm:$0xff]  }
 0x48e   : > { %v3576_v57 = vpop.f32.mrf.mxu2  ;;  %v3435_v39 = vadd.f32 %v5875_v52, %v3399_v36 }
 0x48f   : > { %3805 = vst.msk [vmem:[%s5787_s27 + $0x58] sm:$0xff] %vm547_vm0, %v3773_v1  ;;  %v3642_v24 = vmul.f32 %v5769_v63, %v3576_v57  ;;  %v3718_v57 = vunpack.c.l.bf16 %v447_v12 }
 0x490   : > { %v3467_v7 = vmax.f32 %v3435_v39, 0.0 }
 0x491   : > { %v3678_v42 = vadd.f32 %v5775_v50, %v3642_v24 }
 0x493   : > { %v3742_v33 = vadd.f32 %v3710_v62, %v3678_v42  ;;  %v3364_v55 = vld [vmem:[#allocation3 + $0xf8] sm:$0xff] }
 0x494   : > { %v3400_v38 = vmul.f32 %v5865_v19, %v3364_v55  ;;  %v441_v19 = vld [vmem:[%s4510_s28 + $0x38] sm:$0xff]   ;;  %v3719_v55 = vunpack.c.h.bf16 %v447_v12 }
 0x495   : > { %v3774_v47 = vmax.f32 %v3742_v33, 0.0  ;;  %v3712_v21 = vunpack.c.l.bf16 %v441_v19  ;;  %v3713_v6 = vunpack.c.h.bf16 %v441_v19 }
 0x496   : > { %v3578_v46 = vpop.f32.mrf.mxu2  ;;  %v3436_v26 = vadd.f32 %v5875_v52, %v3400_v38 }
 0x497   : > { %3806 = vst.msk [vmem:[%s5787_s27 + $0x60] sm:$0xff] %vm547_vm0, %v3774_v47  ;;  %v3643_v44 = vmul.f32 %v5769_v63, %v3578_v46  ;;  %v449_v46 = vld [vmem:[%s4510_s28 + $0x58] sm:$0xff]  }
 0x498   : > { %v3468_v30 = vmax.f32 %v3436_v26, 0.0  ;;  %v3721_v19 = vunpack.c.h.bf16 %v449_v46 }
 0x499   : > { %v3679_v41 = vadd.f32 %v5775_v50, %v3643_v44 }
 0x49a   : > { %v3484_v2 = vpack.c.bf16 %v3468_v30, %v3467_v7 }
 0x49b   : > { %v3743_v45 = vadd.f32 %v3711_v61, %v3679_v41  ;;  %v3720_v61 = vunpack.c.l.bf16 %v449_v46 }
 0x49c   : > { %4175 = vmatmul.msk.bf16.gmra.mxu2 %vm381_vm1, %v3484_v2 }
 0x49d   : > { %v3775_v18 = vmax.f32 %v3743_v45, 0.0 }
 0x49e   : > { %v3581_v58 = vpop.f32.mrf.mxu2 }
 0x49f   : > { %3807 = vst.msk [vmem:[%s5787_s27 + $0x68] sm:$0xff] %vm547_vm0, %v3775_v18  ;;  %v3644_v52 = vmul.f32 %v5769_v63, %v3581_v58 }
 0x4a1   : > { %v3680_v16 = vadd.f32 %v5775_v50, %v3644_v52  ;;  %v451_v52 = vld [vmem:[%s4510_s28 + $0x60] sm:$0xff]  }
 0x4a2   : > { %v3723_v22 = vunpack.c.h.bf16 %v451_v52 }
 0x4a3   : > { %v3744_v34 = vadd.f32 %v3712_v21, %v3680_v16 }
 0x4a5   : > { %v3776_v28 = vmax.f32 %v3744_v34, 0.0 }
 0x4a6   : > { %v3583_v53 = vpop.f32.mrf.mxu2 }
 0x4a7   : > { %3808 = vst.msk [vmem:[%s5787_s27 + $0x70] sm:$0xff] %vm547_vm0, %v3776_v28  ;;  %v3645_v54 = vmul.f32 %v5769_v63, %v3583_v53  ;;  %v3722_v28 = vunpack.c.l.bf16 %v451_v52 }
 0x4a9   : > { %v3681_v25 = vadd.f32 %v5775_v50, %v3645_v54 }
 0x4ab   : > { %v3745_v29 = vadd.f32 %v3713_v6, %v3681_v25 }
 0x4ad   : > { %v3777_v0 = vmax.f32 %v3745_v29, 0.0 }
 0x4ae   : > { %v3586_v60 = vpop.f32.mrf.mxu2 }
 0x4af   : > { %3809 = vst.msk [vmem:[%s5787_s27 + $0x78] sm:$0xff] %vm547_vm0, %v3777_v0  ;;  %v3646_v23 = vmul.f32 %v5769_v63, %v3586_v60 }
 0x4b1   : > { %v3682_v10 = vadd.f32 %v5775_v50, %v3646_v23  ;;  %v453_v23 = vld [vmem:[%s4510_s28 + $0x68] sm:$0xff]  }
 0x4b2   : > { %v3725_v11 = vunpack.c.h.bf16 %v453_v23 }
 0x4b3   : > { %v3746_v56 = vadd.f32 %v3714_v17, %v3682_v10 }
 0x4b5   : > { %v3778_v15 = vmax.f32 %v3746_v56, 0.0 }
 0x4b6   : > { %v3588_v32 = vpop.f32.mrf.mxu2 }
 0x4b7   : > { %3810 = vst.msk [vmem:[%s5787_s27 + $0x80] sm:$0xff] %vm547_vm0, %v3778_v15  ;;  %v3647_v49 = vmul.f32 %v5769_v63, %v3588_v32  ;;  %v3724_v15 = vunpack.c.l.bf16 %v453_v23 }
 0x4b9   : > { %v3683_v9 = vadd.f32 %v5775_v50, %v3647_v49 }
 0x4bb   : > { %v3747_v14 = vadd.f32 %v3715_v35, %v3683_v9 }
 0x4bd   : > { %v3779_v40 = vmax.f32 %v3747_v14, 0.0 }
 0x4be   : > { %v3591_v59 = vpop.f32.mrf.mxu2 }
 0x4bf   : > { %3811 = vst.msk [vmem:[%s5787_s27 + $0x88] sm:$0xff] %vm547_vm0, %v3779_v40  ;;  %v3648_v3 = vmul.f32 %v5769_v63, %v3591_v59 }
 0x4c1   : > { %v3684_v4 = vadd.f32 %v5775_v50, %v3648_v3  ;;  %v455_v3 = vld [vmem:[%s4510_s28 + $0x70] sm:$0xff]  }
 0x4c2   : > { %v3727_v12 = vunpack.c.h.bf16 %v455_v3 }
 0x4c3   : > { %v3748_v20 = vadd.f32 %v3716_v13, %v3684_v4 }
 0x4c5   : > { %v3780_v48 = vmax.f32 %v3748_v20, 0.0 }
 0x4c6   : > { %v3593_v51 = vpop.f32.mrf.mxu2 }
 0x4c7   : > { %3812 = vst.msk [vmem:[%s5787_s27 + $0x90] sm:$0xff] %vm547_vm0, %v3780_v48  ;;  %v3649_v43 = vmul.f32 %v5769_v63, %v3593_v51  ;;  %v3726_v48 = vunpack.c.l.bf16 %v455_v3 }
 0x4c9   : > { %v3685_v8 = vadd.f32 %v5775_v50, %v3649_v43 }
 0x4cb   : > { %v3749_v27 = vadd.f32 %v3717_v37, %v3685_v8 }
 0x4cd   : > { %v3781_v5 = vmax.f32 %v3749_v27, 0.0 }
 0x4ce   : > { %v3596_v1 = vpop.f32.mrf.mxu2 }
 0x4cf   : > { %3813 = vst.msk [vmem:[%s5787_s27 + $0x98] sm:$0xff] %vm547_vm0, %v3781_v5  ;;  %v3650_v31 = vmul.f32 %v5769_v63, %v3596_v1 }
 0x4d1   : > { %v3686_v24 = vadd.f32 %v5775_v50, %v3650_v31  ;;  %v457_v31 = vld [vmem:[%s4510_s28 + $0x78] sm:$0xff]   ;;  %s3838_s28 = scalar_lea.hbm %s6045_s10, %s4199_s22 }
 0x4d2   : > { %s3841_s29 = sshll.u32 %s3838_s28, 4  ;;  %s3842_s29 = int_to_ptr.hbm [resolvable:$true] %s3841_s29 }
 0x4d3   : > { %v3750_v62 = vadd.f32 %v3718_v57, %v3686_v24  ;;  %s4306_s23 = sshra.s32 %s3842_s29, 4  ;;  %s4307_s23 = int_to_ptr.hbm [resolvable:$true] %s4306_s23 }
 0x4d4   : > { %s4308_s30 = scalar_lea.hbm %s4307_s23, 256  ;;  %p4313_p0 = scmp.lt.s32.totalorder %s4307_s23, %s6045_s10 }
 0x4d5   : > { %v3782_v36 = vmax.f32 %v3750_v62, 0.0  ;;  %p4309_p6 = scmp.ne.s32.totalorder %s4307_s23, %s4308_s30  ;;  %p4314_p1 = scmp.lt.s32.totalorder %s4312_s19, %s4308_s30 }
 0x4d6   : > { %v3598_v42 = vpop.f32.mrf.mxu2 }
 0x4d7   : > { %3814 = vst.msk [vmem:[%s5787_s27 + $0xa0] sm:$0xff] %vm547_vm0, %v3782_v36  ;;  %v3651_v33 = vmul.f32 %v5769_v63, %v3598_v42  ;;  %v3728_v36 = vunpack.c.l.bf16 %v457_v31  ;;  %p4310_p9 = pnand %p4309_p6, %p4470_p11  ;;  %p4315_p3 = por %p4314_p1, %p4313_p0 }
 0x4d9   : > { %v3687_v38 = vadd.f32 %v5775_v50, %v3651_v33  ;;  %p4311_p13 = pneg %p4310_p9 }
 0x4db   : > { %v3751_v39 = vadd.f32 %v3719_v55, %v3687_v38  ;;  %p4316_p4 = pnand %p4315_p3, %p4311_p13 }
 0x4dd   : > { %v3783_v47 = vmax.f32 %v3751_v39, 0.0 }
 0x4df   : > { %3815 = vst.msk [vmem:[%s5787_s27 + $0xa8] sm:$0xff] %vm547_vm0, %v3783_v47  ;;  %v3601_v26 = vpop.f32.mrf.mxu2  ;;  %v3729_v47 = vunpack.c.h.bf16 %v457_v31 }
 0x4e0   : > { %v3652_v44 = vmul.f32 %v5769_v63, %v3601_v26 }
 0x4e2   : > { %v3688_v7 = vadd.f32 %v5775_v50, %v3652_v44 }
 0x4e4   : > { %v3752_v30 = vadd.f32 %v3720_v61, %v3688_v7 }
 0x4e6   : > { %v3784_v41 = vmax.f32 %v3752_v30, 0.0 }
 0x4e7   : > { %v3603_v2 = vpop.f32.mrf.mxu2 }
 0x4e8   : > { %3816 = vst.msk [vmem:[%s5787_s27 + $0xb0] sm:$0xff] %vm547_vm0, %v3784_v41  ;;  %v3653_v45 = vmul.f32 %v5769_v63, %v3603_v2 }
 0x4ea   : > { %v3689_v18 = vadd.f32 %v5775_v50, %v3653_v45 }
 0x4ec   : > { %v3753_v58 = vadd.f32 %v3721_v19, %v3689_v18 }
 0x4ee   : > { %v3785_v21 = vmax.f32 %v3753_v58, 0.0 }
 0x4ef   : > { %v3606_v16 = vpop.f32.mrf.mxu2 }
 0x4f0   : > { %3817 = vst.msk [vmem:[%s5787_s27 + $0xb8] sm:$0xff] %vm547_vm0, %v3785_v21  ;;  %v3654_v34 = vmul.f32 %v5769_v63, %v3606_v16 }
 0x4f2   : > { %v3690_v53 = vadd.f32 %v5775_v50, %v3654_v34 }
 0x4f4   : > { %v3754_v54 = vadd.f32 %v3722_v28, %v3690_v53 }
 0x4f6   : > { %v3786_v6 = vmax.f32 %v3754_v54, 0.0 }
 0x4f7   : > { %v3608_v25 = vpop.f32.mrf.mxu2 }
 0x4f8   : > { %3818 = vst.msk [vmem:[%s5787_s27 + $0xc0] sm:$0xff] %vm547_vm0, %v3786_v6  ;;  %v3655_v29 = vmul.f32 %v5769_v63, %v3608_v25 }
 0x4fa   : > { %v3691_v0 = vadd.f32 %v5775_v50, %v3655_v29 }
 0x4fc   : > { %v3755_v60 = vadd.f32 %v3723_v22, %v3691_v0 }
 0x4fe   : > { %v3787_v17 = vmax.f32 %v3755_v60, 0.0 }
 0x4ff   : > { %v3611_v10 = vpop.f32.mrf.mxu2 }
 0x500   : > { %3819 = vst.msk [vmem:[%s5787_s27 + $0xc8] sm:$0xff] %vm547_vm0, %v3787_v17  ;;  %v3656_v56 = vmul.f32 %v5769_v63, %v3611_v10 }
 0x502   : > { %v3692_v32 = vadd.f32 %v5775_v50, %v3656_v56 }
 0x504   : > { %v3756_v49 = vadd.f32 %v3724_v15, %v3692_v32 }
 0x506   : > { %v3788_v35 = vmax.f32 %v3756_v49, 0.0 }
 0x507   : > { %v3613_v9 = vpop.f32.mrf.mxu2 }
 0x508   : > { %3820 = vst.msk [vmem:[%s5787_s27 + $0xd0] sm:$0xff] %vm547_vm0, %v3788_v35  ;;  %v3657_v14 = vmul.f32 %v5769_v63, %v3613_v9 }
 0x50a   : > { %v3693_v40 = vadd.f32 %v5775_v50, %v3657_v14 }
 0x50c   : > { %v3757_v59 = vadd.f32 %v3725_v11, %v3693_v40 }
 0x50e   : > { %v3789_v13 = vmax.f32 %v3757_v59, 0.0 }
 0x50f   : > { %v3616_v4 = vpop.f32.mrf.mxu2 }
 0x510   : > { %3821 = vst.msk [vmem:[%s5787_s27 + $0xd8] sm:$0xff] %vm547_vm0, %v3789_v13  ;;  %v3658_v20 = vmul.f32 %v5769_v63, %v3616_v4 }
 0x512   : > { %v3694_v51 = vadd.f32 %v5775_v50, %v3658_v20 }
 0x514   : > { %v3758_v43 = vadd.f32 %v3726_v48, %v3694_v51 }
 0x516   : > { %v3790_v37 = vmax.f32 %v3758_v43, 0.0 }
 0x517   : > { %v3618_v8 = vpop.f32.mrf.mxu2 }
 0x518   : > { %3822 = vst.msk [vmem:[%s5787_s27 + $0xe0] sm:$0xff] %vm547_vm0, %v3790_v37  ;;  %v3659_v27 = vmul.f32 %v5769_v63, %v3618_v8 }
 0x51a   : > { %v3695_v5 = vadd.f32 %v5775_v50, %v3659_v27 }
 0x51c   : > { %v3759_v1 = vadd.f32 %v3727_v12, %v3695_v5 }
 0x51e   : > { %v3791_v57 = vmax.f32 %v3759_v1, 0.0 }
 0x51f   : > { %v3621_v24 = vpop.f32.mrf.mxu2 }
 0x520   : > { %3823 = vst.msk [vmem:[%s5787_s27 + $0xe8] sm:$0xff] %vm547_vm0, %v3791_v57  ;;  %v3660_v62 = vmul.f32 %v5769_v63, %v3621_v24 }
 0x522   : > { %v3696_v42 = vadd.f32 %v5775_v50, %v3660_v62 }
 0x524   : > { %v3760_v33 = vadd.f32 %v3728_v36, %v3696_v42 }
 0x526   : > { %v3792_v55 = vmax.f32 %v3760_v33, 0.0 }
 0x527   : > { %v3623_v38 = vpop.f32.mrf.mxu2 }
 0x528   : > { %3824 = vst.msk [vmem:[%s5787_s27 + $0xf0] sm:$0xff] %vm547_vm0, %v3792_v55  ;;  %v3661_v39 = vmul.f32 %v5769_v63, %v3623_v38 }
 0x52a   : > { %v3697_v46 = vadd.f32 %v5775_v50, %v3661_v39 }
 0x52c   : > { %v3761_v26 = vadd.f32 %v3729_v47, %v3697_v46 }
 0x52e   : > { %v3793_v44 = vmax.f32 %v3761_v26, 0.0 }
 0x530   : > { %3825 = vst.msk [vmem:[%s5787_s27 + $0xf8] sm:$0xff] %vm547_vm0, %v3793_v44 }
 0x531   : > { %4319 = shalt.err (!%p4316_p4)
}
 0x532   : > { %s4363_s18 = smov 128   ;;  %s4364_s27 = smov 8  }
 0x533   : > { %4205 = dma.vmem_to_hbm [thread:$0]  (%p4470_p11), %s3840_s21, 4096, %s3842_s29, %s3827_s17, %s4363_s18, %s4363_s18, %s4364_s27  }
 0x534 PF: > { %s3856_s24 = sand.u32 1, %s4346_s13   ;;  %p6103_p7 = scmp.ge.s32.totalorder %s4358_s16, 2 }
 0x535   : > { %s3857_s20 = scalar_lea.sflag [#allocation6], %s3856_s24 }
 0x536   : > { %p4212_p5 = pnand %p6103_p7, %p4474_p12 }
 0x538   : > { %p4213_p8 = pneg %p4212_p5 }
 0x53a   : > { %4341 = dma.done.wait (%p4213_p8), %s3857_s20, 4096  }
 0x53b   : > { %4343 = vsyncadd (%p4213_p8), %s3857_s20, 4294963200  ;;  %s6104_s16 = sld [smem:[#allocation11_spill]]  ;;  %s6107_s13 = smov %s4350_s14 }
 0x53c   : > { %s6105_s28 = sld [smem:[#allocation10_spill]] }
 0x53d   : > { %s6106_s15 = sld [smem:[#allocation12_spill]] }
 0x541   : > { %p23_p10 = scmp.ge.s32.totalorder %s6104_s16, 4  }
 0x542   : > { %s6108_s14 = smov %s6105_s28 }
 0x543   :  { %25 = sbr.rel (!%p23_p10) target bundleno = 5 (0x5), region = 116 }
 0x548   :  { %3863 = vsyncpa [#allocation5], 1 }
 0x549   :  { %3865 = vsyncpa [#allocation5 + $0x1], 1 }
 0x54a   :  { %3866 = vsyncpa [#allocation6], 1 }
 0x54b   :  { %3868 = vsyncpa [#allocation6 + $0x1], 1 }

</bundles_post_ra>
